<compile_context>
chip_gen: v7x
topology: tpu7x:2x2x1
jax: 0.10.0
libtpu: 0.0.40
codegen_flags: <defaults>
</compile_context>

<pallas_src>
import jax
import jax.numpy as jnp
from jax import lax
from jax.experimental import pallas as pl
from jax.experimental.pallas import tpu as pltpu

LANE = 128


def _round_up(x, m):
    return (x + m - 1) // m * m


# ---------------------------------------------------------------------------
# Fused kernel
# ---------------------------------------------------------------------------
def _bottleneck_kernel(x_ref, w1_ref, w2_ref, w3_ref, bn_ref, o_ref,
                       h1_ref, acc_ref):
    B, H, W, Cp = x_ref.shape
    Pp = w1_ref.shape[1]
    C4p = w3_ref.shape[1]
    M = B * H * W
    bf16 = jnp.bfloat16

    # ---- conv1 (1x1) + bn1 + relu -> staged into the H-halo scratch (f32) ----
    x2d = x_ref[...].reshape(M, Cp)
    y1 = jnp.dot(x2d, w1_ref[...], preferred_element_type=jnp.float32)
    y1 = jnp.maximum(y1 * bn_ref[0:1, :Pp] + bn_ref[1:2, :Pp], 0.0)
    h1_ref[:, pl.ds(1, H), :, :] = y1.reshape(B, H, W, Pp)

    # Zero only the two halo rows per image; the interior is fully overwritten
    # every step.  (Not gated on program_id: the scratch is per-core private
    # under "parallel" megacore sharding.)
    zrow = jnp.zeros((B, W, Pp), h1_ref.dtype)
    h1_ref[:, 0, :, :] = zrow
    h1_ref[:, H + 1, :, :] = zrow

    # ---- conv2 (3x3, stride 1, pad 1) + bn2 + relu ---------------------------
    # kw shifts via pltpu.roll along W (XLU) + one-column masks; all scratch
    # accesses are sublane-aligned.  Accumulate into an f32 VMEM scratch so the
    # live vreg footprint stays small across the 9 taps.
    col = lax.broadcasted_iota(jnp.int32, (1, W, 1), 1)
    first_col = col == 0
    last_col = col == W - 1

    for kh in range(3):
        rows = h1_ref[:, pl.ds(kh, H), :, :].reshape(B * H, W, Pp)   # aligned read
        center = jnp.dot(rows.astype(bf16).reshape(M, Pp), w2_ref[3 * kh + 1],
                         preferred_element_type=jnp.float32)
        if kh == 0:
            acc_ref[...] = center            # init with first tap (no zero-fill)
        else:
            acc_ref[...] += center
        # tap kw=0: win[j] = y[j-1]; roll right by 1, zero wrapped column 0
        left = jnp.where(first_col, 0.0, pltpu.roll(rows, 1, 1))
        acc_ref[...] += jnp.dot(left.astype(bf16).reshape(M, Pp),
                                w2_ref[3 * kh + 0],
                                preferred_element_type=jnp.float32)
        # tap kw=2: win[j] = y[j+1]; roll left by 1, zero wrapped column W-1
        right = jnp.where(last_col, 0.0, pltpu.roll(rows, W - 1, 1))
        acc_ref[...] += jnp.dot(right.astype(bf16).reshape(M, Pp),
                                w2_ref[3 * kh + 2],
                                preferred_element_type=jnp.float32)

    y2 = jnp.maximum(acc_ref[...] * bn_ref[2:3, :Pp] + bn_ref[3:4, :Pp], 0.0)
    y2 = y2.astype(bf16)

    # ---- conv3 (1x1) + bn3 + identity residual + relu ------------------------
    y3 = jnp.dot(y2, w3_ref[...], preferred_element_type=jnp.float32)
    y3 = y3 * bn_ref[4:5, :C4p] + bn_ref[5:6, :C4p]
    # Re-read x for the residual (Cp == C4p) instead of keeping it live.
    y3 = y3 + x_ref[...].reshape(M, C4p).astype(jnp.float32)
    o_ref[...] = jnp.maximum(y3, 0.0).reshape(B, H, W, C4p).astype(o_ref.dtype)


# ---------------------------------------------------------------------------
# Tile selection / VMEM budgeting
# ---------------------------------------------------------------------------
def _vmem_estimate(b, h, w, cp, pp, c4p, cmax):
    hw = h * w
    io = 2 * b * hw * (cp + c4p) * 2                        # double-buffered x/out (bf16)
    wts = 2 * ((cp * pp + 9 * pp * pp + pp * c4p) * 2 + 6 * cmax * 4)
    scratch = b * (h + 2) * w * pp * 4 + b * hw * pp * 4    # f32 halo stage + f32 acc
    temps = b * hw * (4 * pp + 4 * c4p + 3 * 4 * pp)        # y1/y3 + rolled-row temps
    return io + wts + scratch + temps


def _pick_batch_tile(n, h, w, cp, pp, c4p, cmax,
                     target_rows=1024, vmem_budget=40 * 1024 * 1024):
    """Largest divisor of n that fits the VMEM budget; stop growing once the
    matmul M = b*h*w reaches target_rows."""
    best = 1
    for b in range(1, n + 1):
        if n % b:
            continue
        if _vmem_estimate(b, h, w, cp, pp, c4p, cmax) <= vmem_budget:
            best = b
        if best * h * w >= target_rows:
            break
    return best


# ---------------------------------------------------------------------------
# Wrappers (plain-JAX glue at the block boundary only)
# ---------------------------------------------------------------------------
def bottleneck_forward_nhwc_padded(x_pad, params, b_tile=None):
    """x_pad: (N, H, W, Cp) bf16, channels already padded to the kernel layout.
    Returns (N, H, W, C4p) bf16.  Compose stacked bottleneck blocks through this
    entry point so the padded NHWC layout stays in HBM end-to-end."""
    N, H, W, Cp = x_pad.shape
    Pp = params["w1"].shape[1]
    C4p = params["w3"].shape[1]
    Cmax = params["bn"].shape[1]
    assert Cp == C4p, "identity residual requires inplanes == planes * 4"

    if b_tile is None:
        b_tile = _pick_batch_tile(N, H, W, Cp, Pp, C4p, Cmax)
    assert N % b_tile == 0
    est = _vmem_estimate(b_tile, H, W, Cp, Pp, C4p, Cmax)

    return pl.pallas_call(
        _bottleneck_kernel,
        out_shape=jax.ShapeDtypeStruct((N, H, W, C4p), jnp.bfloat16),
        grid=(N // b_tile,),
        in_specs=[
            pl.BlockSpec((b_tile, H, W, Cp), lambda n: (n, 0, 0, 0)),   # x (+residual)
            pl.BlockSpec((Cp, Pp), lambda n: (0, 0)),                   # w1
            pl.BlockSpec((9, Pp, Pp), lambda n: (0, 0, 0)),             # w2 (per tap)
            pl.BlockSpec((Pp, C4p), lambda n: (0, 0)),                  # w3
            pl.BlockSpec((6, Cmax), lambda n: (0, 0)),                  # folded BN table
        ],
        out_specs=pl.BlockSpec((b_tile, H, W, C4p), lambda n: (n, 0, 0, 0)),
        scratch_shapes=[
            pltpu.VMEM((b_tile, H + 2, W, Pp), jnp.float32),   # conv1 stage, H-halo only
            pltpu.VMEM((b_tile * H * W, Pp), jnp.float32),     # conv2 accumulator
        ],
        compiler_params=pltpu.CompilerParams(
            dimension_semantics=("parallel",),                 # megacore over batch tiles
            vmem_limit_bytes=int(min(max(est, 32 * 1024 * 1024), 64 * 1024 * 1024)),
        ),
    )(x_pad, params["w1"], params["w2"], params["w3"], params["bn"])


def bottleneck_forward_nhwc(x_nhwc, params):
    N, H, W, C = x_nhwc.shape
    c_out = params["planes"] * 4
    assert C == c_out, "stride=1 / downsample=None requires inplanes == planes * 4"
    Cp = params["w1"].shape[0]
    # Pad/slice only at the network boundary; stacked blocks should compose via
    # bottleneck_forward_nhwc_padded to avoid repeated pad/slice HBM traffic.
    x_pad = jnp.pad(x_nhwc.astype(jnp.bfloat16),
                    ((0, 0), (0, 0), (0, 0), (0, Cp - C)))
    out = bottleneck_forward_nhwc_padded(x_pad, params)
    return out[..., :c_out].astype(x_nhwc.dtype)


def bottleneck_forward(x_nchw, params):
    # NCHW<->NHWC transposes are boundary glue only.
    x_nhwc = jnp.transpose(x_nchw, (0, 2, 3, 1))
    out = bottleneck_forward_nhwc(x_nhwc, params)
    return jnp.transpose(out, (0, 3, 1, 2))


# ---------------------------------------------------------------------------
# Parameter construction (BN folded to scale/shift, weights matmul-ready)
# ---------------------------------------------------------------------------
def _fold_bn(gamma, beta, mean, var, eps=1e-5):
    scale = gamma / jnp.sqrt(var + eps)
    shift = beta - mean * scale
    return scale, shift


def init_params(key, inplanes, planes):
    expansion = 4
    c_out = planes * expansion
    Cp = _round_up(inplanes, LANE)
    Pp = _round_up(planes, LANE)
    C4p = _round_up(c_out, LANE)
    Cmax = max(Pp, C4p)

    k = jax.random.split(key, 6)
    # conv weights stored matmul-ready as (Cin, Cout); conv2 as 9 per-tap
    # matrices (== torch_weight[:, :, kh, kw].T).
    w1 = 0.1 * jax.random.normal(k[0], (inplanes, planes), jnp.float32)
    w2 = 0.1 * jax.random.normal(k[1], (9, planes, planes), jnp.float32)
    w3 = 0.1 * jax.random.normal(k[2], (planes, c_out), jnp.float32)

    def bn(kk, c):
        s = jax.random.split(kk, 4)
        gamma = 1.0 + 0.05 * jax.random.normal(s[0], (c,), jnp.float32)
        beta = 0.05 * jax.random.normal(s[1], (c,), jnp.float32)
        mean = 0.05 * jax.random.normal(s[2], (c,), jnp.float32)
        var = jnp.abs(1.0 + 0.05 * jax.random.normal(s[3], (c,), jnp.float32))
        return _fold_bn(gamma, beta, mean, var)

    s1, b1 = bn(k[3], planes)
    s2, b2 = bn(k[4], planes)
    s3, b3 = bn(k[5], c_out)

    def padw(w, rows, cols):
        return jnp.pad(w, ((0, rows - w.shape[0]), (0, cols - w.shape[1])))

    params = dict(
        planes=planes,
        w1=padw(w1, Cp, Pp).astype(jnp.bfloat16),
        w2=jnp.pad(w2, ((0, 0), (0, Pp - planes), (0, Pp - planes))).astype(jnp.bfloat16),
        w3=padw(w3, Pp, C4p).astype(jnp.bfloat16),
        bn=jnp.stack([
            jnp.pad(s1, (0, Cmax - planes)),
            jnp.pad(b1, (0, Cmax - planes)),
            jnp.pad(s2, (0, Cmax - planes)),
            jnp.pad(b2, (0, Cmax - planes)),
            jnp.pad(s3, (0, Cmax - c_out)),
            jnp.pad(b3, (0, Cmax - c_out)),
        ]).astype(jnp.float32),
    )
    raw = dict(w1=w1, w2=w2, w3=w3, s1=s1, b1=b1, s2=s2, b2=b2, s3=s3, b3=b3)
    return params, raw


# ---------------------------------------------------------------------------
# Pure-JAX reference (mirrors the kernel's bf16 casts) for a correctness check
# ---------------------------------------------------------------------------
def reference_forward(x_nchw, raw):
    f32 = jnp.float32

    def q(a):
        return a.astype(jnp.bfloat16).astype(f32)

    x = q(jnp.transpose(x_nchw, (0, 2, 3, 1)))
    N, H, W, C = x.shape
    w1, w2, w3 = q(raw["w1"]), q(raw["w2"]), q(raw["w3"])

    y1 = jnp.einsum("nhwc,cp->nhwp", x, w1) * raw["s1"] + raw["b1"]
    y1 = q(jnp.maximum(y1, 0.0))

    y1p = jnp.pad(y1, ((0, 0), (1, 1), (1, 1), (0, 0)))
    acc = jnp.zeros(y1.shape[:-1] + (w2.shape[-1],), f32)
    for kh in range(3):
        for kw in range(3):
            acc = acc + jnp.einsum("nhwc,cd->nhwd",
                                   y1p[:, kh:kh + H, kw:kw + W, :], w2[kh * 3 + kw])
    y2 = q(jnp.maximum(acc * raw["s2"] + raw["b2"], 0.0))

    y3 = jnp.einsum("nhwp,pd->nhwd", y2, w3) * raw["s3"] + raw["b3"] + x
    out = q(jnp.maximum(y3, 0.0))
    return jnp.transpose(out, (0, 3, 1, 2))


if __name__ == "__main__":
    inplanes, planes = 16, 4          # inplanes == planes*4 -> identity residual
    N, H, W = 2, 16, 16

    key = jax.random.PRNGKey(0)
    kx, kp = jax.random.split(key)
    x = jax.random.normal(kx, (N, inplanes, H, W), jnp.float32)   # NCHW like PyTorch
    params, raw = init_params(kp, inplanes, planes)

    out = bottleneck_forward(x, params)
    out = jax.block_until_ready(out)

    assert out.shape == (N, planes * 4, H, W)
    assert bool(jnp.all(out >= 0.0))        # final ReLU

    ref = reference_forward(x, raw)
    max_err = float(jnp.max(jnp.abs(out - ref)))
    assert max_err < 5e-2, f"mismatch vs reference: {max_err}"

    print("KERNEL_OK")
</pallas_src>

<mosaic_0001>
module attributes {stable_mosaic.version = 11 : i64} {
  func.func @_bottleneck_kernel(%arg0: i32, %arg1: memref<2x16x16x128xbf16, #tpu.memory_space<vmem>>, %arg2: memref<128x128xbf16, #tpu.memory_space<vmem>>, %arg3: memref<9x128x128xbf16, #tpu.memory_space<vmem>>, %arg4: memref<128x128xbf16, #tpu.memory_space<vmem>>, %arg5: memref<6x128xf32, #tpu.memory_space<vmem>>, %arg6: memref<2x16x16x128xbf16, #tpu.memory_space<vmem>>, %arg7: memref<2x18x16x128xf32, #tpu.memory_space<vmem>>, %arg8: memref<512x128xf32, #tpu.memory_space<vmem>>) attributes {dimension_semantics = [#tpu.dimension_semantics<parallel>], iteration_bounds = array<i64: 1>, scalar_prefetch = 0 : i64, scratch_operands = 2 : i64, tpu.core_type = #tpu.core_type<tc>, window_params = [{transform_indices = @transform_0, window_bounds = array<i64: 2, 16, 16, 128>}, {pipeline_mode = #tpu.pipeline_mode<synchronous>, transform_indices = @transform_1, window_bounds = array<i64: 128, 128>}, {pipeline_mode = #tpu.pipeline_mode<synchronous>, transform_indices = @transform_2, window_bounds = array<i64: 9, 128, 128>}, {pipeline_mode = #tpu.pipeline_mode<synchronous>, transform_indices = @transform_3, window_bounds = array<i64: 128, 128>}, {pipeline_mode = #tpu.pipeline_mode<synchronous>, transform_indices = @transform_4, window_bounds = array<i64: 6, 128>}, {transform_indices = @transform_5, window_bounds = array<i64: 2, 16, 16, 128>}]} {
    %c0 = arith.constant 0 : index
    %c0_0 = arith.constant 0 : index
    %c0_1 = arith.constant 0 : index
    %c0_2 = arith.constant 0 : index
    %0 = vector.load %arg1[%c0, %c0_0, %c0_1, %c0_2] : memref<2x16x16x128xbf16, #tpu.memory_space<vmem>>, vector<2x16x16x128xbf16>
    %1 = vector.shape_cast %0 : vector<2x16x16x128xbf16> to vector<512x128xbf16>
    %c0_3 = arith.constant 0 : index
    %c0_4 = arith.constant 0 : index
    %2 = vector.load %arg2[%c0_3, %c0_4] : memref<128x128xbf16, #tpu.memory_space<vmem>>, vector<128x128xbf16>
    %cst = arith.constant dense<0.000000e+00> : vector<512x128xf32>
    %3 = tpu.matmul %1, %2, %cst {dimension_numbers = #tpu.dot_dimension_numbers<[1], [0], [0], [1], [0, 0, 1, 1], [], []>} : vector<512x128xbf16>, vector<128x128xbf16>, vector<512x128xf32> -> vector<512x128xf32>
    %c0_5 = arith.constant 0 : index
    %c0_6 = arith.constant 0 : index
    %4 = vector.load %arg5[%c0_5, %c0_6] : memref<6x128xf32, #tpu.memory_space<vmem>>, vector<1x128xf32>
    %5 = vector.broadcast %4 : vector<1x128xf32> to vector<512x128xf32>
    %6 = arith.mulf %3, %5 : vector<512x128xf32>
    %c1 = arith.constant 1 : index
    %c0_7 = arith.constant 0 : index
    %7 = vector.load %arg5[%c1, %c0_7] : memref<6x128xf32, #tpu.memory_space<vmem>>, vector<1x128xf32>
    %8 = vector.broadcast %7 : vector<1x128xf32> to vector<512x128xf32>
    %9 = arith.addf %6, %8 : vector<512x128xf32>
    %cst_8 = arith.constant 0.000000e+00 : f32
    %10 = vector.broadcast %cst_8 : f32 to vector<512x128xf32>
    %11 = arith.maximumf %9, %10 : vector<512x128xf32>
    %12 = vector.shape_cast %11 : vector<512x128xf32> to vector<2x16x16x128xf32>
    %c0_9 = arith.constant 0 : index
    %c1_10 = arith.constant 1 : index
    %c0_11 = arith.constant 0 : index
    %c0_12 = arith.constant 0 : index
    %13 = vector.load %arg7[%c0_9, %c1_10, %c0_11, %c0_12] : memref<2x18x16x128xf32, #tpu.memory_space<vmem>>, vector<2x16x16x128xf32>
    tpu.vector_store %arg7[%c0_9, %c1_10, %c0_11, %c0_12], %12 {strides = array<i32>} : memref<2x18x16x128xf32, #tpu.memory_space<vmem>>, vector<2x16x16x128xf32>,
    %cst_13 = arith.constant 0.000000e+00 : f32
    %14 = vector.broadcast %cst_13 : f32 to vector<2x16x128xf32>
    %c0_14 = arith.constant 0 : index
    %c0_15 = arith.constant 0 : index
    %c0_16 = arith.constant 0 : index
    %c0_17 = arith.constant 0 : index
    %15 = vector.load %arg7[%c0_14, %c0_15, %c0_16, %c0_17] : memref<2x18x16x128xf32, #tpu.memory_space<vmem>>, vector<2x1x16x128xf32>
    %16 = vector.shape_cast %15 : vector<2x1x16x128xf32> to vector<2x16x128xf32>
    %17 = vector.shape_cast %14 : vector<2x16x128xf32> to vector<2x1x16x128xf32>
    tpu.vector_store %arg7[%c0_14, %c0_15, %c0_16, %c0_17], %17 {strides = array<i32>} : memref<2x18x16x128xf32, #tpu.memory_space<vmem>>, vector<2x1x16x128xf32>,
    %c0_18 = arith.constant 0 : index
    %c17 = arith.constant 17 : index
    %c0_19 = arith.constant 0 : index
    %c0_20 = arith.constant 0 : index
    %18 = vector.load %arg7[%c0_18, %c17, %c0_19, %c0_20] : memref<2x18x16x128xf32, #tpu.memory_space<vmem>>, vector<2x1x16x128xf32>
    %19 = vector.shape_cast %18 : vector<2x1x16x128xf32> to vector<2x16x128xf32>
    %20 = vector.shape_cast %14 : vector<2x16x128xf32> to vector<2x1x16x128xf32>
    tpu.vector_store %arg7[%c0_18, %c17, %c0_19, %c0_20], %20 {strides = array<i32>} : memref<2x18x16x128xf32, #tpu.memory_space<vmem>>, vector<2x1x16x128xf32>,
    %21 = tpu.iota {dimensions = array<i32: 1>} : vector<1x16x1xi32>
    %c0_i32 = arith.constant 0 : i32
    %22 = vector.broadcast %c0_i32 : i32 to vector<1x16x1xi32>
    %23 = arith.cmpi eq, %21, %22 : vector<1x16x1xi32>
    %c15_i32 = arith.constant 15 : i32
    %24 = vector.broadcast %c15_i32 : i32 to vector<1x16x1xi32>
    %25 = arith.cmpi eq, %21, %24 : vector<1x16x1xi32>
    %c0_21 = arith.constant 0 : index
    %c0_22 = arith.constant 0 : index
    %c0_23 = arith.constant 0 : index
    %c0_24 = arith.constant 0 : index
    %26 = vector.load %arg7[%c0_21, %c0_22, %c0_23, %c0_24] : memref<2x18x16x128xf32, #tpu.memory_space<vmem>>, vector<2x16x16x128xf32>
    %27 = vector.shape_cast %26 : vector<2x16x16x128xf32> to vector<32x16x128xf32>
    %28 = arith.truncf %27 : vector<32x16x128xf32> to vector<32x16x128xbf16>
    %29 = vector.shape_cast %28 : vector<32x16x128xbf16> to vector<512x128xbf16>
    %c1_25 = arith.constant 1 : index
    %c0_26 = arith.constant 0 : index
    %c0_27 = arith.constant 0 : index
    %30 = vector.load %arg3[%c1_25, %c0_26, %c0_27] : memref<9x128x128xbf16, #tpu.memory_space<vmem>>, vector<1x128x128xbf16>
    %31 = vector.shape_cast %30 : vector<1x128x128xbf16> to vector<128x128xbf16>
    %cst_28 = arith.constant dense<0.000000e+00> : vector<512x128xf32>
    %32 = tpu.matmul %29, %31, %cst_28 {dimension_numbers = #tpu.dot_dimension_numbers<[1], [0], [0], [1], [0, 0, 1, 1], [], []>} : vector<512x128xbf16>, vector<128x128xbf16>, vector<512x128xf32> -> vector<512x128xf32>
    %c0_29 = arith.constant 0 : index
    %c0_30 = arith.constant 0 : index
    %33 = vector.load %arg8[%c0_29, %c0_30] : memref<512x128xf32, #tpu.memory_space<vmem>>, vector<512x128xf32>
    tpu.vector_store %arg8[%c0_29, %c0_30], %32 {strides = array<i32>} : memref<512x128xf32, #tpu.memory_space<vmem>>, vector<512x128xf32>,
    %c1_i32 = arith.constant 1 : i32
    %34 = tpu.dynamic_rotate %27 by %c1_i32 dim 1 : vector<32x16x128xf32>, i32 -> vector<32x16x128xf32>
    %cst_31 = arith.constant 0.000000e+00 : f32
    %35 = vector.shape_cast %23 : vector<1x16x1xi1> to vector<1x16x1xi1>
    %36 = vector.broadcast %35 : vector<1x16x1xi1> to vector<32x16x128xi1>
    %37 = vector.broadcast %cst_31 : f32 to vector<32x16x128xf32>
    %38 = arith.select %36, %37, %34 : vector<32x16x128xi1>, vector<32x16x128xf32>
    %c0_32 = arith.constant 0 : index
    %c0_33 = arith.constant 0 : index
    %39 = vector.load %arg8[%c0_32, %c0_33] : memref<512x128xf32, #tpu.memory_space<vmem>>, vector<512x128xf32>
    %40 = arith.truncf %38 : vector<32x16x128xf32> to vector<32x16x128xbf16>
    %41 = vector.shape_cast %40 : vector<32x16x128xbf16> to vector<512x128xbf16>
    %c0_34 = arith.constant 0 : index
    %c0_35 = arith.constant 0 : index
    %c0_36 = arith.constant 0 : index
    %42 = vector.load %arg3[%c0_34, %c0_35, %c0_36] : memref<9x128x128xbf16, #tpu.memory_space<vmem>>, vector<1x128x128xbf16>
    %43 = vector.shape_cast %42 : vector<1x128x128xbf16> to vector<128x128xbf16>
    %cst_37 = arith.constant dense<0.000000e+00> : vector<512x128xf32>
    %44 = tpu.matmul %41, %43, %cst_37 {dimension_numbers = #tpu.dot_dimension_numbers<[1], [0], [0], [1], [0, 0, 1, 1], [], []>} : vector<512x128xbf16>, vector<128x128xbf16>, vector<512x128xf32> -> vector<512x128xf32>
    %45 = arith.addf %39, %44 : vector<512x128xf32>
    %c0_38 = arith.constant 0 : index
    %c0_39 = arith.constant 0 : index
    %46 = vector.load %arg8[%c0_38, %c0_39] : memref<512x128xf32, #tpu.memory_space<vmem>>, vector<512x128xf32>
    tpu.vector_store %arg8[%c0_38, %c0_39], %45 {strides = array<i32>} : memref<512x128xf32, #tpu.memory_space<vmem>>, vector<512x128xf32>,
    %c15_i32_40 = arith.constant 15 : i32
    %47 = tpu.dynamic_rotate %27 by %c15_i32_40 dim 1 : vector<32x16x128xf32>, i32 -> vector<32x16x128xf32>
    %cst_41 = arith.constant 0.000000e+00 : f32
    %48 = vector.shape_cast %25 : vector<1x16x1xi1> to vector<1x16x1xi1>
    %49 = vector.broadcast %48 : vector<1x16x1xi1> to vector<32x16x128xi1>
    %50 = vector.broadcast %cst_41 : f32 to vector<32x16x128xf32>
    %51 = arith.select %49, %50, %47 : vector<32x16x128xi1>, vector<32x16x128xf32>
    %c0_42 = arith.constant 0 : index
    %c0_43 = arith.constant 0 : index
    %52 = vector.load %arg8[%c0_42, %c0_43] : memref<512x128xf32, #tpu.memory_space<vmem>>, vector<512x128xf32>
    %53 = arith.truncf %51 : vector<32x16x128xf32> to vector<32x16x128xbf16>
    %54 = vector.shape_cast %53 : vector<32x16x128xbf16> to vector<512x128xbf16>
    %c2 = arith.constant 2 : index
    %c0_44 = arith.constant 0 : index
    %c0_45 = arith.constant 0 : index
    %55 = vector.load %arg3[%c2, %c0_44, %c0_45] : memref<9x128x128xbf16, #tpu.memory_space<vmem>>, vector<1x128x128xbf16>
    %56 = vector.shape_cast %55 : vector<1x128x128xbf16> to vector<128x128xbf16>
    %cst_46 = arith.constant dense<0.000000e+00> : vector<512x128xf32>
    %57 = tpu.matmul %54, %56, %cst_46 {dimension_numbers = #tpu.dot_dimension_numbers<[1], [0], [0], [1], [0, 0, 1, 1], [], []>} : vector<512x128xbf16>, vector<128x128xbf16>, vector<512x128xf32> -> vector<512x128xf32>
    %58 = arith.addf %52, %57 : vector<512x128xf32>
    %c0_47 = arith.constant 0 : index
    %c0_48 = arith.constant 0 : index
    %59 = vector.load %arg8[%c0_47, %c0_48] : memref<512x128xf32, #tpu.memory_space<vmem>>, vector<512x128xf32>
    tpu.vector_store %arg8[%c0_47, %c0_48], %58 {strides = array<i32>} : memref<512x128xf32, #tpu.memory_space<vmem>>, vector<512x128xf32>,
    %c0_49 = arith.constant 0 : index
    %c1_50 = arith.constant 1 : index
    %c0_51 = arith.constant 0 : index
    %c0_52 = arith.constant 0 : index
    %60 = vector.load %arg7[%c0_49, %c1_50, %c0_51, %c0_52] : memref<2x18x16x128xf32, #tpu.memory_space<vmem>>, vector<2x16x16x128xf32>
    %61 = vector.shape_cast %60 : vector<2x16x16x128xf32> to vector<32x16x128xf32>
    %62 = arith.truncf %61 : vector<32x16x128xf32> to vector<32x16x128xbf16>
    %63 = vector.shape_cast %62 : vector<32x16x128xbf16> to vector<512x128xbf16>
    %c4 = arith.constant 4 : index
    %c0_53 = arith.constant 0 : index
    %c0_54 = arith.constant 0 : index
    %64 = vector.load %arg3[%c4, %c0_53, %c0_54] : memref<9x128x128xbf16, #tpu.memory_space<vmem>>, vector<1x128x128xbf16>
    %65 = vector.shape_cast %64 : vector<1x128x128xbf16> to vector<128x128xbf16>
    %cst_55 = arith.constant dense<0.000000e+00> : vector<512x128xf32>
    %66 = tpu.matmul %63, %65, %cst_55 {dimension_numbers = #tpu.dot_dimension_numbers<[1], [0], [0], [1], [0, 0, 1, 1], [], []>} : vector<512x128xbf16>, vector<128x128xbf16>, vector<512x128xf32> -> vector<512x128xf32>
    %c0_56 = arith.constant 0 : index
    %c0_57 = arith.constant 0 : index
    %67 = vector.load %arg8[%c0_56, %c0_57] : memref<512x128xf32, #tpu.memory_space<vmem>>, vector<512x128xf32>
    %68 = arith.addf %67, %66 : vector<512x128xf32>
    %c0_58 = arith.constant 0 : index
    %c0_59 = arith.constant 0 : index
    %69 = vector.load %arg8[%c0_58, %c0_59] : memref<512x128xf32, #tpu.memory_space<vmem>>, vector<512x128xf32>
    tpu.vector_store %arg8[%c0_58, %c0_59], %68 {strides = array<i32>} : memref<512x128xf32, #tpu.memory_space<vmem>>, vector<512x128xf32>,
    %c1_i32_60 = arith.constant 1 : i32
    %70 = tpu.dynamic_rotate %61 by %c1_i32_60 dim 1 : vector<32x16x128xf32>, i32 -> vector<32x16x128xf32>
    %cst_61 = arith.constant 0.000000e+00 : f32
    %71 = vector.shape_cast %23 : vector<1x16x1xi1> to vector<1x16x1xi1>
    %72 = vector.broadcast %71 : vector<1x16x1xi1> to vector<32x16x128xi1>
    %73 = vector.broadcast %cst_61 : f32 to vector<32x16x128xf32>
    %74 = arith.select %72, %73, %70 : vector<32x16x128xi1>, vector<32x16x128xf32>
    %c0_62 = arith.constant 0 : index
    %c0_63 = arith.constant 0 : index
    %75 = vector.load %arg8[%c0_62, %c0_63] : memref<512x128xf32, #tpu.memory_space<vmem>>, vector<512x128xf32>
    %76 = arith.truncf %74 : vector<32x16x128xf32> to vector<32x16x128xbf16>
    %77 = vector.shape_cast %76 : vector<32x16x128xbf16> to vector<512x128xbf16>
    %c3 = arith.constant 3 : index
    %c0_64 = arith.constant 0 : index
    %c0_65 = arith.constant 0 : index
    %78 = vector.load %arg3[%c3, %c0_64, %c0_65] : memref<9x128x128xbf16, #tpu.memory_space<vmem>>, vector<1x128x128xbf16>
    %79 = vector.shape_cast %78 : vector<1x128x128xbf16> to vector<128x128xbf16>
    %cst_66 = arith.constant dense<0.000000e+00> : vector<512x128xf32>
    %80 = tpu.matmul %77, %79, %cst_66 {dimension_numbers = #tpu.dot_dimension_numbers<[1], [0], [0], [1], [0, 0, 1, 1], [], []>} : vector<512x128xbf16>, vector<128x128xbf16>, vector<512x128xf32> -> vector<512x128xf32>
    %81 = arith.addf %75, %80 : vector<512x128xf32>
    %c0_67 = arith.constant 0 : index
    %c0_68 = arith.constant 0 : index
    %82 = vector.load %arg8[%c0_67, %c0_68] : memref<512x128xf32, #tpu.memory_space<vmem>>, vector<512x128xf32>
    tpu.vector_store %arg8[%c0_67, %c0_68], %81 {strides = array<i32>} : memref<512x128xf32, #tpu.memory_space<vmem>>, vector<512x128xf32>,
    %c15_i32_69 = arith.constant 15 : i32
    %83 = tpu.dynamic_rotate %61 by %c15_i32_69 dim 1 : vector<32x16x128xf32>, i32 -> vector<32x16x128xf32>
    %cst_70 = arith.constant 0.000000e+00 : f32
    %84 = vector.shape_cast %25 : vector<1x16x1xi1> to vector<1x16x1xi1>
    %85 = vector.broadcast %84 : vector<1x16x1xi1> to vector<32x16x128xi1>
    %86 = vector.broadcast %cst_70 : f32 to vector<32x16x128xf32>
    %87 = arith.select %85, %86, %83 : vector<32x16x128xi1>, vector<32x16x128xf32>
    %c0_71 = arith.constant 0 : index
    %c0_72 = arith.constant 0 : index
    %88 = vector.load %arg8[%c0_71, %c0_72] : memref<512x128xf32, #tpu.memory_space<vmem>>, vector<512x128xf32>
    %89 = arith.truncf %87 : vector<32x16x128xf32> to vector<32x16x128xbf16>
    %90 = vector.shape_cast %89 : vector<32x16x128xbf16> to vector<512x128xbf16>
    %c5 = arith.constant 5 : index
    %c0_73 = arith.constant 0 : index
    %c0_74 = arith.constant 0 : index
    %91 = vector.load %arg3[%c5, %c0_73, %c0_74] : memref<9x128x128xbf16, #tpu.memory_space<vmem>>, vector<1x128x128xbf16>
    %92 = vector.shape_cast %91 : vector<1x128x128xbf16> to vector<128x128xbf16>
    %cst_75 = arith.constant dense<0.000000e+00> : vector<512x128xf32>
    %93 = tpu.matmul %90, %92, %cst_75 {dimension_numbers = #tpu.dot_dimension_numbers<[1], [0], [0], [1], [0, 0, 1, 1], [], []>} : vector<512x128xbf16>, vector<128x128xbf16>, vector<512x128xf32> -> vector<512x128xf32>
    %94 = arith.addf %88, %93 : vector<512x128xf32>
    %c0_76 = arith.constant 0 : index
    %c0_77 = arith.constant 0 : index
    %95 = vector.load %arg8[%c0_76, %c0_77] : memref<512x128xf32, #tpu.memory_space<vmem>>, vector<512x128xf32>
    tpu.vector_store %arg8[%c0_76, %c0_77], %94 {strides = array<i32>} : memref<512x128xf32, #tpu.memory_space<vmem>>, vector<512x128xf32>,
    %c0_78 = arith.constant 0 : index
    %c2_79 = arith.constant 2 : index
    %c0_80 = arith.constant 0 : index
    %c0_81 = arith.constant 0 : index
    %96 = vector.load %arg7[%c0_78, %c2_79, %c0_80, %c0_81] : memref<2x18x16x128xf32, #tpu.memory_space<vmem>>, vector<2x16x16x128xf32>
    %97 = vector.shape_cast %96 : vector<2x16x16x128xf32> to vector<32x16x128xf32>
    %98 = arith.truncf %97 : vector<32x16x128xf32> to vector<32x16x128xbf16>
    %99 = vector.shape_cast %98 : vector<32x16x128xbf16> to vector<512x128xbf16>
    %c7 = arith.constant 7 : index
    %c0_82 = arith.constant 0 : index
    %c0_83 = arith.constant 0 : index
    %100 = vector.load %arg3[%c7, %c0_82, %c0_83] : memref<9x128x128xbf16, #tpu.memory_space<vmem>>, vector<1x128x128xbf16>
    %101 = vector.shape_cast %100 : vector<1x128x128xbf16> to vector<128x128xbf16>
    %cst_84 = arith.constant dense<0.000000e+00> : vector<512x128xf32>
    %102 = tpu.matmul %99, %101, %cst_84 {dimension_numbers = #tpu.dot_dimension_numbers<[1], [0], [0], [1], [0, 0, 1, 1], [], []>} : vector<512x128xbf16>, vector<128x128xbf16>, vector<512x128xf32> -> vector<512x128xf32>
    %c0_85 = arith.constant 0 : index
    %c0_86 = arith.constant 0 : index
    %103 = vector.load %arg8[%c0_85, %c0_86] : memref<512x128xf32, #tpu.memory_space<vmem>>, vector<512x128xf32>
    %104 = arith.addf %103, %102 : vector<512x128xf32>
    %c0_87 = arith.constant 0 : index
    %c0_88 = arith.constant 0 : index
    %105 = vector.load %arg8[%c0_87, %c0_88] : memref<512x128xf32, #tpu.memory_space<vmem>>, vector<512x128xf32>
    tpu.vector_store %arg8[%c0_87, %c0_88], %104 {strides = array<i32>} : memref<512x128xf32, #tpu.memory_space<vmem>>, vector<512x128xf32>,
    %c1_i32_89 = arith.constant 1 : i32
    %106 = tpu.dynamic_rotate %97 by %c1_i32_89 dim 1 : vector<32x16x128xf32>, i32 -> vector<32x16x128xf32>
    %cst_90 = arith.constant 0.000000e+00 : f32
    %107 = vector.shape_cast %23 : vector<1x16x1xi1> to vector<1x16x1xi1>
    %108 = vector.broadcast %107 : vector<1x16x1xi1> to vector<32x16x128xi1>
    %109 = vector.broadcast %cst_90 : f32 to vector<32x16x128xf32>
    %110 = arith.select %108, %109, %106 : vector<32x16x128xi1>, vector<32x16x128xf32>
    %c0_91 = arith.constant 0 : index
    %c0_92 = arith.constant 0 : index
    %111 = vector.load %arg8[%c0_91, %c0_92] : memref<512x128xf32, #tpu.memory_space<vmem>>, vector<512x128xf32>
    %112 = arith.truncf %110 : vector<32x16x128xf32> to vector<32x16x128xbf16>
    %113 = vector.shape_cast %112 : vector<32x16x128xbf16> to vector<512x128xbf16>
    %c6 = arith.constant 6 : index
    %c0_93 = arith.constant 0 : index
    %c0_94 = arith.constant 0 : index
    %114 = vector.load %arg3[%c6, %c0_93, %c0_94] : memref<9x128x128xbf16, #tpu.memory_space<vmem>>, vector<1x128x128xbf16>
    %115 = vector.shape_cast %114 : vector<1x128x128xbf16> to vector<128x128xbf16>
    %cst_95 = arith.constant dense<0.000000e+00> : vector<512x128xf32>
    %116 = tpu.matmul %113, %115, %cst_95 {dimension_numbers = #tpu.dot_dimension_numbers<[1], [0], [0], [1], [0, 0, 1, 1], [], []>} : vector<512x128xbf16>, vector<128x128xbf16>, vector<512x128xf32> -> vector<512x128xf32>
    %117 = arith.addf %111, %116 : vector<512x128xf32>
    %c0_96 = arith.constant 0 : index
    %c0_97 = arith.constant 0 : index
    %118 = vector.load %arg8[%c0_96, %c0_97] : memref<512x128xf32, #tpu.memory_space<vmem>>, vector<512x128xf32>
    tpu.vector_store %arg8[%c0_96, %c0_97], %117 {strides = array<i32>} : memref<512x128xf32, #tpu.memory_space<vmem>>, vector<512x128xf32>,
    %c15_i32_98 = arith.constant 15 : i32
    %119 = tpu.dynamic_rotate %97 by %c15_i32_98 dim 1 : vector<32x16x128xf32>, i32 -> vector<32x16x128xf32>
    %cst_99 = arith.constant 0.000000e+00 : f32
    %120 = vector.shape_cast %25 : vector<1x16x1xi1> to vector<1x16x1xi1>
    %121 = vector.broadcast %120 : vector<1x16x1xi1> to vector<32x16x128xi1>
    %122 = vector.broadcast %cst_99 : f32 to vector<32x16x128xf32>
    %123 = arith.select %121, %122, %119 : vector<32x16x128xi1>, vector<32x16x128xf32>
    %c0_100 = arith.constant 0 : index
    %c0_101 = arith.constant 0 : index
    %124 = vector.load %arg8[%c0_100, %c0_101] : memref<512x128xf32, #tpu.memory_space<vmem>>, vector<512x128xf32>
    %125 = arith.truncf %123 : vector<32x16x128xf32> to vector<32x16x128xbf16>
    %126 = vector.shape_cast %125 : vector<32x16x128xbf16> to vector<512x128xbf16>
    %c8 = arith.constant 8 : index
    %c0_102 = arith.constant 0 : index
    %c0_103 = arith.constant 0 : index
    %127 = vector.load %arg3[%c8, %c0_102, %c0_103] : memref<9x128x128xbf16, #tpu.memory_space<vmem>>, vector<1x128x128xbf16>
    %128 = vector.shape_cast %127 : vector<1x128x128xbf16> to vector<128x128xbf16>
    %cst_104 = arith.constant dense<0.000000e+00> : vector<512x128xf32>
    %129 = tpu.matmul %126, %128, %cst_104 {dimension_numbers = #tpu.dot_dimension_numbers<[1], [0], [0], [1], [0, 0, 1, 1], [], []>} : vector<512x128xbf16>, vector<128x128xbf16>, vector<512x128xf32> -> vector<512x128xf32>
    %130 = arith.addf %124, %129 : vector<512x128xf32>
    %c0_105 = arith.constant 0 : index
    %c0_106 = arith.constant 0 : index
    %131 = vector.load %arg8[%c0_105, %c0_106] : memref<512x128xf32, #tpu.memory_space<vmem>>, vector<512x128xf32>
    tpu.vector_store %arg8[%c0_105, %c0_106], %130 {strides = array<i32>} : memref<512x128xf32, #tpu.memory_space<vmem>>, vector<512x128xf32>,
    %c0_107 = arith.constant 0 : index
    %c0_108 = arith.constant 0 : index
    %132 = vector.load %arg8[%c0_107, %c0_108] : memref<512x128xf32, #tpu.memory_space<vmem>>, vector<512x128xf32>
    %c2_109 = arith.constant 2 : index
    %c0_110 = arith.constant 0 : index
    %133 = vector.load %arg5[%c2_109, %c0_110] : memref<6x128xf32, #tpu.memory_space<vmem>>, vector<1x128xf32>
    %134 = vector.broadcast %133 : vector<1x128xf32> to vector<512x128xf32>
    %135 = arith.mulf %132, %134 : vector<512x128xf32>
    %c3_111 = arith.constant 3 : index
    %c0_112 = arith.constant 0 : index
    %136 = vector.load %arg5[%c3_111, %c0_112] : memref<6x128xf32, #tpu.memory_space<vmem>>, vector<1x128xf32>
    %137 = vector.broadcast %136 : vector<1x128xf32> to vector<512x128xf32>
    %138 = arith.addf %135, %137 : vector<512x128xf32>
    %cst_113 = arith.constant 0.000000e+00 : f32
    %139 = vector.broadcast %cst_113 : f32 to vector<512x128xf32>
    %140 = arith.maximumf %138, %139 : vector<512x128xf32>
    %141 = arith.truncf %140 : vector<512x128xf32> to vector<512x128xbf16>
    %c0_114 = arith.constant 0 : index
    %c0_115 = arith.constant 0 : index
    %142 = vector.load %arg4[%c0_114, %c0_115] : memref<128x128xbf16, #tpu.memory_space<vmem>>, vector<128x128xbf16>
    %cst_116 = arith.constant dense<0.000000e+00> : vector<512x128xf32>
    %143 = tpu.matmul %141, %142, %cst_116 {dimension_numbers = #tpu.dot_dimension_numbers<[1], [0], [0], [1], [0, 0, 1, 1], [], []>} : vector<512x128xbf16>, vector<128x128xbf16>, vector<512x128xf32> -> vector<512x128xf32>
    %c4_117 = arith.constant 4 : index
    %c0_118 = arith.constant 0 : index
    %144 = vector.load %arg5[%c4_117, %c0_118] : memref<6x128xf32, #tpu.memory_space<vmem>>, vector<1x128xf32>
    %145 = vector.broadcast %144 : vector<1x128xf32> to vector<512x128xf32>
    %146 = arith.mulf %143, %145 : vector<512x128xf32>
    %c5_119 = arith.constant 5 : index
    %c0_120 = arith.constant 0 : index
    %147 = vector.load %arg5[%c5_119, %c0_120] : memref<6x128xf32, #tpu.memory_space<vmem>>, vector<1x128xf32>
    %148 = vector.broadcast %147 : vector<1x128xf32> to vector<512x128xf32>
    %149 = arith.addf %146, %148 : vector<512x128xf32>
    %c0_121 = arith.constant 0 : index
    %c0_122 = arith.constant 0 : index
    %c0_123 = arith.constant 0 : index
    %c0_124 = arith.constant 0 : index
    %150 = vector.load %arg1[%c0_121, %c0_122, %c0_123, %c0_124] : memref<2x16x16x128xbf16, #tpu.memory_space<vmem>>, vector<2x16x16x128xbf16>
    %151 = vector.shape_cast %150 : vector<2x16x16x128xbf16> to vector<512x128xbf16>
    %152 = arith.extf %151 : vector<512x128xbf16> to vector<512x128xf32>
    %153 = arith.addf %149, %152 : vector<512x128xf32>
    %cst_125 = arith.constant 0.000000e+00 : f32
    %154 = vector.broadcast %cst_125 : f32 to vector<512x128xf32>
    %155 = arith.maximumf %153, %154 : vector<512x128xf32>
    %156 = vector.shape_cast %155 : vector<512x128xf32> to vector<2x16x16x128xf32>
    %157 = arith.truncf %156 : vector<2x16x16x128xf32> to vector<2x16x16x128xbf16>
    %c0_126 = arith.constant 0 : index
    %c0_127 = arith.constant 0 : index
    %c0_128 = arith.constant 0 : index
    %c0_129 = arith.constant 0 : index
    %158 = vector.load %arg6[%c0_126, %c0_127, %c0_128, %c0_129] : memref<2x16x16x128xbf16, #tpu.memory_space<vmem>>, vector<2x16x16x128xbf16>
    tpu.vector_store %arg6[%c0_126, %c0_127, %c0_128, %c0_129], %157 {strides = array<i32>} : memref<2x16x16x128xbf16, #tpu.memory_space<vmem>>, vector<2x16x16x128xbf16>,
    return
  }
  func.func @transform_0(%arg0: i32) -> (i32, i32, i32, i32) {
    %c0_i32 = arith.constant 0 : i32
    %c0_i32_0 = arith.constant 0 : i32
    %c0_i32_1 = arith.constant 0 : i32
    %c0_i32_2 = arith.constant 0 : i32
    return %arg0, %c0_i32, %c0_i32_0, %c0_i32_1 : i32, i32, i32, i32
  }
  func.func @transform_1(%arg0: i32) -> (i32, i32) {
    %c0_i32 = arith.constant 0 : i32
    %c0_i32_0 = arith.constant 0 : i32
    %c0_i32_1 = arith.constant 0 : i32
    return %c0_i32, %c0_i32_0 : i32, i32
  }
  func.func @transform_2(%arg0: i32) -> (i32, i32, i32) {
    %c0_i32 = arith.constant 0 : i32
    %c0_i32_0 = arith.constant 0 : i32
    %c0_i32_1 = arith.constant 0 : i32
    %c0_i32_2 = arith.constant 0 : i32
    return %c0_i32, %c0_i32_0, %c0_i32_1 : i32, i32, i32
  }
  func.func @transform_3(%arg0: i32) -> (i32, i32) {
    %c0_i32 = arith.constant 0 : i32
    %c0_i32_0 = arith.constant 0 : i32
    %c0_i32_1 = arith.constant 0 : i32
    return %c0_i32, %c0_i32_0 : i32, i32
  }
  func.func @transform_4(%arg0: i32) -> (i32, i32) {
    %c0_i32 = arith.constant 0 : i32
    %c0_i32_0 = arith.constant 0 : i32
    %c0_i32_1 = arith.constant 0 : i32
    return %c0_i32, %c0_i32_0 : i32, i32
  }
  func.func @transform_5(%arg0: i32) -> (i32, i32, i32, i32) {
    %c0_i32 = arith.constant 0 : i32
    %c0_i32_0 = arith.constant 0 : i32
    %c0_i32_1 = arith.constant 0 : i32
    %c0_i32_2 = arith.constant 0 : i32
    return %arg0, %c0_i32, %c0_i32_0, %c0_i32_1 : i32, i32, i32, i32
  }
}

</mosaic_0001>

<bundles_post_ra>
// kernel: tpu_custom_call.1
= control target key start
LH: loop header
LB: loop body
LE: loop exit
PB: predicated region body
PF: predicated region fallthrough
CT: control target
= control target key end

     0   :  { %10 = vsyncpa [#allocation5], 0  ;;  %s14602_s0 = inlined_call_operand.hbm [shape: bf16[2,16,16,128], index: 0, kind: input, shape index: {}]   ;;  %s14603_s1 = inlined_call_operand.hbm [shape: bf16[128,128], index: 1, kind: input, shape index: {}]   ;;  %s14604_s2 = inlined_call_operand.hbm [shape: bf16[9,128,128], index: 2, kind: input, shape index: {}]   ;;  %s14605_s3 = inlined_call_operand.hbm [shape: bf16[128,128], index: 3, kind: input, shape index: {}]   ;;  %s14606_s4 = inlined_call_operand.vmem [shape: f32[6,128], index: 4, kind: input, shape index: {}]   ;;  %s14607_s5 = inlined_call_operand.hbm [shape: bf16[2,16,16,128], index: 5, kind: output, shape index: {}]  }
   0x1   :  { %11 = vsyncpa [#allocation8], 0 }
   0x2   :  { %12 = vsyncpa [#allocation11], 0 }
   0x3   :  { %13 = vsyncpa [#allocation6], 0  ;;  %s12261_s18 = smov [#allocation7]   ;;  %s12262_s20 = smov [#allocation4]  }
   0x4   :  { %s31_s19 = sshll.u32 %s12261_s18, 4  ;;  %s19_s21 = sshll.u32 %s12262_s20, 4  ;;  %s32_s19 = int_to_ptr.vmem [resolvable:$true] %s31_s19  ;;  %s12301_s21 = int_to_ptr.vmem [resolvable:$true] %s19_s21 }
   0x5   :  { %s12143_s24 = scalar_lea.hbm %s14603_s1, 1024 }
   0x6   :  { %p12144_p0 = scmp.ne.s32.totalorder %s14603_s1, %s12143_s24  ;;  %p12147_p1 = scmp.lt.u32.totalorder %s12143_s24, %s14603_s1 }
   0x8   :  { %p12149_p2 = pnand %p12147_p1, %p12144_p0 }
   0xa   :  { %12152 = shalt.err (!%p12149_p2)
}
   0xb   :  { %s12153_s29 = scalar_lea.vmem %s32_s19, 1024  ;;  %p12158_p4 = scmp.lt.s32.totalorder %s32_s19, %s32_s19 }
   0xc   :  { %p12154_p3 = scmp.ne.s32.totalorder %s32_s19, %s12153_s29  ;;  %p12159_p5 = scmp.lt.s32.totalorder %s12153_s29, %s12153_s29 }
   0xe   :  { %p12160_p6 = por %p12159_p5, %p12158_p4 }
  0x10   :  { %p12161_p7 = pnand %p12160_p6, %p12154_p3 }
  0x12   :  { %12164 = shalt.err (!%p12161_p7)
}
  0x13   :  { %s12263_s30 = smov 64   ;;  %s12264_s6 = smov 4  }
  0x14   :  { %37 = dma.hbm_to_vmem [thread:$0]  %s14603_s1, 1024, %s32_s19, [#allocation8], %s12263_s30, %s12263_s30, %s12264_s6  }
  0x15   :  { %s12165_s11 = scalar_lea.hbm %s14602_s0, 4096 }
  0x16   :  { %p12166_p8 = scmp.ne.s32.totalorder %s14602_s0, %s12165_s11  ;;  %p12169_p9 = scmp.lt.u32.totalorder %s12165_s11, %s14602_s0 }
  0x18   :  { %p12171_p10 = pnand %p12169_p9, %p12166_p8 }
  0x1a   :  { %12174 = shalt.err (!%p12171_p10)
}
  0x1b   :  { %s12175_s16 = scalar_lea.vmem %s12301_s21, 4096  ;;  %p12180_p12 = scmp.lt.s32.totalorder %s12301_s21, %s12301_s21 }
  0x1c   :  { %p12176_p11 = scmp.ne.s32.totalorder %s12301_s21, %s12175_s16  ;;  %p12181_p13 = scmp.lt.s32.totalorder %s12175_s16, %s12175_s16 }
  0x1e   :  { %p12182_p0 = por %p12181_p13, %p12180_p12 }
  0x20   :  { %p12183_p1 = pnand %p12182_p0, %p12176_p11 }
  0x22   :  { %12186 = shalt.err (!%p12183_p1)
}
  0x23   :  { %25 = dma.hbm_to_vmem [thread:$0]  %s14602_s0, 4096, %s12301_s21, [#allocation5], %s12263_s30, %s12263_s30, %s12264_s6  }
  0x24   :  { %s12265_s18 = smov [#allocation9]   ;;  %s12266_s20 = smov [#allocation10]  }
  0x25   :  { %s43_s19 = sshll.u32 %s12265_s18, 4  ;;  %s55_s22 = sshll.u32 %s12266_s20, 4  ;;  %s44_s19 = int_to_ptr.vmem [resolvable:$true] %s43_s19  ;;  %s12338_s22 = int_to_ptr.vmem [resolvable:$true] %s55_s22 }
  0x26   :  { %s12187_s25 = scalar_lea.hbm %s14604_s2, 9216 }
  0x27   :  { %p12188_p2 = scmp.ne.s32.totalorder %s14604_s2, %s12187_s25  ;;  %p12191_p3 = scmp.lt.u32.totalorder %s12187_s25, %s14604_s2 }
  0x29   :  { %p12193_p4 = pnand %p12191_p3, %p12188_p2 }
  0x2b   :  { %12196 = shalt.err (!%p12193_p4)
}
  0x2c   :  { %s12197_s0 = scalar_lea.vmem %s44_s19, 9216  ;;  %p12202_p6 = scmp.lt.s32.totalorder %s44_s19, %s44_s19 }
  0x2d   :  { %p12198_p5 = scmp.ne.s32.totalorder %s44_s19, %s12197_s0  ;;  %p12203_p7 = scmp.lt.s32.totalorder %s12197_s0, %s12197_s0 }
  0x2f   :  { %p12204_p8 = por %p12203_p7, %p12202_p6 }
  0x31   :  { %p12205_p9 = pnand %p12204_p8, %p12198_p5 }
  0x33   :  { %12208 = shalt.err (!%p12205_p9)
}
  0x34   :  { %49 = dma.hbm_to_vmem [thread:$0]  %s14604_s2, 9216, %s44_s19, [#allocation8], %s12263_s30, %s12263_s30, %s12264_s6  }
  0x35   :  { %s12209_s10 = scalar_lea.hbm %s14605_s3, 1024 }
  0x36   :  { %p12210_p10 = scmp.ne.s32.totalorder %s14605_s3, %s12209_s10  ;;  %p12213_p11 = scmp.lt.u32.totalorder %s12209_s10, %s14605_s3 }
  0x38   :  { %p12215_p12 = pnand %p12213_p11, %p12210_p10 }
  0x3a   :  { %12218 = shalt.err (!%p12215_p12)
}
  0x3b   :  { %s12219_s15 = scalar_lea.vmem %s12338_s22, 1024  ;;  %p12224_p0 = scmp.lt.s32.totalorder %s12338_s22, %s12338_s22 }
  0x3c   :  { %p12220_p13 = scmp.ne.s32.totalorder %s12338_s22, %s12219_s15  ;;  %p12225_p1 = scmp.lt.s32.totalorder %s12219_s15, %s12219_s15 }
  0x3e   :  { %p12226_p2 = por %p12225_p1, %p12224_p0 }
  0x40   :  { %p12227_p3 = pnand %p12226_p2, %p12220_p13 }
  0x42   :  { %12230 = shalt.err (!%p12227_p3)
}
  0x43   :  { %61 = dma.hbm_to_vmem [thread:$0]  %s14605_s3, 1024, %s12338_s22, [#allocation11], %s12263_s30, %s12263_s30, %s12264_s6  }
  0x44   :  { %12253 = dma.done.wait [#allocation5], 4096  }
  0x45   :  { %12254 = vsyncadd [#allocation5], 4294963200 }
  0x46   :  { %12255 = dma.done.wait [#allocation8], 10240  }
  0x47   :  { %12256 = vsyncadd [#allocation8], 4294957056 }
  0x48   :  { %12257 = dma.done.wait [#allocation11], 1024  }
  0x49   :  { %12258 = vsyncadd [#allocation11], 4294966272  ;;  %v12013_v0 = vld [vmem:[#allocation7] sm:$0xff]   ;;  %v12014_v1 = vld [vmem:[#allocation7 + $0x8] sm:$0xff]   ;;  %v14608_v48 = vmov 0.0|0.0   ;;  %v962_v62 = vlaneseq  ;;  %vm12269_vm3 = vmmov 1  }
  0x4a   :  { %10595 = vmatprep.subr.bf16.mxu0 %v12013_v0  ;;  %v12015_v2 = vld [vmem:[#allocation7 + $0x10] sm:$0xff]   ;;  %v12016_v3 = vld [vmem:[#allocation7 + $0x18] sm:$0xff]   ;;  %v12021_v4 = vld [vmem:[#allocation4] sm:$0xff]  }
  0x4b   :  { %10596 = vmatpush3.bf16.msra.mxu0 %v12013_v0  ;;  %10611 = vmatprep.mubr.bf16.mxu0 %v12021_v4  ;;  %v12017_v5 = vld [vmem:[#allocation7 + $0x20] sm:$0xff]   ;;  %v12018_v6 = vld [vmem:[#allocation7 + $0x28] sm:$0xff]   ;;  %v12019_v7 = vld [vmem:[#allocation7 + $0x30] sm:$0xff]  }
  0x4c   :  { %10597 = vmatprep.subr.bf16.mxu0 %v12014_v1  ;;  %v12020_v8 = vld [vmem:[#allocation7 + $0x38] sm:$0xff]   ;;  %v12022_v9 = vld [vmem:[#allocation4 + $0x8] sm:$0xff]   ;;  %v12023_v10 = vld [vmem:[#allocation4 + $0x10] sm:$0xff]  }
  0x4d   :  { %v12024_v11 = vld [vmem:[#allocation4 + $0x18] sm:$0xff]   ;;  %v12025_v12 = vld [vmem:[#allocation4 + $0x20] sm:$0xff]   ;;  %v12054_v14 = vld [vmem:[#allocation9 + $0x48] sm:$0xff]  }
  0x4e   :  { %v12053_v13 = vld [vmem:[#allocation9 + $0x40] sm:$0xff]   ;;  %v12026_v15 = vld [vmem:[#allocation4 + $0x28] sm:$0xff]   ;;  %v12055_v16 = vld [vmem:[#allocation9 + $0x50] sm:$0xff]  }
  0x4f   :  { %10598 = vmatpush3.bf16.msra.mxu0 %v12014_v1  ;;  %v12027_v17 = vld [vmem:[#allocation4 + $0x30] sm:$0xff]   ;;  %v12056_v18 = vld [vmem:[#allocation9 + $0x58] sm:$0xff]   ;;  %v12057_v19 = vld [vmem:[#allocation9 + $0x60] sm:$0xff]  }
  0x50   :  { %10599 = vmatprep.subr.bf16.mxu0 %v12015_v2  ;;  %v12028_v20 = vld [vmem:[#allocation4 + $0x38] sm:$0xff]   ;;  %v12029_v21 = vld [vmem:[#allocation4 + $0x40] sm:$0xff]   ;;  %v12030_v22 = vld [vmem:[#allocation4 + $0x48] sm:$0xff]  }
  0x51   :  { %v12031_v23 = vld [vmem:[#allocation4 + $0x50] sm:$0xff]   ;;  %v12032_v24 = vld [vmem:[#allocation4 + $0x58] sm:$0xff]   ;;  %v12033_v25 = vld [vmem:[#allocation4 + $0x60] sm:$0xff]  }
  0x52   :  { %v12034_v26 = vld [vmem:[#allocation4 + $0x68] sm:$0xff]   ;;  %v12035_v27 = vld [vmem:[#allocation4 + $0x70] sm:$0xff]   ;;  %v12036_v28 = vld [vmem:[#allocation4 + $0x78] sm:$0xff]  }
  0x53   :  { %10600 = vmatpush3.bf16.msra.mxu0 %v12015_v2  ;;  %v12037_v29 = vld [vmem:[#allocation4 + $0x80] sm:$0xff]   ;;  %v12038_v30 = vld [vmem:[#allocation4 + $0x88] sm:$0xff]   ;;  %v12039_v31 = vld [vmem:[#allocation4 + $0x90] sm:$0xff]  }
  0x54   :  { %10601 = vmatprep.subr.bf16.mxu0 %v12016_v3  ;;  %v12040_v32 = vld [vmem:[#allocation4 + $0x98] sm:$0xff]   ;;  %v12041_v33 = vld [vmem:[#allocation4 + $0xa0] sm:$0xff]   ;;  %v12042_v34 = vld [vmem:[#allocation4 + $0xa8] sm:$0xff]  }
  0x55   :  { %v12043_v35 = vld [vmem:[#allocation4 + $0xb0] sm:$0xff]   ;;  %v12058_v36 = vld [vmem:[#allocation9 + $0x68] sm:$0xff]   ;;  %v12044_v37 = vld [vmem:[#allocation4 + $0xb8] sm:$0xff]  }
  0x56   :  { %v12045_v38 = vld [vmem:[#allocation4 + $0xc0] sm:$0xff]   ;;  %v12059_v39 = vld [vmem:[#allocation9 + $0x70] sm:$0xff]   ;;  %v12060_v40 = vld [vmem:[#allocation9 + $0x78] sm:$0xff]  }
  0x57   :  { %10602 = vmatpush3.bf16.msra.mxu0 %v12016_v3  ;;  %v12046_v41 = vld [vmem:[#allocation4 + $0xc8] sm:$0xff]   ;;  %v12047_v42 = vld [vmem:[#allocation4 + $0xd0] sm:$0xff]   ;;  %v12048_v43 = vld [vmem:[#allocation4 + $0xd8] sm:$0xff]  }
  0x58   :  { %10603 = vmatprep.subr.bf16.mxu0 %v12017_v5  ;;  %v12049_v44 = vld [vmem:[#allocation4 + $0xe0] sm:$0xff]   ;;  %v12050_v45 = vld [vmem:[#allocation4 + $0xe8] sm:$0xff]   ;;  %v12051_v46 = vld [vmem:[#allocation4 + $0xf0] sm:$0xff]  }
  0x59   :  { %v12052_v47 = vld [vmem:[#allocation4 + $0xf8] sm:$0xff]   ;;  %v12061_v49 = vld [vmem:[#allocation9 + $0x100] sm:$0xff]   ;;  %v12062_v50 = vld [vmem:[#allocation9 + $0x108] sm:$0xff]  }
  0x5a   :  { %11475 = vmatprep.subr.bf16.mxu1 %v12061_v49  ;;  %v12063_v51 = vld [vmem:[#allocation9 + $0x110] sm:$0xff]   ;;  %v12064_v52 = vld [vmem:[#allocation9 + $0x118] sm:$0xff]   ;;  %v12065_v53 = vld [vmem:[#allocation9 + $0x120] sm:$0xff]  }
  0x5b   :  { %10604 = vmatpush3.bf16.msra.mxu0 %v12017_v5  ;;  %11483 = vmatpush3.bf16.msra.mxu1 %v12061_v49  ;;  %v12066_v54 = vld [vmem:[#allocation9 + $0x128] sm:$0xff]   ;;  %v12067_v55 = vld [vmem:[#allocation9 + $0x130] sm:$0xff]   ;;  %v12068_v56 = vld [vmem:[#allocation9 + $0x138] sm:$0xff]  }
  0x5c   :  { %10605 = vmatprep.subr.bf16.mxu0 %v12018_v6  ;;  %11476 = vmatprep.subr.bf16.mxu1 %v12062_v50  ;;  %v12376_v57 = vld [vmem:[#allocation9 + $0xc0] sm:$0xff]  }
  0x5d   :  { %v12073_v58 = vld [vmem:[#allocation9] sm:$0xff]  }
  0x5e   :  { %v12382_v59 = vld [vmem:[%s14606_s4] ss:$0 sm:$0xff]  ;;  %v12387_v61 = vld [vmem:[%s14606_s4 + $0x1] ss:$0 sm:$0xff] }
  0x5f   :  { %10606 = vmatpush3.bf16.msra.mxu0 %v12018_v6  ;;  %11484 = vmatpush3.bf16.msra.mxu1 %v12062_v50 }
  0x60   :  { %10607 = vmatprep.subr.bf16.mxu0 %v12019_v7  ;;  %11477 = vmatprep.subr.bf16.mxu1 %v12063_v51 }
  0x63   :  { %10608 = vmatpush3.bf16.msra.mxu0 %v12019_v7  ;;  %11485 = vmatpush3.bf16.msra.mxu1 %v12063_v51 }
  0x64   :  { %10609 = vmatprep.subr.bf16.mxu0 %v12020_v8  ;;  %11478 = vmatprep.subr.bf16.mxu1 %v12064_v52 }
  0x67   :  { %10610 = vmatpush3.bf16.msra.mxu0 %v12020_v8  ;;  %11486 = vmatpush3.bf16.msra.mxu1 %v12064_v52  ;;  %v12395_v8 = vshrl.u32 %v962_v62, 7 }
  0x68   :  { %10675 = vmatprep.subr.bf16.mxu0 %v12053_v13  ;;  %11479 = vmatprep.subr.bf16.mxu1 %v12065_v53 }
  0x69   :  { %vm1547_vm0 = vcmp.lt.s32.totalorder %v12395_v8, 1  ;;  %vm2321_vm1 = vcmp.lt.s32.totalorder %v12395_v8, 7  ;;  %vm10153_vm2 = vcmp.ne.s32.totalorder %v12395_v8, 0 }
  0x6a   :  { %10612 = vmatmul.mubr.bf16.vlgmr.msra.gmra.mrb[0].mxu0 %v12022_v9  ;;  %vm13264_vm4 = vmpackc.low %vm12269_vm3, %vm10153_vm2 }
  0x6b   :  { %10615 = vmatprep.mubr.bf16.mxu0 %v12023_v10  ;;  %10676 = vmatpush3.bf16.msra.mxu0 %v12053_v13 }
  0x6c   :  { %10677 = vmatprep.subr.bf16.mxu0 %v12054_v14  ;;  %11487 = vmatpush3.bf16.msra.mxu1 %v12065_v53 }
  0x6d   :  { %11480 = vmatprep.subr.bf16.mxu1 %v12066_v54 }
  0x6f   :  { %10678 = vmatpush3.bf16.msra.mxu0 %v12054_v14 }
  0x70   :  { %10679 = vmatprep.subr.bf16.mxu0 %v12055_v16  ;;  %11488 = vmatpush3.bf16.msra.mxu1 %v12066_v54 }
  0x71   :  { %11481 = vmatprep.subr.bf16.mxu1 %v12067_v55 }
  0x72   :  { %10616 = vmatmul.mubr.bf16.gmra.mrb[4].mxu0 %v12024_v11 }
  0x73   :  { %10619 = vmatprep.mubr.bf16.mxu0 %v12025_v12  ;;  %10680 = vmatpush3.bf16.msra.mxu0 %v12055_v16 }
  0x74   :  { %10681 = vmatprep.subr.bf16.mxu0 %v12056_v18  ;;  %11489 = vmatpush3.bf16.msra.mxu1 %v12067_v55 }
  0x75   :  { %11482 = vmatprep.subr.bf16.mxu1 %v12068_v56 }
  0x77   :  { %10682 = vmatpush3.bf16.msra.mxu0 %v12056_v18 }
  0x78   :  { %10683 = vmatprep.subr.bf16.mxu0 %v12057_v19  ;;  %11490 = vmatpush3.bf16.msra.mxu1 %v12068_v56 }
  0x79   :  { %10995 = vmatprep.subr.bf16.mxu1 %v12376_v57 }
  0x7a   :  { %10620 = vmatmul.mubr.bf16.gmra.mrb[8].mxu0 %v12026_v15 }
  0x7b   :  { %10623 = vmatprep.mubr.bf16.mxu0 %v12027_v17  ;;  %10684 = vmatpush3.bf16.msra.mxu0 %v12057_v19 }
  0x7c   :  { %10685 = vmatprep.subr.bf16.mxu0 %v12058_v36 }
  0x7f   :  { %10686 = vmatpush3.bf16.msra.mxu0 %v12058_v36 }
  0x80   :  { %10687 = vmatprep.subr.bf16.mxu0 %v12059_v39 }
  0x82   :  { %10624 = vmatmul.mubr.bf16.gmra.mrb[12].mxu0 %v12028_v20 }
  0x83   :  { %10627 = vmatprep.mubr.bf16.mxu0 %v12029_v21  ;;  %10688 = vmatpush3.bf16.msra.mxu0 %v12059_v39 }
  0x84   :  { %10689 = vmatprep.subr.bf16.mxu0 %v12060_v40 }
  0x87   :  { %10690 = vmatpush3.bf16.msra.mxu0 %v12060_v40 }
  0x88   :  { %10755 = vmatprep.subr.bf16.mxu0 %v12073_v58 }
  0x8a   :  { %10628 = vmatmul.mubr.bf16.gmra.mrb[16].mxu0 %v12030_v22 }
  0x8b   :  { %10631 = vmatprep.mubr.bf16.mxu0 %v12031_v23 }
  0x92   :  { %10632 = vmatmul.mubr.bf16.gmra.mrb[20].mxu0 %v12032_v24 }
  0x93   :  { %10635 = vmatprep.mubr.bf16.mxu0 %v12033_v25 }
  0x9a   :  { %10636 = vmatmul.mubr.bf16.gmra.mrb[24].mxu0 %v12034_v26 }
  0x9b   :  { %10639 = vmatprep.mubr.bf16.mxu0 %v12035_v27  ;;  %v12075_v27 = vld [vmem:[#allocation9 + $0x8] sm:$0xff]  }
  0xa2   :  { %10640 = vmatmul.mubr.bf16.gmra.mrb[28].mxu0 %v12036_v28 }
  0xa3   :  { %10643 = vmatprep.mubr.bf16.mxu0 %v12037_v29 }
  0xaa   :  { %10644 = vmatmul.mubr.bf16.gmra.mrb[32].mxu0 %v12038_v30 }
  0xab   :  { %10647 = vmatprep.mubr.bf16.mxu0 %v12039_v31 }
  0xb2   :  { %10648 = vmatmul.mubr.bf16.gmra.mrb[36].mxu0 %v12040_v32 }
  0xb3   :  { %10651 = vmatprep.mubr.bf16.mxu0 %v12041_v33 }
  0xba   :  { %10652 = vmatmul.mubr.bf16.gmra.mrb[40].mxu0 %v12042_v34 }
  0xbb   :  { %10655 = vmatprep.mubr.bf16.mxu0 %v12043_v35 }
  0xc2   :  { %10656 = vmatmul.mubr.bf16.gmra.mrb[44].mxu0 %v12044_v37 }
  0xc3   :  { %10659 = vmatprep.mubr.bf16.mxu0 %v12045_v38 }
  0xca   :  { %10660 = vmatmul.mubr.bf16.gmra.mrb[48].mxu0 %v12046_v41 }
  0xcb   :  { %10663 = vmatprep.mubr.bf16.mxu0 %v12047_v42 }
  0xd2   :  { %10664 = vmatmul.mubr.bf16.gmra.mrb[52].mxu0 %v12048_v43  ;;  %v12076_v43 = vld [vmem:[#allocation9 + $0x10] sm:$0xff]  }
  0xd3   :  { %10667 = vmatprep.mubr.bf16.mxu0 %v12049_v44 }
  0xda   :  { %10668 = vmatmul.mubr.bf16.gmra.mrb[56].mxu0 %v12050_v45 }
  0xdb   :  { %10671 = vmatprep.mubr.bf16.mxu0 %v12051_v46 }
  0xe2   :  { %10672 = vmatmul.mubr.bf16.gmra.mrb[60].mxu0 %v12052_v47 }
  0xe3   :  { %10691 = vmatprep.mubr.bf16.mxu0 %v14608_v48 }
 0x13d   :  { %v10613_v60 = vpop.f32.mrb[0].mxu0 }
 0x13e   :  { %v693_v63 = vmul.f32 %v10613_v60, %v12382_v59  ;;  %v431_v0 = vpop.f32.mrb[1].mxu0 }
 0x13f   :  { %v691_v1 = vmul.f32 %v12382_v59, %v431_v0  ;;  %v10614_v2 = vpop.f32.mrb[2].mxu0 }
 0x140   :  { %v762_v3 = vadd.f32 %v12387_v61, %v693_v63  ;;  %v694_v4 = vmul.f32 %v10614_v2, %v12382_v59  ;;  %v434_v5 = vpop.f32.mrb[3].mxu0 }
 0x141   :  { %v760_v6 = vadd.f32 %v12387_v61, %v691_v1  ;;  %v692_v7 = vmul.f32 %v12382_v59, %v434_v5  ;;  %v12078_v5 = vld [vmem:[#allocation9 + $0x18] sm:$0xff]  }
 0x142   :  { %v12397_v9 = vmax.f32 %v762_v3, 0.0  ;;  %v763_v10 = vadd.f32 %v12387_v61, %v694_v4 }
 0x143   :  { %v824_v11 = vmax.f32 %v760_v6, 0.0  ;;  %v761_v12 = vadd.f32 %v12387_v61, %v692_v7 }
 0x144   :  { %v12401_v13 = vmax.f32 %v763_v10, 0.0  ;;  %v1485_v14 = vrot.slane %v12397_v9, 7  ;;  %v2259_v46 = vrot.slane %v12397_v9, 1 }
 0x145   :  { %v825_v15 = vmax.f32 %v761_v12, 0.0  ;;  %v10617_v16 = vpop.f32.mrb[4].mxu0  ;;  %v1484_v17 = vrot.slane %v824_v11, 7  ;;  %v2258_v28 = vrot.slane %v824_v11, 1 }
 0x146   :  { %v1517_v18 = vrot.slane %v12401_v13, 7  ;;  %v697_v19 = vmul.f32 %v10617_v16, %v12382_v59  ;;  %v447_v20 = vpop.f32.mrb[5].mxu0  ;;  %v12410_v21 = vpack.c.bf16 %v12401_v13, %v12397_v9  ;;  %v2291_v47 = vrot.slane %v12401_v13, 1 }
 0x147   :  { %v12412_v22 = vpack.c.bf16 %v825_v15, %v824_v11  ;;  %v1516_v23 = vrot.slane %v825_v15, 7  ;;  %v2290_v24 = vrot.slane %v825_v15, 1  ;;  %v695_v25 = vmul.f32 %v12382_v59, %v447_v20  ;;  %v10618_v26 = vpop.f32.mrb[6].mxu0 }
 0x148   :  { %14703 = vst [vmem:[#allocation17_spill] sm:$0xff] %v12410_v21  ;;  %v766_v29 = vadd.f32 %v12387_v61, %v697_v19  ;;  %v698_v30 = vmul.f32 %v10618_v26, %v12382_v59  ;;  %v450_v31 = vpop.f32.mrb[7].mxu0  ;;  %v1550_v32 = vsel %vm1547_vm0, %v1485_v14, %v1517_v18  ;;  %v1582_v40 = vsel %vm1547_vm0, %v1517_v18, %v1485_v14 }
 0x149   :  { %14704 = vst [vmem:[#allocation18_spill] sm:$0xff] %v12412_v22  ;;  %v764_v33 = vadd.f32 %v12387_v61, %v695_v25  ;;  %v696_v34 = vmul.f32 %v12382_v59, %v450_v31  ;;  %10692 = vmatmul.mubr.bf16.vlgmr.msra.gmra.mrb[64].mxu0 %v12412_v22  ;;  %v1549_v35 = vsel %vm1547_vm0, %v1484_v17, %v1516_v23 }
 0x14a   :  { %v1581_v36 = vsel %vm1547_vm0, %v1516_v23, %v1484_v17  ;;  %v12426_v37 = vmax.f32 %v766_v29, 0.0  ;;  %v767_v38 = vadd.f32 %v12387_v61, %v698_v30  ;;  %10695 = vmatprep.mubr.bf16.mxu0 %v12410_v21  ;;  %10756 = vmatpush3.bf16.msra.mxu0 %v12073_v58  ;;  %v12437_v44 = vpack.c.bf16 %v1550_v32, %v1582_v40 }
 0x14b   :  { %v12430_v39 = vpack.c.bf16 %v1549_v35, %v1581_v36  ;;  %v12434_v41 = vmax.f32 %v764_v33, 0.0  ;;  %v765_v42 = vadd.f32 %v12387_v61, %v696_v34  ;;  %10757 = vmatprep.subr.bf16.mxu0 %v12075_v27  ;;  %v2323_v45 = vsel %vm2321_vm1, %v2258_v28, %v2290_v24 }
 0x14c   :  { %v12443_v49 = vmax.f32 %v767_v38, 0.0  ;;  %v2355_v50 = vsel %vm2321_vm1, %v2290_v24, %v2258_v28  ;;  %v1487_v51 = vrot.slane %v12426_v37, 7  ;;  %v12079_v24 = vld [vmem:[#allocation9 + $0x20] sm:$0xff]   ;;  %v2324_v25 = vsel %vm2321_vm1, %v2259_v46, %v2291_v47 }
 0x14d   :  { %v1486_v52 = vrot.slane %v12434_v41, 7  ;;  %v12449_v53 = vmax.f32 %v765_v42, 0.0  ;;  %v10621_v54 = vpop.f32.mrb[8].mxu0  ;;  %v12451_v55 = vpack.c.bf16 %v2355_v50, %v2323_v45  ;;  %v2260_v56 = vrot.slane %v12434_v41, 1 }
 0x14e   :  { %v1519_v58 = vrot.slane %v12443_v49, 7  ;;  %v701_v60 = vmul.f32 %v10621_v54, %v12382_v59  ;;  %v463_v62 = vpop.f32.mrb[9].mxu0  ;;  %v12458_v63 = vpack.c.bf16 %v12443_v49, %v12426_v37  ;;  %10758 = vmatpush3.bf16.msra.mxu0 %v12075_v27  ;;  %v2356_v26 = vsel %vm2321_vm1, %v2291_v47, %v2259_v46  ;;  %v12081_v47 = vld [vmem:[#allocation9 + $0x28] sm:$0xff]  }
 0x14f   :  { %14705 = vst [vmem:[#allocation19_spill] sm:$0xff] %v12451_v55  ;;  %v1518_v0 = vrot.slane %v12449_v53, 7  ;;  %v2292_v1 = vrot.slane %v12449_v53, 1  ;;  %v699_v2 = vmul.f32 %v12382_v59, %v463_v62  ;;  %v10622_v3 = vpop.f32.mrb[10].mxu0  ;;  %v12465_v4 = vpack.c.bf16 %v12449_v53, %v12434_v41  ;;  %10759 = vmatprep.subr.bf16.mxu0 %v12076_v43 }
 0x150   :  { %14706 = vst [vmem:[#allocation20_spill] sm:$0xff] %v12458_v63  ;;  %v770_v6 = vadd.f32 %v12387_v61, %v701_v60  ;;  %v702_v7 = vmul.f32 %v10622_v3, %v12382_v59  ;;  %v466_v9 = vpop.f32.mrb[11].mxu0  ;;  %v1552_v10 = vsel %vm1547_vm0, %v1487_v51, %v1519_v58  ;;  %v1584_v11 = vsel %vm1547_vm0, %v1519_v58, %v1487_v51 }
 0x151   :  { %14707 = vst [vmem:[#allocation21_spill] sm:$0xff] %v12465_v4  ;;  %v768_v12 = vadd.f32 %v12387_v61, %v699_v2  ;;  %v700_v13 = vmul.f32 %v12382_v59, %v466_v9  ;;  %10696 = vmatmul.mubr.bf16.gmra.mrb[68].mxu0 %v12465_v4  ;;  %v1551_v14 = vsel %vm1547_vm0, %v1486_v52, %v1518_v0  ;;  %v2261_v29 = vrot.slane %v12426_v37, 1 }
 0x152   :  { %v1583_v15 = vsel %vm1547_vm0, %v1518_v0, %v1486_v52  ;;  %v12480_v16 = vmax.f32 %v770_v6, 0.0  ;;  %v771_v17 = vadd.f32 %v12387_v61, %v702_v7  ;;  %10699 = vmatprep.mubr.bf16.mxu0 %v12458_v63  ;;  %10760 = vmatpush3.bf16.msra.mxu0 %v12076_v43  ;;  %v12486_v19 = vpack.c.bf16 %v1552_v10, %v1584_v11  ;;  %v12082_v10 = vld [vmem:[#allocation9 + $0x30] sm:$0xff]  }
 0x153   :  { %v12484_v18 = vpack.c.bf16 %v1551_v14, %v1583_v15  ;;  %v12488_v20 = vmax.f32 %v768_v12, 0.0  ;;  %v769_v23 = vadd.f32 %v12387_v61, %v700_v13  ;;  %10761 = vmatprep.subr.bf16.mxu0 %v12078_v5  ;;  %v12497_v28 = vpack.c.bf16 %v2356_v26, %v2324_v25 }
 0x154   :  { %v12495_v27 = vmax.f32 %v771_v17, 0.0  ;;  %v2293_v30 = vrot.slane %v12443_v49, 1  ;;  %v2325_v33 = vsel %vm2321_vm1, %v2260_v56, %v2292_v1  ;;  %v1489_v34 = vrot.slane %v12480_v16, 7 }
 0x155   :  { %14708 = vst [vmem:[#allocation22_spill] sm:$0xff] %v12497_v28  ;;  %v12501_v31 = vmax.f32 %v769_v23, 0.0  ;;  %v10625_v32 = vpop.f32.mrb[12].mxu0  ;;  %v1488_v40 = vrot.slane %v12488_v20, 7  ;;  %v2357_v11 = vsel %vm2321_vm1, %v2292_v1, %v2260_v56  ;;  %v2262_v15 = vrot.slane %v12488_v20, 1 }
 0x156   :  { %v1521_v35 = vrot.slane %v12495_v27, 7  ;;  %v705_v36 = vmul.f32 %v10625_v32, %v12382_v59  ;;  %v479_v38 = vpop.f32.mrb[13].mxu0  ;;  %v12514_v37 = vpack.c.bf16 %v12495_v27, %v12480_v16  ;;  %10762 = vmatpush3.bf16.msra.mxu0 %v12078_v5  ;;  %v2326_v12 = vsel %vm2321_vm1, %v2261_v29, %v2293_v30 }
 0x157   :  { %v1520_v42 = vrot.slane %v12501_v31, 7  ;;  %v703_v43 = vmul.f32 %v12382_v59, %v479_v38  ;;  %v10626_v45 = vpop.f32.mrb[14].mxu0  ;;  %v12521_v46 = vpack.c.bf16 %v12501_v31, %v12488_v20  ;;  %10763 = vmatprep.subr.bf16.mxu0 %v12079_v24  ;;  %v12557_v14 = vpack.c.bf16 %v2357_v11, %v2325_v33 }
 0x158   :  { %14709 = vst [vmem:[#allocation23_spill] sm:$0xff] %v12514_v37  ;;  %v774_v49 = vadd.f32 %v12387_v61, %v705_v36  ;;  %v706_v50 = vmul.f32 %v10626_v45, %v12382_v59  ;;  %v482_v51 = vpop.f32.mrb[15].mxu0  ;;  %v1554_v52 = vsel %vm1547_vm0, %v1489_v34, %v1521_v35  ;;  %v1586_v54 = vsel %vm1547_vm0, %v1521_v35, %v1489_v34 }
 0x159   :  { %14710 = vst [vmem:[#allocation24_spill] sm:$0xff] %v12521_v46  ;;  %v772_v58 = vadd.f32 %v12387_v61, %v703_v43  ;;  %v704_v60 = vmul.f32 %v12382_v59, %v482_v51  ;;  %10700 = vmatmul.mubr.bf16.gmra.mrb[72].mxu0 %v12521_v46  ;;  %v1553_v62 = vsel %vm1547_vm0, %v1488_v40, %v1520_v42  ;;  %14711 = vst [vmem:[#allocation25_spill] sm:$0xff] %v12557_v14 }
 0x15a   :  { %v1585_v0 = vsel %vm1547_vm0, %v1520_v42, %v1488_v40  ;;  %v12536_v2 = vmax.f32 %v774_v49, 0.0  ;;  %v775_v3 = vadd.f32 %v12387_v61, %v706_v50  ;;  %10703 = vmatprep.mubr.bf16.mxu0 %v12514_v37  ;;  %10764 = vmatpush3.bf16.msra.mxu0 %v12079_v24  ;;  %v12542_v6 = vpack.c.bf16 %v1554_v52, %v1586_v54 }
 0x15b   :  { %v12540_v5 = vpack.c.bf16 %v1553_v62, %v1585_v0  ;;  %v12544_v7 = vmax.f32 %v772_v58, 0.0  ;;  %v773_v9 = vadd.f32 %v12387_v61, %v704_v60  ;;  %10765 = vmatprep.subr.bf16.mxu0 %v12081_v47  ;;  %v2294_v17 = vrot.slane %v12501_v31, 1 }
 0x15c   :  { %v12555_v13 = vmax.f32 %v775_v3, 0.0  ;;  %v2358_v41 = vsel %vm2321_vm1, %v2293_v30, %v2261_v29  ;;  %v1491_v53 = vrot.slane %v12536_v2, 7  ;;  %v12084_v30 = vld [vmem:[#allocation9 + $0x38] sm:$0xff]   ;;  %v2263_v0 = vrot.slane %v12480_v16, 1 }
 0x15d   :  { %v12561_v23 = vmax.f32 %v773_v9, 0.0  ;;  %v10629_v24 = vpop.f32.mrb[16].mxu0  ;;  %v1490_v20 = vrot.slane %v12544_v7, 7  ;;  %v12603_v60 = vpack.c.bf16 %v2358_v41, %v2326_v12  ;;  %v2327_v62 = vsel %vm2321_vm1, %v2262_v15, %v2294_v17 }
 0x15e   :  { %v1523_v56 = vrot.slane %v12555_v13, 7  ;;  %v709_v1 = vmul.f32 %v10629_v24, %v12382_v59  ;;  %v495_v25 = vpop.f32.mrb[17].mxu0  ;;  %v12570_v26 = vpack.c.bf16 %v12555_v13, %v12536_v2  ;;  %10766 = vmatpush3.bf16.msra.mxu0 %v12081_v47  ;;  %v2295_v3 = vrot.slane %v12495_v27, 1 }
 0x15f   :  { %v1522_v31 = vrot.slane %v12561_v23, 7  ;;  %v707_v32 = vmul.f32 %v12382_v59, %v495_v25  ;;  %v10630_v33 = vpop.f32.mrb[18].mxu0  ;;  %v12577_v29 = vpack.c.bf16 %v12561_v23, %v12544_v7  ;;  %10767 = vmatprep.subr.bf16.mxu0 %v12082_v10  ;;  %14714 = vst [vmem:[#allocation28_spill] sm:$0xff] %v12603_v60  ;;  %v2264_v11 = vrot.slane %v12544_v7, 1 }
 0x160   :  { %14712 = vst [vmem:[#allocation26_spill] sm:$0xff] %v12570_v26  ;;  %v778_v34 = vadd.f32 %v12387_v61, %v709_v1  ;;  %v710_v35 = vmul.f32 %v10630_v33, %v12382_v59  ;;  %v498_v36 = vpop.f32.mrb[19].mxu0  ;;  %v1556_v38 = vsel %vm1547_vm0, %v1491_v53, %v1523_v56  ;;  %v1588_v40 = vsel %vm1547_vm0, %v1523_v56, %v1491_v53 }
 0x161   :  { %14713 = vst [vmem:[#allocation27_spill] sm:$0xff] %v12577_v29  ;;  %v776_v42 = vadd.f32 %v12387_v61, %v707_v32  ;;  %v708_v43 = vmul.f32 %v12382_v59, %v498_v36  ;;  %10704 = vmatmul.mubr.bf16.gmra.mrb[76].mxu0 %v12577_v29  ;;  %v1555_v45 = vsel %vm1547_vm0, %v1490_v20, %v1522_v31  ;;  %v2296_v24 = vrot.slane %v12561_v23, 1 }
 0x162   :  { %v1587_v47 = vsel %vm1547_vm0, %v1522_v31, %v1490_v20  ;;  %v12592_v49 = vmax.f32 %v778_v34, 0.0  ;;  %v779_v50 = vadd.f32 %v12387_v61, %v710_v35  ;;  %10707 = vmatprep.mubr.bf16.mxu0 %v12570_v26  ;;  %10768 = vmatpush3.bf16.msra.mxu0 %v12082_v10  ;;  %v12598_v52 = vpack.c.bf16 %v1556_v38, %v1588_v40 }
 0x163   :  { %v12596_v51 = vpack.c.bf16 %v1555_v45, %v1587_v47  ;;  %v12600_v54 = vmax.f32 %v776_v42, 0.0  ;;  %v777_v58 = vadd.f32 %v12387_v61, %v708_v43  ;;  %10769 = vmatprep.subr.bf16.mxu0 %v12084_v30  ;;  %v2359_v10 = vsel %vm2321_vm1, %v2294_v17, %v2262_v15 }
 0x164   :  { %v12609_v9 = vmax.f32 %v779_v50, 0.0  ;;  %v12617_v41 = vpack.c.bf16 %v2359_v10, %v2327_v62  ;;  %v1493_v56 = vrot.slane %v12592_v49, 7 }
 0x165   :  { %v12615_v53 = vmax.f32 %v777_v58, 0.0  ;;  %v10633_v12 = vpop.f32.mrb[20].mxu0  ;;  %v1492_v15 = vrot.slane %v12600_v54, 7 }
 0x166   :  { %14715 = vst [vmem:[#allocation29_spill] sm:$0xff] %v12617_v41  ;;  %v1525_v16 = vrot.slane %v12609_v9, 7  ;;  %v713_v27 = vmul.f32 %v10633_v12, %v12382_v59  ;;  %v511_v1 = vpop.f32.mrb[21].mxu0  ;;  %v12624_v25 = vpack.c.bf16 %v12609_v9, %v12592_v49  ;;  %10770 = vmatpush3.bf16.msra.mxu0 %v12084_v30  ;;  %v2328_v12 = vsel %vm2321_vm1, %v2263_v0, %v2295_v3 }
 0x167   :  { %v1524_v17 = vrot.slane %v12615_v53, 7  ;;  %v711_v20 = vmul.f32 %v12382_v59, %v511_v1  ;;  %v10634_v31 = vpop.f32.mrb[22].mxu0  ;;  %v12631_v32 = vpack.c.bf16 %v12615_v53, %v12600_v54  ;;  %v2265_v1 = vrot.slane %v12536_v2, 1 }
 0x168   :  { %14716 = vst [vmem:[#allocation30_spill] sm:$0xff] %v12624_v25  ;;  %v782_v33 = vadd.f32 %v12387_v61, %v713_v27  ;;  %v714_v34 = vmul.f32 %v10634_v31, %v12382_v59  ;;  %v514_v35 = vpop.f32.mrb[23].mxu0  ;;  %v1558_v36 = vsel %vm1547_vm0, %v1493_v56, %v1525_v16  ;;  %v1590_v30 = vsel %vm1547_vm0, %v1525_v16, %v1493_v56 }
 0x169   :  { %14717 = vst [vmem:[#allocation31_spill] sm:$0xff] %v12631_v32  ;;  %v780_v38 = vadd.f32 %v12387_v61, %v711_v20  ;;  %v712_v40 = vmul.f32 %v12382_v59, %v514_v35  ;;  %10708 = vmatmul.mubr.bf16.gmra.mrb[80].mxu0 %v12631_v32  ;;  %v1557_v42 = vsel %vm1547_vm0, %v1492_v15, %v1524_v17  ;;  %v2298_v7 = vrot.slane %v12615_v53, 1 }
 0x16a   :  { %v1589_v43 = vsel %vm1547_vm0, %v1524_v17, %v1492_v15  ;;  %v12646_v45 = vmax.f32 %v782_v33, 0.0  ;;  %v783_v47 = vadd.f32 %v12387_v61, %v714_v34  ;;  %10711 = vmatprep.mubr.bf16.mxu0 %v12624_v25  ;;  %v12652_v58 = vpack.c.bf16 %v1558_v36, %v1590_v30 }
 0x16b   :  { %v12650_v50 = vpack.c.bf16 %v1557_v42, %v1589_v43  ;;  %v12654_v62 = vmax.f32 %v780_v38, 0.0  ;;  %v781_v10 = vadd.f32 %v12387_v61, %v712_v40  ;;  %v2360_v56 = vsel %vm2321_vm1, %v2295_v3, %v2263_v0 }
 0x16c   :  { %v12661_v16 = vmax.f32 %v783_v47, 0.0  ;;  %v12663_v27 = vpack.c.bf16 %v2360_v56, %v2328_v12  ;;  %v2297_v15 = vrot.slane %v12555_v13, 1  ;;  %v2329_v31 = vsel %vm2321_vm1, %v2264_v11, %v2296_v24 }
 0x16d   :  { %v12667_v17 = vmax.f32 %v781_v10, 0.0  ;;  %v10637_v20 = vpop.f32.mrb[24].mxu0  ;;  %v1495_v0 = vrot.slane %v12646_v45, 7  ;;  %v1494_v13 = vrot.slane %v12654_v62, 7  ;;  %v2269_v4 = vrot.slane %v12646_v45, 1 }
 0x16e   :  { %14718 = vst [vmem:[#allocation32_spill] sm:$0xff] %v12663_v27  ;;  %v1527_v3 = vrot.slane %v12661_v16, 7  ;;  %v717_v33 = vmul.f32 %v10637_v20, %v12382_v59  ;;  %v527_v34 = vpop.f32.mrb[25].mxu0  ;;  %v12680_v2 = vpack.c.bf16 %v12661_v16, %v12646_v45 }
 0x16f   :  { %v1526_v35 = vrot.slane %v12667_v17, 7  ;;  %v715_v36 = vmul.f32 %v12382_v59, %v527_v34  ;;  %v10638_v30 = vpop.f32.mrb[26].mxu0  ;;  %v12687_v38 = vpack.c.bf16 %v12667_v17, %v12654_v62 }
 0x170   :  { %14719 = vst [vmem:[#allocation33_spill] sm:$0xff] %v12680_v2  ;;  %v786_v40 = vadd.f32 %v12387_v61, %v717_v33  ;;  %v718_v42 = vmul.f32 %v10638_v30, %v12382_v59  ;;  %v530_v43 = vpop.f32.mrb[27].mxu0  ;;  %v1560_v47 = vsel %vm1547_vm0, %v1495_v0, %v1527_v3  ;;  %v1592_v10 = vsel %vm1547_vm0, %v1527_v3, %v1495_v0 }
 0x171   :  { %14720 = vst [vmem:[#allocation34_spill] sm:$0xff] %v12687_v38  ;;  %v784_v12 = vadd.f32 %v12387_v61, %v715_v36  ;;  %v716_v56 = vmul.f32 %v12382_v59, %v530_v43  ;;  %10712 = vmatmul.mubr.bf16.gmra.mrb[84].mxu0 %v12687_v38  ;;  %v1559_v20 = vsel %vm1547_vm0, %v1494_v13, %v1526_v35 }
 0x172   :  { %v1591_v33 = vsel %vm1547_vm0, %v1526_v35, %v1494_v13  ;;  %v12702_v34 = vmax.f32 %v786_v40, 0.0  ;;  %v787_v30 = vadd.f32 %v12387_v61, %v718_v42  ;;  %10715 = vmatprep.mubr.bf16.mxu0 %v12680_v2  ;;  %v12708_v0 = vpack.c.bf16 %v1560_v47, %v1592_v10 }
 0x173   :  { %v12706_v48 = vpack.c.bf16 %v1559_v20, %v1591_v33  ;;  %v12710_v3 = vmax.f32 %v784_v12, 0.0  ;;  %v785_v36 = vadd.f32 %v12387_v61, %v716_v56  ;;  %v2361_v13 = vsel %vm2321_vm1, %v2296_v24, %v2264_v11 }
 0x174   :  { %14721 = vst [vmem:[#allocation35_spill] sm:$0xff] %v12708_v0  ;;  %v2330_v35 = vsel %vm2321_vm1, %v2265_v1, %v2297_v15  ;;  %v12721_v40 = vmax.f32 %v787_v30, 0.0  ;;  %v12723_v42 = vpack.c.bf16 %v2361_v13, %v2329_v31  ;;  %v2362_v10 = vsel %vm2321_vm1, %v2297_v15, %v2265_v1 }
 0x175   :  { %v12725_v43 = vmax.f32 %v785_v36, 0.0  ;;  %v12727_v47 = vpop.f32.mrb[28].mxu0  ;;  %v1497_v23 = vrot.slane %v12702_v34, 7  ;;  %v1496_v31 = vrot.slane %v12710_v3, 7  ;;  %v2266_v1 = vrot.slane %v12600_v54, 1 }
 0x176   :  { %14722 = vst [vmem:[#allocation36_spill] sm:$0xff] %v12723_v42  ;;  %14723 = vst [vmem:[#allocation37_spill] sm:$0xff] %v12727_v47  ;;  %v1529_v11 = vrot.slane %v12721_v40, 7  ;;  %v543_v24 = vpop.f32.mrb[29].mxu0  ;;  %v12736_v12 = vpack.c.bf16 %v12721_v40, %v12702_v34  ;;  %v2299_v54 = vrot.slane %v12609_v9, 1 }
 0x177   :  { %v1528_v56 = vrot.slane %v12725_v43, 7  ;;  %v719_v20 = vmul.f32 %v12382_v59, %v543_v24  ;;  %v12741_v33 = vpop.f32.mrb[30].mxu0  ;;  %v12745_v53 = vpack.c.bf16 %v12725_v43, %v12710_v3  ;;  %v2363_v9 = vsel %vm2321_vm1, %v2298_v7, %v2266_v1 }
 0x178   :  { %14724 = vst [vmem:[#allocation38_spill] sm:$0xff] %v12736_v12  ;;  %v546_v15 = vpop.f32.mrb[31].mxu0  ;;  %v1562_v30 = vsel %vm1547_vm0, %v1497_v23, %v1529_v11  ;;  %v1594_v36 = vsel %vm1547_vm0, %v1529_v11, %v1497_v23 }
 0x179   :  { %14725 = vst [vmem:[#allocation39_spill] sm:$0xff] %v12745_v53  ;;  %v788_v13 = vadd.f32 %v12387_v61, %v719_v20  ;;  %v720_v2 = vmul.f32 %v12382_v59, %v546_v15  ;;  %10716 = vmatmul.mubr.bf16.gmra.mrb[88].mxu0 %v12745_v53  ;;  %v1561_v24 = vsel %vm1547_vm0, %v1496_v31, %v1528_v56  ;;  %v2267_v53 = vrot.slane %v12592_v49, 1 }
 0x17a   :  { %v1593_v38 = vsel %vm1547_vm0, %v1528_v56, %v1496_v31  ;;  %10719 = vmatprep.mubr.bf16.mxu0 %v12736_v12  ;;  %v12763_v32 = vpack.c.bf16 %v1562_v30, %v1594_v36  ;;  %v12768_v20 = vpack.c.bf16 %v2362_v10, %v2330_v35  ;;  %v2331_v15 = vsel %vm2321_vm1, %v2266_v1, %v2298_v7 }
 0x17b   :  { %v12761_v25 = vpack.c.bf16 %v1561_v24, %v1593_v38  ;;  %v12765_v23 = vmax.f32 %v788_v13, 0.0  ;;  %v789_v11 = vadd.f32 %v12387_v61, %v720_v2  ;;  %v12777_v56 = vpack.c.bf16 %v2363_v9, %v2331_v15 }
 0x17c   :  { %14727 = vst [vmem:[#allocation41_spill] sm:$0xff] %v12763_v32  ;;  %14728 = vst [vmem:[#allocation42_spill] sm:$0xff] %v12768_v20  ;;  %v2300_v30 = vrot.slane %v12667_v17, 1  ;;  %v2332_v35 = vsel %vm2321_vm1, %v2267_v53, %v2299_v54  ;;  %v2268_v24 = vrot.slane %v12654_v62, 1 }
 0x17d   :  { %14726 = vst [vmem:[#allocation40_spill] sm:$0xff] %v12761_v25  ;;  %v12775_v31 = vmax.f32 %v789_v11, 0.0  ;;  %v10645_v38 = vpop.f32.mrb[32].mxu0  ;;  %14729 = vst [vmem:[#allocation43_spill] sm:$0xff] %v12777_v56  ;;  %v1498_v10 = vrot.slane %v12765_v23, 7 }
 0x17e   :  { %v725_v36 = vmul.f32 %v10645_v38, %v12382_v59  ;;  %v559_v2 = vpop.f32.mrb[33].mxu0 }
 0x17f   :  { %v1530_v49 = vrot.slane %v12775_v31, 7  ;;  %v723_v13 = vmul.f32 %v12382_v59, %v559_v2  ;;  %v10646_v7 = vpop.f32.mrb[34].mxu0  ;;  %v12788_v1 = vpack.c.bf16 %v12775_v31, %v12765_v23 }
 0x180   :  { %v794_v17 = vadd.f32 %v12387_v61, %v725_v36  ;;  %v726_v11 = vmul.f32 %v10646_v7, %v12382_v59  ;;  %v562_v15 = vpop.f32.mrb[35].mxu0  ;;  %v14731_v36 = vmov 0.0|0.0  }
 0x181   :  { %14730 = vst [vmem:[#allocation44_spill] sm:$0xff] %v12788_v1  ;;  %v792_v9 = vadd.f32 %v12387_v61, %v723_v13  ;;  %v724_v38 = vmul.f32 %v12382_v59, %v562_v15  ;;  %10720 = vmatmul.mubr.bf16.gmra.mrb[92].mxu0 %v12788_v1  ;;  %v1563_v2 = vsel %vm1547_vm0, %v1498_v10, %v1530_v49 }
 0x182   :  { %v1595_v12 = vsel %vm1547_vm0, %v1530_v49, %v1498_v10  ;;  %v12800_v26 = vmax.f32 %v794_v17, 0.0  ;;  %v795_v62 = vadd.f32 %v12387_v61, %v726_v11  ;;  %10723 = vmatprep.mubr.bf16.mxu0 %v14731_v36  ;;  %v2364_v15 = vsel %vm2321_vm1, %v2299_v54, %v2267_v53  ;;  %v12070_v36 = vld [vmem:[#allocation9 + $0xc8] sm:$0xff]  }
 0x183   :  { %v12804_v7 = vpack.c.bf16 %v1563_v2, %v1595_v12  ;;  %v12806_v29 = vmax.f32 %v792_v9, 0.0  ;;  %v793_v13 = vadd.f32 %v12387_v61, %v724_v38  ;;  %v2333_v1 = vsel %vm2321_vm1, %v2268_v24, %v2300_v30 }
 0x184   :  { %v12813_v37 = vmax.f32 %v795_v62, 0.0  ;;  %v12815_v10 = vpack.c.bf16 %v2364_v15, %v2332_v35  ;;  %v2301_v49 = vrot.slane %v12661_v16, 1  ;;  %v2365_v11 = vsel %vm2321_vm1, %v2300_v30, %v2268_v24 }
 0x185   :  { %14732 = vst [vmem:[#allocation45_spill] sm:$0xff] %v12804_v7  ;;  %v12818_v17 = vmax.f32 %v793_v13, 0.0  ;;  %v10649_v12 = vpop.f32.mrb[36].mxu0  ;;  %v1501_v9 = vrot.slane %v12800_v26, 7  ;;  %v1500_v35 = vrot.slane %v12806_v29, 7 }
 0x186   :  { %14733 = vst [vmem:[#allocation46_spill] sm:$0xff] %v12815_v10  ;;  %v1533_v38 = vrot.slane %v12813_v37, 7  ;;  %v729_v53 = vmul.f32 %v10649_v12, %v12382_v59  ;;  %v575_v54 = vpop.f32.mrb[37].mxu0  ;;  %v12827_v2 = vpack.c.bf16 %v12813_v37, %v12800_v26  ;;  %v12072_v10 = vld [vmem:[#allocation9 + $0xd8] sm:$0xff]  }
 0x187   :  { %v1532_v16 = vrot.slane %v12818_v17, 7  ;;  %v727_v62 = vmul.f32 %v12382_v59, %v575_v54  ;;  %v10650_v13 = vpop.f32.mrb[38].mxu0  ;;  %v1050_v30 = vpack.c.bf16 %v12818_v17, %v12806_v29 }
 0x188   :  { %14734 = vst [vmem:[#allocation47_spill] sm:$0xff] %v12827_v2  ;;  %v798_v24 = vadd.f32 %v12387_v61, %v729_v53  ;;  %v730_v15 = vmul.f32 %v10650_v13, %v12382_v59  ;;  %v578_v12 = vpop.f32.mrb[39].mxu0  ;;  %v1566_v46 = vsel %vm1547_vm0, %v1501_v9, %v1533_v38  ;;  %v1598_v63 = vsel %vm1547_vm0, %v1533_v38, %v1501_v9 }
 0x189   :  { %v796_v54 = vadd.f32 %v12387_v61, %v727_v62  ;;  %v728_v21 = vmul.f32 %v12382_v59, %v578_v12  ;;  %10724 = vmatmul.mubr.bf16.gmra.mrb[96].mxu0 %v1050_v30  ;;  %10963 = vmatprep.mubr.bf16.mxu1 %v1050_v30  ;;  %v1565_v53 = vsel %vm1547_vm0, %v1500_v35, %v1532_v16  ;;  %v12071_v12 = vld [vmem:[#allocation9 + $0xd0] sm:$0xff]  }
 0x18a   :  { %v12845_v13 = vmax.f32 %v798_v24, 0.0  ;;  %v799_v22 = vadd.f32 %v12387_v61, %v730_v15  ;;  %10727 = vmatprep.mubr.bf16.mxu0 %v12827_v2  ;;  %10964 = vmatmul.mubr.bf16.vlgmr.msra.gmra.mrb[0].mxu1 %v12827_v2  ;;  %v1597_v45 = vsel %vm1547_vm0, %v1532_v16, %v1500_v35  ;;  %v12852_v9 = vpack.c.bf16 %v1566_v46, %v1598_v63 }
 0x18b   :  { %v12854_v38 = vmax.f32 %v796_v54, 0.0  ;;  %v797_v62 = vadd.f32 %v12387_v61, %v728_v21  ;;  %10996 = vmatpush3.bf16.msra.mxu1 %v12376_v57  ;;  %v12858_v30 = vpack.c.bf16 %v1565_v53, %v1597_v45  ;;  %v12860_v24 = vpack.c.bf16 %v2365_v11, %v2333_v1 }
 0x18c   :  { %14735 = vst [vmem:[#allocation48_spill] sm:$0xff] %v12852_v9  ;;  %v12862_v15 = vmax.f32 %v799_v22, 0.0  ;;  %10997 = vmatprep.subr.bf16.mxu1 %v12070_v36  ;;  %v2334_v2 = vsel %vm2321_vm1, %v2269_v4, %v2301_v49  ;;  %v2302_v63 = vrot.slane %v12725_v43, 1  ;;  %v14640_v16 = vmov 0.0  }
 0x18d   :  { %14736 = vst [vmem:[#allocation49_spill] sm:$0xff] %v12858_v30  ;;  %14737 = vst [vmem:[#allocation50_spill] sm:$0xff] %v12860_v24  ;;  %v12867_v46 = vmax.f32 %v797_v62, 0.0  ;;  %v10653_v35 = vpop.f32.mrb[40].mxu0  ;;  %v1483_v21 = vrot.slane %v14640_v16, 7  ;;  %v2366_v57 = vsel %vm2321_vm1, %v2301_v49, %v2269_v4  ;;  %v1503_v1 = vrot.slane %v12845_v13, 7 }
 0x18e   :  { %v1535_v22 = vrot.slane %v12862_v15, 7  ;;  %v733_v11 = vmul.f32 %v10653_v35, %v12382_v59  ;;  %v591_v54 = vpop.f32.mrb[41].mxu0  ;;  %v12877_v53 = vpack.c.bf16 %v12862_v15, %v12845_v13  ;;  %v1502_v43 = vrot.slane %v12854_v38, 7 }
 0x18f   :  { %v1534_v45 = vrot.slane %v12867_v46, 7  ;;  %v731_v62 = vmul.f32 %v12382_v59, %v591_v54  ;;  %v10654_v16 = vpop.f32.mrb[42].mxu0  ;;  %v12884_v4 = vpack.c.bf16 %v12867_v46, %v12854_v38  ;;  %10998 = vmatpush3.bf16.msra.mxu1 %v12070_v36  ;;  %v2270_v54 = vrot.slane %v12710_v3, 1 }
 0x190   :  { %14738 = vst [vmem:[#allocation51_spill] sm:$0xff] %v12877_v53  ;;  %v802_v49 = vadd.f32 %v12387_v61, %v733_v11  ;;  %v734_v35 = vmul.f32 %v10654_v16, %v12382_v59  ;;  %v594_v24 = vpop.f32.mrb[43].mxu0  ;;  %10999 = vmatprep.subr.bf16.mxu1 %v12071_v12  ;;  %v1568_v56 = vsel %vm1547_vm0, %v1503_v1, %v1535_v22 }
 0x191   :  { %14739 = vst [vmem:[#allocation52_spill] sm:$0xff] %v12884_v4  ;;  %v1600_v20 = vsel %vm1547_vm0, %v1535_v22, %v1503_v1  ;;  %v800_v42 = vadd.f32 %v12387_v61, %v731_v62  ;;  %v732_v27 = vmul.f32 %v12382_v59, %v594_v24  ;;  %10728 = vmatmul.mubr.bf16.gmra.mrb[100].mxu0 %v12884_v4 }
 0x192   :  { %10967 = vmatprep.mubr.bf16.mxu1 %v12884_v4  ;;  %v1567_v36 = vsel %vm1547_vm0, %v1502_v43, %v1534_v45  ;;  %v12899_v16 = vmax.f32 %v802_v49, 0.0  ;;  %v803_v11 = vadd.f32 %v12387_v61, %v734_v35  ;;  %10731 = vmatprep.mubr.bf16.mxu0 %v12877_v53  ;;  %v1599_v3 = vsel %vm1547_vm0, %v1534_v45, %v1502_v43 }
 0x193   :  { %10968 = vmatmul.mubr.bf16.gmra.mrb[4].mxu1 %v12877_v53  ;;  %v12906_v1 = vpack.c.bf16 %v1568_v56, %v1600_v20  ;;  %v12908_v24 = vmax.f32 %v800_v42, 0.0  ;;  %v801_v22 = vadd.f32 %v12387_v61, %v732_v27  ;;  %v12911_v62 = vpack.c.bf16 %v1567_v36, %v1599_v3  ;;  %v12074_v53 = vld [vmem:[#allocation9 + $0xe0] sm:$0xff]   ;;  %v12077_v27 = vld [vmem:[#allocation9 + $0xe8] sm:$0xff]  }
 0x194   :  { %11000 = vmatpush3.bf16.msra.mxu1 %v12071_v12  ;;  %v12913_v49 = vpack.c.bf16 %v2366_v57, %v2334_v2  ;;  %v2271_v35 = vrot.slane %v12702_v34, 1  ;;  %v12916_v4 = vmax.f32 %v803_v11, 0.0  ;;  %v12918_v41 = vpack.c.bf16 %v1483_v21, %v1483_v21 }
 0x195   :  { %14740 = vst [vmem:[#allocation53_spill] sm:$0xff] %v12906_v1  ;;  %14741 = vst [vmem:[#allocation54_spill] sm:$0xff] %v12911_v62  ;;  %11001 = vmatprep.subr.bf16.mxu1 %v12072_v10  ;;  %v2335_v20 = vsel %vm2321_vm1, %v2270_v54, %v2302_v63  ;;  %v2303_v42 = vrot.slane %v12721_v40, 1  ;;  %v12924_v56 = vmax.f32 %v801_v22, 0.0  ;;  %v10657_v12 = vpop.f32.mrb[44].mxu0  ;;  %v2367_v2 = vsel %vm2321_vm1, %v2302_v63, %v2270_v54 }
 0x196   :  { %14742 = vst [vmem:[#allocation55_spill] sm:$0xff] %v12913_v49  ;;  %v1505_v34 = vrot.slane %v12899_v16, 7  ;;  %v1537_v57 = vrot.slane %v12916_v4, 7  ;;  %v737_v21 = vmul.f32 %v10657_v12, %v12382_v59  ;;  %v607_v43 = vpop.f32.mrb[45].mxu0  ;;  %v12933_v45 = vpack.c.bf16 %v12916_v4, %v12899_v16 }
 0x197   :  { %v1504_v40 = vrot.slane %v12908_v24, 7  ;;  %v1536_v36 = vrot.slane %v12924_v56, 7  ;;  %v735_v11 = vmul.f32 %v12382_v59, %v607_v43  ;;  %v10658_v3 = vpop.f32.mrb[46].mxu0  ;;  %v12940_v63 = vpack.c.bf16 %v12924_v56, %v12908_v24 }
 0x198   :  { %14743 = vst [vmem:[#allocation56_spill] sm:$0xff] %v12933_v45  ;;  %11002 = vmatpush3.bf16.msra.mxu1 %v12072_v10  ;;  %v806_v54 = vadd.f32 %v12387_v61, %v737_v21  ;;  %v738_v22 = vmul.f32 %v10658_v3, %v12382_v59  ;;  %v610_v12 = vpop.f32.mrb[47].mxu0  ;;  %v1570_v49 = vsel %vm1547_vm0, %v1505_v34, %v1537_v57 }
 0x199   :  { %14744 = vst [vmem:[#allocation57_spill] sm:$0xff] %v12940_v63  ;;  %11003 = vmatprep.subr.bf16.mxu1 %v12074_v53  ;;  %v1602_v60 = vsel %vm1547_vm0, %v1537_v57, %v1505_v34  ;;  %v804_v14 = vadd.f32 %v12387_v61, %v735_v11  ;;  %v736_v28 = vmul.f32 %v12382_v59, %v610_v12 }
 0x19a   :  { %10732 = vmatmul.mubr.bf16.gmra.mrb[104].mxu0 %v12940_v63  ;;  %10971 = vmatprep.mubr.bf16.mxu1 %v12940_v63  ;;  %v1569_v10 = vsel %vm1547_vm0, %v1504_v40, %v1536_v36  ;;  %v12955_v21 = vmax.f32 %v806_v54, 0.0  ;;  %v807_v3 = vadd.f32 %v12387_v61, %v738_v22  ;;  %v1601_v34 = vsel %vm1547_vm0, %v1536_v36, %v1504_v40 }
 0x19b   :  { %10735 = vmatprep.mubr.bf16.mxu0 %v12933_v45  ;;  %10972 = vmatmul.mubr.bf16.gmra.mrb[8].mxu1 %v12933_v45  ;;  %v12962_v57 = vpack.c.bf16 %v1570_v49, %v1602_v60  ;;  %v12964_v11 = vmax.f32 %v804_v14, 0.0  ;;  %v805_v12 = vadd.f32 %v12387_v61, %v736_v28  ;;  %v12967_v43 = vpack.c.bf16 %v1569_v10, %v1601_v34  ;;  %v12080_v45 = vld [vmem:[#allocation9 + $0xf0] sm:$0xff]   ;;  %v12083_v28 = vld [vmem:[#allocation9 + $0xf8] sm:$0xff]  }
 0x19c   :  { %11004 = vmatpush3.bf16.msra.mxu1 %v12074_v53  ;;  %v12969_v54 = vpack.c.bf16 %v2367_v2, %v2335_v20  ;;  %v12973_v55 = vmax.f32 %v807_v3, 0.0  ;;  %v2336_v60 = vsel %vm2321_vm1, %v2271_v35, %v2303_v42  ;;  %v2368_v20 = vsel %vm2321_vm1, %v2303_v42, %v2271_v35 }
 0x19d   :  { %14745 = vst [vmem:[#allocation58_spill] sm:$0xff] %v12962_v57  ;;  %14746 = vst [vmem:[#allocation59_spill] sm:$0xff] %v12967_v43  ;;  %11005 = vmatprep.subr.bf16.mxu1 %v12077_v27  ;;  %v12979_v53 = vmax.f32 %v805_v12, 0.0  ;;  %v10661_v49 = vpop.f32.mrb[48].mxu0  ;;  %v1507_v2 = vrot.slane %v12955_v21, 7  ;;  %v1506_v34 = vrot.slane %v12964_v11, 7 }
 0x19e   :  { %14747 = vst [vmem:[#allocation60_spill] sm:$0xff] %v12969_v54  ;;  %v1539_v40 = vrot.slane %v12973_v55, 7  ;;  %v741_v36 = vmul.f32 %v10661_v49, %v12382_v59  ;;  %v623_v10 = vpop.f32.mrb[49].mxu0  ;;  %v12988_v3 = vpack.c.bf16 %v12973_v55, %v12955_v21 }
 0x19f   :  { %v1538_v12 = vrot.slane %v12979_v53, 7  ;;  %v739_v22 = vmul.f32 %v12382_v59, %v623_v10  ;;  %v10662_v14 = vpop.f32.mrb[50].mxu0  ;;  %v12995_v35 = vpack.c.bf16 %v12979_v53, %v12964_v11 }
 0x1a0   :  { %14748 = vst [vmem:[#allocation61_spill] sm:$0xff] %v12988_v3  ;;  %11006 = vmatpush3.bf16.msra.mxu1 %v12077_v27  ;;  %v810_v42 = vadd.f32 %v12387_v61, %v741_v36  ;;  %v742_v49 = vmul.f32 %v10662_v14, %v12382_v59  ;;  %v626_v63 = vpop.f32.mrb[51].mxu0  ;;  %v1572_v54 = vsel %vm1547_vm0, %v1507_v2, %v1539_v40 }
 0x1a1   :  { %14749 = vst [vmem:[#allocation62_spill] sm:$0xff] %v12995_v35  ;;  %11007 = vmatprep.subr.bf16.mxu1 %v12080_v45  ;;  %v1604_v57 = vsel %vm1547_vm0, %v1539_v40, %v1507_v2  ;;  %v808_v43 = vadd.f32 %v12387_v61, %v739_v22  ;;  %v740_v1 = vmul.f32 %v12382_v59, %v626_v63 }
 0x1a2   :  { %10736 = vmatmul.mubr.bf16.gmra.mrb[108].mxu0 %v12995_v35  ;;  %10975 = vmatprep.mubr.bf16.mxu1 %v12995_v35  ;;  %v1571_v27 = vsel %vm1547_vm0, %v1506_v34, %v1538_v12  ;;  %v13010_v14 = vmax.f32 %v810_v42, 0.0  ;;  %v811_v36 = vadd.f32 %v12387_v61, %v742_v49  ;;  %v1603_v22 = vsel %vm1547_vm0, %v1538_v12, %v1506_v34 }
 0x1a3   :  { %10739 = vmatprep.mubr.bf16.mxu0 %v12988_v3  ;;  %10976 = vmatmul.mubr.bf16.gmra.mrb[12].mxu1 %v12988_v3  ;;  %v13017_v2 = vpack.c.bf16 %v1572_v54, %v1604_v57  ;;  %v13019_v63 = vmax.f32 %v808_v43, 0.0  ;;  %v809_v40 = vadd.f32 %v12387_v61, %v740_v1  ;;  %v13022_v10 = vpack.c.bf16 %v1571_v27, %v1603_v22  ;;  %v13030_v3 = vld [vmem:[#allocation9 + $0x140] sm:$0xff]  }
 0x1a4   :  { %11008 = vmatpush3.bf16.msra.mxu1 %v12080_v45  ;;  %v13024_v42 = vpack.c.bf16 %v2368_v20, %v2336_v60  ;;  %v13028_v62 = vmax.f32 %v811_v36, 0.0  ;;  %v14753_v57 = vrot.slane %v12775_v31, 1  ;;  %v14754_v43 = vrot.slane %v12765_v23, 1  ;;  %v13060_v31 = vld [vmem:[%s14606_s4] ss:$0 sm:$0xff] }
 0x1a5   :  { %14750 = vst [vmem:[#allocation63_spill] sm:$0xff] %v13017_v2  ;;  %14751 = vst [vmem:[#allocation64_spill] sm:$0xff] %v13022_v10  ;;  %11009 = vmatprep.subr.bf16.mxu1 %v12083_v28  ;;  %v13040_v54 = vmax.f32 %v809_v40, 0.0  ;;  %v10665_v60 = vpop.f32.mrb[52].mxu0  ;;  %v1509_v27 = vrot.slane %v13010_v14, 7  ;;  %v1508_v40 = vrot.slane %v13019_v63, 7 }
 0x1a6   :  { %14752 = vst [vmem:[#allocation65_spill] sm:$0xff] %v13024_v42  ;;  %v2337_v61 = vsel %vm2321_vm1, %v14754_v43, %v14753_v57  ;;  %v14755_v20 = vmov %v14754_v43  ;;  %v14756_v34 = vmov %v14753_v57  ;;  %v1541_v36 = vrot.slane %v13028_v62, 7  ;;  %v639_v57 = vpop.f32.mrb[53].mxu0  ;;  %14758 = vst [vmem:[#allocation67_spill] sm:$0xff] %v13060_v31 }
 0x1a7   :  { %v2369_v12 = vsel %vm2321_vm1, %v14756_v34, %v14755_v20  ;;  %v745_v22 = vmul.f32 %v10665_v60, %v12382_v59  ;;  %v13053_v43 = vpack.c.bf16 %v13028_v62, %v13010_v14  ;;  %v1540_v23 = vrot.slane %v13040_v54, 7  ;;  %v10666_v34 = vpop.f32.mrb[54].mxu0  ;;  %v13070_v60 = vld [vmem:[%s14606_s4 + $0x1] ss:$0 sm:$0xff] }
 0x1a8   :  { %v743_v20 = vmul.f32 %v13060_v31, %v639_v57  ;;  %v13065_v59 = vpack.c.bf16 %v13040_v54, %v13019_v63  ;;  %11010 = vmatpush3.bf16.msra.mxu1 %v12083_v28  ;;  %v746_v35 = vmul.f32 %v13060_v31, %v10666_v34  ;;  %v642_v49 = vpop.f32.mrb[55].mxu0  ;;  %v1574_v57 = vsel %vm1547_vm0, %v1509_v27, %v1541_v36  ;;  %v13086_v34 = vld [vmem:[#allocation9 + $0x80] sm:$0xff]  }
 0x1a9   :  { %14757 = vst [vmem:[#allocation66_spill] sm:$0xff] %v13053_v43  ;;  %v814_v45 = vadd.f32 %v13070_v60, %v745_v22  ;;  %11075 = vmatprep.subr.bf16.mxu1 %v13030_v3  ;;  %v1606_v1 = vsel %vm1547_vm0, %v1541_v36, %v1509_v27  ;;  %v744_v2 = vmul.f32 %v13060_v31, %v642_v49 }
 0x1aa   :  { %14759 = vst [vmem:[#allocation68_spill] sm:$0xff] %v13065_v59  ;;  %v812_v42 = vadd.f32 %v13070_v60, %v743_v20  ;;  %10740 = vmatmul.mubr.bf16.gmra.mrb[112].mxu0 %v13065_v59  ;;  %10979 = vmatprep.mubr.bf16.mxu1 %v13065_v59  ;;  %v1573_v22 = vsel %vm1547_vm0, %v1508_v40, %v1540_v23 }
 0x1ab   :  { %v13088_v10 = vmax.f32 %v814_v45, 0.0  ;;  %v815_v9 = vadd.f32 %v13070_v60, %v746_v35  ;;  %10743 = vmatprep.mubr.bf16.mxu0 %v13053_v43  ;;  %10980 = vmatmul.mubr.bf16.gmra.mrb[16].mxu1 %v13053_v43  ;;  %v1605_v49 = vsel %vm1547_vm0, %v1540_v23, %v1508_v40  ;;  %v13095_v27 = vpack.c.bf16 %v1574_v57, %v1606_v1 }
 0x1ac   :  { %v13097_v36 = vmax.f32 %v812_v42, 0.0  ;;  %v813_v20 = vadd.f32 %v13070_v60, %v744_v2  ;;  %v13100_v28 = vpack.c.bf16 %v1573_v22, %v1605_v49  ;;  %10835 = vmatprep.subr.bf16.mxu0 %v13086_v34  ;;  %v13103_v45 = vpack.c.bf16 %v2369_v12, %v2337_v61 }
 0x1ad   :  { %14760 = vst [vmem:[#allocation69_spill] sm:$0xff] %v13095_v27  ;;  %v13108_v30 = vmax.f32 %v815_v9, 0.0  ;;  %v10669_v23 = vpop.f32.mrb[56].mxu0  ;;  %v1511_v61 = vrot.slane %v13088_v10, 7 }
 0x1ae   :  { %14761 = vst [vmem:[#allocation70_spill] sm:$0xff] %v13100_v28  ;;  %14762 = vst [vmem:[#allocation71_spill] sm:$0xff] %v13103_v45  ;;  %v13113_v40 = vmax.f32 %v813_v20, 0.0  ;;  %v749_v57 = vmul.f32 %v13060_v31, %v10669_v23  ;;  %v655_v22 = vpop.f32.mrb[57].mxu0  ;;  %v1510_v49 = vrot.slane %v13097_v36, 7 }
 0x1af   :  { %v1543_v12 = vrot.slane %v13108_v30, 7  ;;  %v13120_v9 = vpack.c.bf16 %v13108_v30, %v13088_v10  ;;  %v747_v42 = vmul.f32 %v13060_v31, %v655_v22  ;;  %v10670_v20 = vpop.f32.mrb[58].mxu0 }
 0x1b0   :  { %v1542_v43 = vrot.slane %v13113_v40, 7  ;;  %v13127_v1 = vpack.c.bf16 %v13113_v40, %v13097_v36  ;;  %v818_v2 = vadd.f32 %v13070_v60, %v749_v57  ;;  %v750_v23 = vmul.f32 %v13060_v31, %v10670_v20  ;;  %v658_v35 = vpop.f32.mrb[59].mxu0 }
 0x1b1   :  { %14763 = vst [vmem:[#allocation72_spill] sm:$0xff] %v13120_v9  ;;  %v1576_v59 = vsel %vm1547_vm0, %v1511_v61, %v1543_v12  ;;  %v1608_v45 = vsel %vm1547_vm0, %v1543_v12, %v1511_v61  ;;  %v816_v22 = vadd.f32 %v13070_v60, %v747_v42  ;;  %v748_v28 = vmul.f32 %v13060_v31, %v658_v35 }
 0x1b2   :  { %14764 = vst [vmem:[#allocation73_spill] sm:$0xff] %v13127_v1  ;;  %10744 = vmatmul.mubr.bf16.gmra.mrb[116].mxu0 %v13127_v1  ;;  %10983 = vmatprep.mubr.bf16.mxu1 %v13127_v1  ;;  %v1575_v57 = vsel %vm1547_vm0, %v1510_v49, %v1542_v43  ;;  %v13142_v20 = vmax.f32 %v818_v2, 0.0  ;;  %v819_v7 = vadd.f32 %v13070_v60, %v750_v23 }
 0x1b3   :  { %10747 = vmatprep.mubr.bf16.mxu0 %v13120_v9  ;;  %10984 = vmatmul.mubr.bf16.gmra.mrb[20].mxu1 %v13120_v9  ;;  %v1607_v42 = vsel %vm1547_vm0, %v1542_v43, %v1510_v49  ;;  %v13149_v61 = vpack.c.bf16 %v1576_v59, %v1608_v45  ;;  %v13152_v12 = vmax.f32 %v816_v22, 0.0  ;;  %v817_v27 = vadd.f32 %v13070_v60, %v748_v28 }
 0x1b4   :  { %v13155_v1 = vpack.c.bf16 %v1575_v57, %v1607_v42  ;;  %v13159_v32 = vmax.f32 %v819_v7, 0.0  ;;  %v14767_v9 = vrot.slane %v12818_v17, 1  ;;  %v14768_v43 = vrot.slane %v12806_v29, 1 }
 0x1b5   :  { %14765 = vst [vmem:[#allocation74_spill] sm:$0xff] %v13149_v61  ;;  %v13169_v28 = vmax.f32 %v817_v27, 0.0  ;;  %v10673_v22 = vpop.f32.mrb[60].mxu0  ;;  %v1513_v2 = vrot.slane %v13142_v20, 7  ;;  %v1512_v49 = vrot.slane %v13152_v12, 7 }
 0x1b6   :  { %14766 = vst [vmem:[#allocation75_spill] sm:$0xff] %v13155_v1  ;;  %v2339_v59 = vsel %vm2321_vm1, %v14768_v43, %v14767_v9  ;;  %v14769_v57 = vmov %v14768_v43  ;;  %v14770_v7 = vmov %v14767_v9  ;;  %v1545_v9 = vrot.slane %v13159_v32, 7  ;;  %v671_v45 = vpop.f32.mrb[61].mxu0 }
 0x1b7   :  { %v2371_v42 = vsel %vm2321_vm1, %v14770_v7, %v14769_v57  ;;  %v753_v43 = vmul.f32 %v13060_v31, %v10673_v22  ;;  %v13183_v27 = vpack.c.bf16 %v13159_v32, %v13142_v20  ;;  %v1544_v29 = vrot.slane %v13169_v28, 7  ;;  %v10674_v35 = vpop.f32.mrb[62].mxu0 }
 0x1b8   :  { %v751_v17 = vmul.f32 %v13060_v31, %v671_v45  ;;  %v13190_v57 = vpack.c.bf16 %v13169_v28, %v13152_v12  ;;  %v754_v22 = vmul.f32 %v13060_v31, %v10674_v35  ;;  %v674_v23 = vpop.f32.mrb[63].mxu0  ;;  %v1578_v61 = vsel %vm1547_vm0, %v1513_v2, %v1545_v9 }
 0x1b9   :  { %14771 = vst [vmem:[#allocation76_spill] sm:$0xff] %v13183_v27  ;;  %v822_v7 = vadd.f32 %v13070_v60, %v753_v43  ;;  %v1610_v1 = vsel %vm1547_vm0, %v1545_v9, %v1513_v2  ;;  %v752_v0 = vmul.f32 %v13060_v31, %v674_v23  ;;  %v1577_v35 = vsel %vm1547_vm0, %v1512_v49, %v1544_v29 }
 0x1ba   :  { %14772 = vst [vmem:[#allocation77_spill] sm:$0xff] %v13190_v57  ;;  %v820_v45 = vadd.f32 %v13070_v60, %v751_v17  ;;  %10748 = vmatmul.mubr.bf16.gmra.mrb[120].mxu0 %v13190_v57  ;;  %10987 = vmatprep.mubr.bf16.mxu1 %v13190_v57  ;;  %v823_v47 = vadd.f32 %v13070_v60, %v754_v22 }
 0x1bb   :  { %v13205_v43 = vmax.f32 %v822_v7, 0.0  ;;  %10751 = vmatprep.mubr.bf16.mxu0 %v13183_v27  ;;  %10988 = vmatmul.mubr.bf16.gmra.mrb[24].mxu1 %v13183_v27  ;;  %v1609_v2 = vsel %vm1547_vm0, %v1544_v29, %v1512_v49  ;;  %v13212_v9 = vpack.c.bf16 %v1578_v61, %v1610_v1  ;;  %v821_v17 = vadd.f32 %v13070_v60, %v752_v0 }
 0x1bc   :  { %v13214_v23 = vmax.f32 %v820_v45, 0.0  ;;  %v13217_v25 = vpack.c.bf16 %v1577_v35, %v1609_v2  ;;  %v13219_v57 = vpack.c.bf16 %v2371_v42, %v2339_v59  ;;  %v2316_v7 = vrot.slane %v13113_v40, 1 }
 0x1bd   :  { %v13223_v31 = vmax.f32 %v823_v47, 0.0  ;;  %v14774_v27 = vrot.slane %v12813_v37, 1  ;;  %v14775_v49 = vrot.slane %v12800_v26, 1  ;;  %v2286_v61 = vrot.slane %v13152_v12, 1 }
 0x1be   :  { %14773 = vst [vmem:[#allocation78_spill] sm:$0xff] %v13219_v57  ;;  %v13233_v29 = vmax.f32 %v821_v17, 0.0  ;;  %v3705_v42 = vrot.slane %v13205_v43, 7  ;;  %v1514_v35 = vrot.slane %v13214_v23, 7  ;;  %v14779_v26 = vrot.slane %v12867_v46, 1 }
 0x1bf   :  { %v2340_v1 = vsel %vm2321_vm1, %v14775_v49, %v14774_v27  ;;  %v14776_v59 = vmov %v14775_v49  ;;  %v14777_v40 = vmov %v14774_v27  ;;  %v3737_v45 = vrot.slane %v13223_v31, 7 }
 0x1c0   :  { %v2372_v47 = vsel %vm2321_vm1, %v14777_v40, %v14776_v59  ;;  %v13245_v27 = vpack.c.bf16 %v13223_v31, %v13205_v43  ;;  %v1546_v2 = vrot.slane %v13233_v29, 7  ;;  %v13253_v37 = vpack.c.bf16 %v13233_v29, %v13214_v23 }
 0x1c1   :  { %v13247_v12 = vpack.c.bf16 %v2372_v47, %v2340_v1  ;;  %v14780_v17 = vrot.slane %v12854_v38, 1  ;;  %v3769_v59 = vsel %vm1547_vm0, %v3705_v42, %v3737_v45  ;;  %v3801_v40 = vsel %vm1547_vm0, %v3737_v45, %v3705_v42  ;;  %v14916_v1 = vld [vmem:[#allocation28_spill] sm:$0xff] }
 0x1c2   :  { %v14784_v22 = vmov %v14779_v26  ;;  %v14786_v0 = vrot.slane %v12845_v13, 1  ;;  %v2318_v57 = vrot.slane %v13169_v28, 1  ;;  %10752 = vmatmul.mubr.bf16.gmra.mrb[124].mxu0 %v13253_v37  ;;  %10991 = vmatprep.mubr.bf16.mxu1 %v13253_v37  ;;  %v1579_v38 = vsel %vm1547_vm0, %v1514_v35, %v1546_v2 }
 0x1c3   :  { %14778 = vst [vmem:[#allocation79_spill] sm:$0xff] %v13247_v12  ;;  %v2341_v49 = vsel %vm2321_vm1, %v14780_v17, %v14779_v26  ;;  %v14783_v47 = vmov %v14780_v17  ;;  %v14785_v17 = vrot.slane %v12862_v15, 1  ;;  %v1611_v46 = vsel %vm1547_vm0, %v1546_v2, %v1514_v35  ;;  %10992 = vmatmul.mubr.bf16.gmra.mrb[28].mxu1 %v13245_v27  ;;  %10771 = vmatprep.mubr.msk.bf16.mxu0 %vm13264_vm4, %v12918_v41 }
 0x1c4   :  { %v2373_v26 = vsel %vm2321_vm1, %v14784_v22, %v14783_v47  ;;  %v13291_v22 = vpack.c.bf16 %v3769_v59, %v3801_v40  ;;  %v2288_v42 = vrot.slane %v13214_v23, 1  ;;  %v13298_v28 = vpack.c.bf16 %v1579_v38, %v1611_v46  ;;  %11011 = vmatprep.mubr.msk.bf16.mxu1 %vm13264_vm4, %v12430_v39 }
 0x1c5   :  { %v2342_v12 = vsel %vm2321_vm1, %v14786_v0, %v14785_v17  ;;  %v13300_v0 = vpack.c.bf16 %v2373_v26, %v2341_v49  ;;  %v14787_v45 = vrot.slane %v12845_v13, 1  ;;  %v14788_v47 = vmov %v14785_v17 }
 0x1c6   :  { %v4507_v2 = vrot.slane %v13223_v31, 1  ;;  %v14789_v59 = vrot.slane %v12924_v56, 1  ;;  %v14790_v49 = vrot.slane %v12908_v24, 1  ;;  %v14793_v17 = vrot.slane %v12916_v4, 1 }
 0x1c7   :  { %v2374_v35 = vsel %vm2321_vm1, %v14788_v47, %v14787_v45  ;;  %v14797_v56 = vrot.slane %v12979_v53, 1  ;;  %v14798_v47 = vrot.slane %v12964_v11, 1  ;;  %v14805_v53 = vrot.slane %v13040_v54, 1 }
 0x1c8   :  { %v13312_v23 = vpack.c.bf16 %v2374_v35, %v2342_v12  ;;  %v2343_v13 = vsel %vm2321_vm1, %v14790_v49, %v14789_v59  ;;  %v14791_v15 = vmov %v14790_v49  ;;  %v14792_v40 = vmov %v14789_v59 }
 0x1c9   :  { %v2375_v31 = vsel %vm2321_vm1, %v14792_v40, %v14791_v15  ;;  %v14794_v12 = vrot.slane %v12899_v16, 1  ;;  %v14796_v45 = vmov %v14793_v17  ;;  %v2345_v35 = vsel %vm2321_vm1, %v14798_v47, %v14797_v56 }
 0x1ca   :  { %v13326_v26 = vpack.c.bf16 %v2375_v31, %v2343_v13  ;;  %v2320_v59 = vrot.slane %v13233_v29, 1  ;;  %v14799_v13 = vmov %v14798_v47  ;;  %v14800_v16 = vmov %v14797_v56  ;;  %10772 = vmatmul.mubr.msk.bf16.vlgmr.msra.gmra.mrb[64].mxu0 %vm13264_vm4, %v12430_v39 }
 0x1cb   :  { %v2344_v38 = vsel %vm2321_vm1, %v14794_v12, %v14793_v17  ;;  %v14795_v46 = vmov %v14794_v12  ;;  %v2377_v4 = vsel %vm2321_vm1, %v14800_v16, %v14799_v13  ;;  %v14801_v15 = vrot.slane %v12973_v55, 1  ;;  %10775 = vmatprep.mubr.msk.bf16.mxu0 %vm13264_vm4, %v12437_v44  ;;  %11012 = vmatmul.mubr.msk.bf16.vlgmr.msra.gmra.mrb[32].mxu1 %vm13264_vm4, %v12437_v44 }
 0x1cc   :  { %v2376_v24 = vsel %vm2321_vm1, %v14796_v45, %v14795_v46  ;;  %v14802_v40 = vrot.slane %v12955_v21, 1  ;;  %v13361_v17 = vpack.c.bf16 %v2377_v4, %v2345_v35  ;;  %v14809_v47 = vrot.slane %v13028_v62, 1  ;;  %v12086_v4 = vld [vmem:[#allocation9 + $0x148] sm:$0xff]   ;;  %11076 = vmatpush3.bf16.msra.mxu1 %v13030_v3  ;;  %11015 = vmatprep.mubr.msk.bf16.mxu1 %vm13264_vm4, %v12484_v18 }
 0x1cd   :  { %v13347_v49 = vpack.c.bf16 %v2376_v24, %v2344_v38  ;;  %v14804_v12 = vmov %v14801_v15  ;;  %v14806_v38 = vrot.slane %v13019_v63, 1  ;;  %v14808_v24 = vmov %v14805_v53  ;;  %11077 = vmatprep.subr.bf16.mxu1 %v12086_v4  ;;  %10836 = vmatpush3.bf16.msra.mxu0 %v13086_v34  ;;  %v12095_v34 = vld [vmem:[#allocation9 + $0x98] sm:$0xff]  }
 0x1ce   :  { %v2346_v31 = vsel %vm2321_vm1, %v14802_v40, %v14801_v15  ;;  %v14803_v29 = vmov %v14802_v40  ;;  %v14810_v35 = vrot.slane %v13010_v14, 1  ;;  %v14812_v63 = vmov %v14809_v47 }
 0x1cf   :  { %v2378_v11 = vsel %vm2321_vm1, %v14804_v12, %v14803_v29  ;;  %v2347_v46 = vsel %vm2321_vm1, %v14806_v38, %v14805_v53  ;;  %v14807_v45 = vmov %v14806_v38  ;;  %v14813_v40 = vrot.slane %v13097_v36, 1  ;;  %v12093_v53 = vld [vmem:[#allocation9 + $0x88] sm:$0xff]  }
 0x1d0   :  { %v2379_v56 = vsel %vm2321_vm1, %v14808_v24, %v14807_v45  ;;  %v13381_v21 = vpack.c.bf16 %v2378_v11, %v2346_v31  ;;  %v2348_v13 = vsel %vm2321_vm1, %v14810_v35, %v14809_v47  ;;  %v14811_v16 = vmov %v14810_v35  ;;  %10837 = vmatprep.subr.bf16.mxu0 %v12093_v53 }
 0x1d1   :  { %v13383_v55 = vpack.c.bf16 %v2379_v56, %v2347_v46  ;;  %v2380_v54 = vsel %vm2321_vm1, %v14812_v63, %v14811_v16  ;;  %v2349_v31 = vsel %vm2321_vm1, %v14813_v40, %v2316_v7  ;;  %v14814_v29 = vmov %v14813_v40  ;;  %v12087_v63 = vld [vmem:[#allocation9 + $0x150] sm:$0xff]   ;;  %11078 = vmatpush3.bf16.msra.mxu1 %v12086_v4  ;;  %v12090_v4 = vld [vmem:[#allocation9 + $0x168] sm:$0xff]  }
 0x1d2   :  { %v13397_v15 = vpack.c.bf16 %v2380_v54, %v2348_v13  ;;  %v2381_v12 = vsel %vm2321_vm1, %v2316_v7, %v14814_v29  ;;  %v14815_v14 = vrot.slane %v13108_v30, 1  ;;  %v14816_v62 = vrot.slane %v13088_v10, 1  ;;  %11079 = vmatprep.subr.bf16.mxu1 %v12087_v63  ;;  %10838 = vmatpush3.bf16.msra.mxu0 %v12093_v53  ;;  %v12098_v29 = vld [vmem:[#allocation9 + $0xa8] sm:$0xff]   ;;  %v13506_v53 = vld [vmem:[#allocation9 + $0x1c0] sm:$0xff]  }
 0x1d3   :  { %v13416_v38 = vpack.c.bf16 %v2381_v12, %v2349_v31  ;;  %v2351_v45 = vsel %vm2321_vm1, %v2286_v61, %v2318_v57  ;;  %v2383_v24 = vsel %vm2321_vm1, %v2318_v57, %v2286_v61  ;;  %v4475_v56 = vrot.slane %v13205_v43, 1  ;;  %10776 = vmatmul.mubr.msk.bf16.gmra.mrb[68].mxu0 %vm13264_vm4, %v12484_v18  ;;  %11016 = vmatmul.mubr.msk.bf16.gmra.mrb[36].mxu1 %vm13264_vm4, %v12486_v19  ;;  %v12092_v12 = vld [vmem:[#allocation9 + $0x170] sm:$0xff]  }
 0x1d4   :  { %v2350_v11 = vsel %vm2321_vm1, %v14816_v62, %v14815_v14  ;;  %v14817_v46 = vmov %v14816_v62  ;;  %v14818_v36 = vmov %v14815_v14  ;;  %v13437_v30 = vpack.c.bf16 %v2383_v24, %v2351_v45  ;;  %10779 = vmatprep.mubr.msk.bf16.mxu0 %vm13264_vm4, %v12486_v19  ;;  %11019 = vmatprep.mubr.msk.bf16.mxu1 %vm13264_vm4, %v12540_v5  ;;  %v12099_v14 = vld [vmem:[#allocation9 + $0xb0] sm:$0xff]   ;;  %v12097_v62 = vld [vmem:[#allocation9 + $0x178] sm:$0xff]   ;;  %v14829_v45 = vld [vmem:[#allocation37_spill] sm:$0xff] }
 0x1d5   :  { %v2382_v7 = vsel %vm2321_vm1, %v14818_v36, %v14817_v46  ;;  %v14821_v10 = vrot.slane %v13159_v32, 1  ;;  %v14822_v47 = vrot.slane %v13142_v20, 1  ;;  %v2353_v13 = vsel %vm2321_vm1, %v2288_v42, %v2320_v59  ;;  %v12094_v20 = vld [vmem:[#allocation9 + $0x90] sm:$0xff]   ;;  %11080 = vmatpush3.bf16.msra.mxu1 %v12087_v63  ;;  %v13512_v46 = vld [vmem:[#allocation9 + $0x100] sm:$0xff]  }
 0x1d6   :  { %v13435_v39 = vpack.c.bf16 %v2382_v7, %v2350_v11  ;;  %14820 = vst [vmem:[#allocation81_spill] sm:$0xff] %v13437_v30  ;;  %v2385_v16 = vsel %vm2321_vm1, %v2320_v59, %v2288_v42  ;;  %v4539_v32 = vsel %vm2321_vm1, %v4475_v56, %v4507_v2  ;;  %v4571_v40 = vsel %vm2321_vm1, %v4507_v2, %v4475_v56  ;;  %v12088_v42 = vld [vmem:[#allocation9 + $0x158] sm:$0xff]   ;;  %v12089_v2 = vld [vmem:[#allocation9 + $0x160] sm:$0xff]   ;;  %v14828_v36 = vld [vmem:[#allocation67_spill] sm:$0xff] }
 0x1d7   :  { %v2352_v57 = vsel %vm2321_vm1, %v14822_v47, %v14821_v10  ;;  %v14823_v43 = vmov %v14822_v47  ;;  %v14824_v61 = vmov %v14821_v10  ;;  %v13462_v54 = vpack.c.bf16 %v2385_v16, %v2353_v13  ;;  %10839 = vmatprep.subr.bf16.mxu0 %v12094_v20  ;;  %11081 = vmatprep.subr.bf16.mxu1 %v12088_v42  ;;  %v12096_v59 = vld [vmem:[#allocation9 + $0xa0] sm:$0xff]   ;;  %v12100_v11 = vld [vmem:[#allocation9 + $0xb8] sm:$0xff]   ;;  %v14830_v10 = vld [vmem:[#allocation35_spill] sm:$0xff] }
 0x1d8   :  { %14819 = vst [vmem:[#allocation80_spill] sm:$0xff] %v13435_v39  ;;  %v2384_v35 = vsel %vm2321_vm1, %v14824_v61, %v14823_v43  ;;  %v13468_v31 = vpack.c.bf16 %v4571_v40, %v4539_v32  ;;  %10840 = vmatpush3.bf16.msra.mxu0 %v12094_v20  ;;  %v722_v7 = vmul.f32 %v14828_v36, %v12741_v33  ;;  %v14831_v33 = vld [vmem:[#allocation40_spill] sm:$0xff]  ;;  %v14833_v13 = vld [vmem:[#allocation45_spill] sm:$0xff] }
 0x1d9   :  { %v13460_v3 = vpack.c.bf16 %v2384_v35, %v2352_v57  ;;  %14826 = vst [vmem:[#allocation83_spill] sm:$0xff] %v13462_v54  ;;  %10841 = vmatprep.subr.bf16.mxu0 %v12095_v34  ;;  %11082 = vmatpush3.bf16.msra.mxu1 %v12088_v42  ;;  %v721_v24 = vmul.f32 %v14828_v36, %v14829_v45  ;;  %v14832_v35 = vld [vmem:[#allocation41_spill] sm:$0xff]  ;;  %v14835_v40 = vld [vmem:[#allocation48_spill] sm:$0xff]  ;;  %v14836_v42 = vld [vmem:[#allocation54_spill] sm:$0xff]  ;;  %v964_v36 = vadd.s32 8, %v12395_v8 }
 0x1da   :  { %14827 = vst [vmem:[#allocation84_spill] sm:$0xff] %v13468_v31  ;;  %11083 = vmatprep.subr.bf16.mxu1 %v12089_v2  ;;  %v791_v56 = vadd.f32 %v13070_v60, %v722_v7  ;;  %v14834_v20 = vld [vmem:[#allocation49_spill] sm:$0xff]  ;;  %v14846_v7 = vmov 0.0   ;;  %v14865_v8 = vld [vmem:[#allocation79_spill] sm:$0xff] }
 0x1db   :  { %14825 = vst [vmem:[#allocation82_spill] sm:$0xff] %v13460_v3  ;;  %10780 = vmatmul.mubr.msk.bf16.gmra.mrb[72].mxu0 %vm13264_vm4, %v12540_v5  ;;  %11020 = vmatmul.mubr.msk.bf16.gmra.mrb[40].mxu1 %vm13264_vm4, %v12542_v6  ;;  %v790_v47 = vadd.f32 %v13070_v60, %v721_v24  ;;  %v2257_v45 = vrot.slane %v14846_v7, 1  ;;  %vm10154_vm5 = vcmp.ne.s32.totalorder %v964_v36, 15  ;;  %v12104_v36 = vld [vmem:[#allocation9 + $0x1d8] sm:$0xff]   ;;  %v12137_v7 = vld [vmem:[#allocation9 + $0x110] sm:$0xff]  }
 0x1dc   :  { %10842 = vmatpush3.bf16.msra.mxu0 %v12095_v34  ;;  %10783 = vmatprep.mubr.msk.bf16.mxu0 %vm13264_vm4, %v12542_v6  ;;  %v13542_v57 = vmax.f32 %v791_v56, 0.0  ;;  %v14837_v34 = vld [vmem:[#allocation53_spill] sm:$0xff]  ;;  %vm13667_vm6 = vmpackc.low %vm10154_vm5, %vm12269_vm3 }
 0x1dd   :  { %10843 = vmatprep.subr.bf16.mxu0 %v12096_v59  ;;  %11023 = vmatprep.mubr.msk.bf16.mxu1 %vm13264_vm4, %v12596_v51  ;;  %v13544_v43 = vmax.f32 %v790_v47, 0.0  ;;  %v13664_v24 = vpack.c.bf16 %v2257_v45, %v2257_v45  ;;  %v14849_v47 = vld [vmem:[#allocation19_spill] sm:$0xff]  ;;  %v12105_v45 = vld [vmem:[#allocation9 + $0x1e0] sm:$0xff]  }
 0x1de   :  { %11084 = vmatpush3.bf16.msra.mxu1 %v12089_v2  ;;  %v3721_v61 = vrot.slane %v13542_v57, 7  ;;  %v14838_v2 = vld [vmem:[#allocation59_spill] sm:$0xff] }
 0x1df   :  { %11085 = vmatprep.subr.bf16.mxu1 %v12090_v4  ;;  %v3689_v60 = vrot.slane %v13544_v43, 7 }
 0x1e0   :  { %10844 = vmatpush3.bf16.msra.mxu0 %v12096_v59  ;;  %v14839_v59 = vld [vmem:[#allocation58_spill] sm:$0xff] }
 0x1e1   :  { %10845 = vmatprep.subr.bf16.mxu0 %v12098_v29  ;;  %v3753_v16 = vsel %vm1547_vm0, %v3689_v60, %v3721_v61  ;;  %v3785_v63 = vsel %vm1547_vm0, %v3721_v61, %v3689_v60  ;;  %v12102_v61 = vld [vmem:[#allocation9 + $0x1c8] sm:$0xff]  }
 0x1e2   :  { %11086 = vmatpush3.bf16.msra.mxu1 %v12090_v4  ;;  %v13564_v32 = vpack.c.bf16 %v3753_v16, %v3785_v63  ;;  %v14840_v4 = vld [vmem:[#allocation64_spill] sm:$0xff]  ;;  %v14850_v60 = vld [vmem:[#allocation22_spill] sm:$0xff]  ;;  %v14851_v16 = vld [vmem:[#allocation25_spill] sm:$0xff] }
 0x1e3   :  { %11087 = vmatprep.subr.bf16.mxu1 %v12092_v12  ;;  %10784 = vmatmul.mubr.msk.bf16.gmra.mrb[76].mxu0 %vm13264_vm4, %v12596_v51  ;;  %v12103_v63 = vld [vmem:[#allocation9 + $0x1d0] sm:$0xff]  }
 0x1e4   :  { %10846 = vmatpush3.bf16.msra.mxu0 %v12098_v29  ;;  %10787 = vmatprep.mubr.msk.bf16.mxu0 %vm13264_vm4, %v12598_v52  ;;  %v14841_v29 = vld [vmem:[#allocation63_spill] sm:$0xff] }
 0x1e5   :  { %10847 = vmatprep.subr.bf16.mxu0 %v12099_v14  ;;  %11024 = vmatmul.mubr.msk.bf16.gmra.mrb[44].mxu1 %vm13264_vm4, %v12598_v52 }
 0x1e6   :  { %11027 = vmatprep.mubr.msk.bf16.mxu1 %vm13264_vm4, %v12650_v50  ;;  %11088 = vmatpush3.bf16.msra.mxu1 %v12092_v12  ;;  %v14842_v12 = vld [vmem:[#allocation70_spill] sm:$0xff] }
 0x1e7   :  { %11089 = vmatprep.subr.bf16.mxu1 %v12097_v62 }
 0x1e8   :  { %10848 = vmatpush3.bf16.msra.mxu0 %v12099_v14  ;;  %v14843_v14 = vld [vmem:[#allocation69_spill] sm:$0xff] }
 0x1e9   :  { %10849 = vmatprep.subr.bf16.mxu0 %v12100_v11 }
 0x1ea   :  { %11090 = vmatpush3.bf16.msra.mxu1 %v12097_v62  ;;  %v14844_v62 = vld [vmem:[#allocation75_spill] sm:$0xff] }
 0x1eb   :  { %11155 = vmatprep.subr.bf16.mxu1 %v13506_v53  ;;  %10788 = vmatmul.mubr.msk.bf16.gmra.mrb[80].mxu0 %vm13264_vm4, %v12650_v50 }
 0x1ec   :  { %10850 = vmatpush3.bf16.msra.mxu0 %v12100_v11  ;;  %10791 = vmatprep.mubr.msk.bf16.mxu0 %vm13264_vm4, %v12652_v58  ;;  %v14845_v11 = vld [vmem:[#allocation74_spill] sm:$0xff] }
 0x1ed   :  { %10915 = vmatprep.subr.bf16.mxu0 %v13512_v46  ;;  %11028 = vmatmul.mubr.msk.bf16.gmra.mrb[48].mxu1 %vm13264_vm4, %v12652_v58 }
 0x1ee   :  { %11031 = vmatprep.mubr.msk.bf16.mxu1 %vm13264_vm4, %v12706_v48 }
 0x1f3   :  { %10792 = vmatmul.mubr.msk.bf16.gmra.mrb[84].mxu0 %vm13264_vm4, %v12706_v48 }
 0x1f4   :  { %10795 = vmatprep.mubr.msk.bf16.mxu0 %vm13264_vm4, %v14830_v10 }
 0x1f5   :  { %11032 = vmatmul.mubr.msk.bf16.gmra.mrb[52].mxu1 %vm13264_vm4, %v14830_v10 }
 0x1f6   :  { %11035 = vmatprep.mubr.msk.bf16.mxu1 %vm13264_vm4, %v14831_v33 }
 0x1fb   :  { %10796 = vmatmul.mubr.msk.bf16.gmra.mrb[88].mxu0 %vm13264_vm4, %v14831_v33 }
 0x1fc   :  { %10799 = vmatprep.mubr.msk.bf16.mxu0 %vm13264_vm4, %v14832_v35 }
 0x1fd   :  { %11036 = vmatmul.mubr.msk.bf16.gmra.mrb[56].mxu1 %vm13264_vm4, %v14832_v35 }
 0x1fe   :  { %11039 = vmatprep.mubr.msk.bf16.mxu1 %vm13264_vm4, %v14833_v13 }
 0x203   :  { %10800 = vmatmul.mubr.msk.bf16.gmra.mrb[92].mxu0 %vm13264_vm4, %v14833_v13 }
 0x204   :  { %10803 = vmatprep.mubr.msk.bf16.mxu0 %vm13264_vm4, %v12918_v41 }
 0x205   :  { %11040 = vmatmul.mubr.msk.bf16.gmra.mrb[60].mxu1 %vm13264_vm4, %v13564_v32 }
 0x206   :  { %11043 = vmatprep.mubr.msk.bf16.mxu1 %vm13264_vm4, %v14834_v20 }
 0x20b   :  { %10804 = vmatmul.mubr.msk.bf16.gmra.mrb[96].mxu0 %vm13264_vm4, %v14834_v20  ;;  %v12136_v20 = vld [vmem:[#allocation9 + $0x108] sm:$0xff]  }
 0x20c   :  { %10807 = vmatprep.mubr.msk.bf16.mxu0 %vm13264_vm4, %v14835_v40 }
 0x20d   :  { %11044 = vmatmul.mubr.msk.bf16.gmra.mrb[0].mxu1 %vm13264_vm4, %v14835_v40 }
 0x20e   :  { %11047 = vmatprep.mubr.msk.bf16.mxu1 %vm13264_vm4, %v14836_v42 }
 0x213   :  { %10808 = vmatmul.mubr.msk.bf16.gmra.mrb[100].mxu0 %vm13264_vm4, %v14836_v42 }
 0x214   :  { %10811 = vmatprep.mubr.msk.bf16.mxu0 %vm13264_vm4, %v14837_v34 }
 0x215   :  { %11048 = vmatmul.mubr.msk.bf16.gmra.mrb[4].mxu1 %vm13264_vm4, %v14837_v34 }
 0x216   :  { %11051 = vmatprep.mubr.msk.bf16.mxu1 %vm13264_vm4, %v14838_v2 }
 0x21b   :  { %10812 = vmatmul.mubr.msk.bf16.gmra.mrb[104].mxu0 %vm13264_vm4, %v14838_v2 }
 0x21c   :  { %10815 = vmatprep.mubr.msk.bf16.mxu0 %vm13264_vm4, %v14839_v59 }
 0x21d   :  { %11052 = vmatmul.mubr.msk.bf16.gmra.mrb[8].mxu1 %vm13264_vm4, %v14839_v59 }
 0x21e   :  { %11055 = vmatprep.mubr.msk.bf16.mxu1 %vm13264_vm4, %v14840_v4 }
 0x223   :  { %10816 = vmatmul.mubr.msk.bf16.gmra.mrb[108].mxu0 %vm13264_vm4, %v14840_v4 }
 0x224   :  { %10819 = vmatprep.mubr.msk.bf16.mxu0 %vm13264_vm4, %v14841_v29 }
 0x225   :  { %11056 = vmatmul.mubr.msk.bf16.gmra.mrb[12].mxu1 %vm13264_vm4, %v14841_v29 }
 0x226   :  { %11059 = vmatprep.mubr.msk.bf16.mxu1 %vm13264_vm4, %v14842_v12 }
 0x22b   :  { %10820 = vmatmul.mubr.msk.bf16.gmra.mrb[112].mxu0 %vm13264_vm4, %v14842_v12 }
 0x22c   :  { %10823 = vmatprep.mubr.msk.bf16.mxu0 %vm13264_vm4, %v14843_v14 }
 0x22d   :  { %11060 = vmatmul.mubr.msk.bf16.gmra.mrb[16].mxu1 %vm13264_vm4, %v14843_v14 }
 0x22e   :  { %11063 = vmatprep.mubr.msk.bf16.mxu1 %vm13264_vm4, %v14844_v62 }
 0x233   :  { %10824 = vmatmul.mubr.msk.bf16.gmra.mrb[116].mxu0 %vm13264_vm4, %v14844_v62 }
 0x234   :  { %10827 = vmatprep.mubr.msk.bf16.mxu0 %vm13264_vm4, %v14845_v11 }
 0x235   :  { %11064 = vmatmul.mubr.msk.bf16.gmra.mrb[20].mxu1 %vm13264_vm4, %v14845_v11 }
 0x236   :  { %11067 = vmatprep.mubr.msk.bf16.mxu1 %vm13264_vm4, %v13217_v25 }
 0x23b   :  { %10828 = vmatmul.mubr.msk.bf16.gmra.mrb[120].mxu0 %vm13264_vm4, %v13217_v25 }
 0x23c   :  { %10831 = vmatprep.mubr.msk.bf16.mxu0 %vm13264_vm4, %v13212_v9 }
 0x23d   :  { %11068 = vmatmul.mubr.msk.bf16.gmra.mrb[24].mxu1 %vm13264_vm4, %v13212_v9 }
 0x23e   :  { %11071 = vmatprep.mubr.msk.bf16.mxu1 %vm13264_vm4, %v13298_v28 }
 0x243   :  { %10832 = vmatmul.mubr.msk.bf16.gmra.mrb[124].mxu0 %vm13264_vm4, %v13298_v28 }
 0x244   :  { %10851 = vmatprep.mubr.msk.bf16.mxu0 %vm13667_vm6, %v13664_v24 }
 0x245   :  { %11072 = vmatmul.mubr.msk.bf16.gmra.mrb[28].mxu1 %vm13264_vm4, %v13291_v22 }
 0x246   :  { %11091 = vmatprep.mubr.msk.bf16.mxu1 %vm13667_vm6, %v14849_v47 }
 0x24b   :  { %10852 = vmatmul.mubr.msk.bf16.vlgmr.msra.gmra.mrb[64].mxu0 %vm13667_vm6, %v14849_v47  ;;  %v12138_v47 = vld [vmem:[#allocation9 + $0x118] sm:$0xff]  }
 0x24c   :  { %10855 = vmatprep.mubr.msk.bf16.mxu0 %vm13667_vm6, %v14850_v60  ;;  %10916 = vmatpush3.bf16.msra.mxu0 %v13512_v46  ;;  %v14853_v46 = vld [vmem:[#allocation29_spill] sm:$0xff] }
 0x24d   :  { %11092 = vmatmul.mubr.msk.bf16.vlgmr.msra.gmra.mrb[32].mxu1 %vm13667_vm6, %v14850_v60  ;;  %10917 = vmatprep.subr.bf16.mxu0 %v12136_v20 }
 0x24e   :  { %11156 = vmatpush3.bf16.msra.mxu1 %v13506_v53  ;;  %11095 = vmatprep.mubr.msk.bf16.mxu1 %vm13667_vm6, %v14851_v16  ;;  %v14852_v53 = vld [vmem:[#allocation28_spill] sm:$0xff] }
 0x24f   :  { %11157 = vmatprep.subr.bf16.mxu1 %v12102_v61 }
 0x250   :  { %10918 = vmatpush3.bf16.msra.mxu0 %v12136_v20  ;;  %v12139_v20 = vld [vmem:[#allocation9 + $0x120] sm:$0xff]  }
 0x251   :  { %10919 = vmatprep.subr.bf16.mxu0 %v12137_v7 }
 0x252   :  { %11158 = vmatpush3.bf16.msra.mxu1 %v12102_v61  ;;  %v12106_v61 = vld [vmem:[#allocation9 + $0x1e8] sm:$0xff]  }
 0x253   :  { %11159 = vmatprep.subr.bf16.mxu1 %v12103_v63  ;;  %10856 = vmatmul.mubr.msk.bf16.gmra.mrb[68].mxu0 %vm13667_vm6, %v14851_v16 }
 0x254   :  { %10859 = vmatprep.mubr.msk.bf16.mxu0 %vm13667_vm6, %v14852_v53  ;;  %10920 = vmatpush3.bf16.msra.mxu0 %v12137_v7  ;;  %v12140_v7 = vld [vmem:[#allocation9 + $0x128] sm:$0xff]  }
 0x255   :  { %11096 = vmatmul.mubr.msk.bf16.gmra.mrb[36].mxu1 %vm13667_vm6, %v14852_v53  ;;  %10921 = vmatprep.subr.bf16.mxu0 %v12138_v47  ;;  %v14854_v53 = vld [vmem:[#allocation32_spill] sm:$0xff] }
 0x256   :  { %11099 = vmatprep.mubr.msk.bf16.mxu1 %vm13667_vm6, %v14853_v46  ;;  %11160 = vmatpush3.bf16.msra.mxu1 %v12103_v63  ;;  %v14855_v63 = vld [vmem:[#allocation36_spill] sm:$0xff] }
 0x257   :  { %11161 = vmatprep.subr.bf16.mxu1 %v12104_v36 }
 0x258   :  { %10922 = vmatpush3.bf16.msra.mxu0 %v12138_v47  ;;  %v12108_v47 = vld [vmem:[#allocation9 + $0x1f8] sm:$0xff]  }
 0x259   :  { %10923 = vmatprep.subr.bf16.mxu0 %v12139_v20 }
 0x25a   :  { %11162 = vmatpush3.bf16.msra.mxu1 %v12104_v36  ;;  %v12107_v36 = vld [vmem:[#allocation9 + $0x1f0] sm:$0xff]  }
 0x25b   :  { %11163 = vmatprep.subr.bf16.mxu1 %v12105_v45  ;;  %10860 = vmatmul.mubr.msk.bf16.gmra.mrb[72].mxu0 %vm13667_vm6, %v14853_v46  ;;  %v12141_v46 = vld [vmem:[#allocation9 + $0x130] sm:$0xff]  }
 0x25c   :  { %10863 = vmatprep.mubr.msk.bf16.mxu0 %vm13667_vm6, %v14854_v53  ;;  %10924 = vmatpush3.bf16.msra.mxu0 %v12139_v20  ;;  %v12142_v20 = vld [vmem:[#allocation9 + $0x138] sm:$0xff]  }
 0x25d   :  { %11100 = vmatmul.mubr.msk.bf16.gmra.mrb[40].mxu1 %vm13667_vm6, %v14854_v53  ;;  %10925 = vmatprep.subr.bf16.mxu0 %v12140_v7  ;;  %v14856_v53 = vld [vmem:[#allocation42_spill] sm:$0xff] }
 0x25e   :  { %11103 = vmatprep.mubr.msk.bf16.mxu1 %vm13667_vm6, %v14855_v63  ;;  %11164 = vmatpush3.bf16.msra.mxu1 %v12105_v45  ;;  %v14857_v45 = vld [vmem:[#allocation43_spill] sm:$0xff] }
 0x25f   :  { %11165 = vmatprep.subr.bf16.mxu1 %v12106_v61 }
 0x260   :  { %10926 = vmatpush3.bf16.msra.mxu0 %v12140_v7  ;;  %v14858_v7 = vld [vmem:[#allocation46_spill] sm:$0xff] }
 0x261   :  { %10927 = vmatprep.subr.bf16.mxu0 %v12141_v46 }
 0x262   :  { %11166 = vmatpush3.bf16.msra.mxu1 %v12106_v61  ;;  %v12109_v61 = vld [vmem:[#allocation9 + $0x180] sm:$0xff]  }
 0x263   :  { %11167 = vmatprep.subr.bf16.mxu1 %v12107_v36  ;;  %10864 = vmatmul.mubr.msk.bf16.gmra.mrb[76].mxu0 %vm13667_vm6, %v14855_v63 }
 0x264   :  { %10867 = vmatprep.mubr.msk.bf16.mxu0 %vm13667_vm6, %v14856_v53  ;;  %10928 = vmatpush3.bf16.msra.mxu0 %v12141_v46  ;;  %v14860_v46 = vld [vmem:[#allocation55_spill] sm:$0xff] }
 0x265   :  { %11104 = vmatmul.mubr.msk.bf16.gmra.mrb[44].mxu1 %vm13667_vm6, %v14856_v53  ;;  %10929 = vmatprep.subr.bf16.mxu0 %v12142_v20 }
 0x266   :  { %11107 = vmatprep.mubr.msk.bf16.mxu1 %vm13667_vm6, %v14857_v45  ;;  %11168 = vmatpush3.bf16.msra.mxu1 %v12107_v36  ;;  %v14859_v36 = vld [vmem:[#allocation50_spill] sm:$0xff] }
 0x267   :  { %11169 = vmatprep.subr.bf16.mxu1 %v12108_v47 }
 0x268   :  { %10930 = vmatpush3.bf16.msra.mxu0 %v12142_v20  ;;  %v4491_v20 = vrot.slane %v13542_v57, 1 }
 0x26a   :  { %11170 = vmatpush3.bf16.msra.mxu1 %v12108_v47  ;;  %v14861_v47 = vld [vmem:[#allocation60_spill] sm:$0xff] }
 0x26b   :  { %11235 = vmatprep.subr.bf16.mxu1 %v12109_v61  ;;  %10868 = vmatmul.mubr.msk.bf16.gmra.mrb[80].mxu0 %vm13667_vm6, %v14857_v45 }
 0x26c   :  { %10871 = vmatprep.mubr.msk.bf16.mxu0 %vm13667_vm6, %v14858_v7 }
 0x26d   :  { %11108 = vmatmul.mubr.msk.bf16.gmra.mrb[48].mxu1 %vm13667_vm6, %v14858_v7  ;;  %v14862_v7 = vld [vmem:[#allocation65_spill] sm:$0xff] }
 0x26e   :  { %11111 = vmatprep.mubr.msk.bf16.mxu1 %vm13667_vm6, %v14859_v36 }
 0x273   :  { %10872 = vmatmul.mubr.msk.bf16.gmra.mrb[84].mxu0 %vm13667_vm6, %v14859_v36  ;;  %v14863_v36 = vld [vmem:[#allocation71_spill] sm:$0xff] }
 0x274   :  { %10875 = vmatprep.mubr.msk.bf16.mxu0 %vm13667_vm6, %v14860_v46 }
 0x275   :  { %11112 = vmatmul.mubr.msk.bf16.gmra.mrb[52].mxu1 %vm13667_vm6, %v14860_v46  ;;  %v4459_v46 = vrot.slane %v13544_v43, 1 }
 0x276   :  { %11115 = vmatprep.mubr.msk.bf16.mxu1 %vm13667_vm6, %v14861_v47 }
 0x277   :  { %v4523_v45 = vsel %vm2321_vm1, %v4459_v46, %v4491_v20 }
 0x27b   :  { %10876 = vmatmul.mubr.msk.bf16.gmra.mrb[88].mxu0 %vm13667_vm6, %v14861_v47  ;;  %v4555_v47 = vsel %vm2321_vm1, %v4491_v20, %v4459_v46  ;;  %v12110_v46 = vld [vmem:[#allocation9 + $0x188] sm:$0xff]   ;;  %v14869_v20 = vld [vmem:[#allocation20_spill] sm:$0xff] }
 0x27c   :  { %10879 = vmatprep.mubr.msk.bf16.mxu0 %vm13667_vm6, %v14862_v7  ;;  %v13775_v53 = vpack.c.bf16 %v4555_v47, %v4523_v45  ;;  %v14866_v45 = vld [vmem:[#allocation18_spill] sm:$0xff]  ;;  %v14868_v47 = vld [vmem:[#allocation21_spill] sm:$0xff] }
 0x27d   :  { %11116 = vmatmul.mubr.msk.bf16.gmra.mrb[56].mxu1 %vm13667_vm6, %v14862_v7  ;;  %v14864_v7 = vld [vmem:[#allocation78_spill] sm:$0xff] }
 0x27e   :  { %11119 = vmatprep.mubr.msk.bf16.mxu1 %vm13667_vm6, %v14863_v36 }
 0x283   :  { %10880 = vmatmul.mubr.msk.bf16.gmra.mrb[92].mxu0 %vm13667_vm6, %v14863_v36 }
 0x284   :  { %10883 = vmatprep.mubr.msk.bf16.mxu0 %vm13667_vm6, %v13664_v24 }
 0x285   :  { %11120 = vmatmul.mubr.msk.bf16.gmra.mrb[60].mxu1 %vm13667_vm6, %v13775_v53 }
 0x286   :  { %11123 = vmatprep.mubr.msk.bf16.mxu1 %vm13667_vm6, %v14864_v7 }
 0x28b   :  { %10884 = vmatmul.mubr.msk.bf16.gmra.mrb[96].mxu0 %vm13667_vm6, %v14864_v7  ;;  %v14867_v7 = vld [vmem:[#allocation17_spill] sm:$0xff] }
 0x28c   :  { %10887 = vmatprep.mubr.msk.bf16.mxu0 %vm13667_vm6, %v14865_v8 }
 0x28d   :  { %11124 = vmatmul.mubr.msk.bf16.gmra.mrb[0].mxu1 %vm13667_vm6, %v14865_v8 }
 0x28e   :  { %11127 = vmatprep.mubr.msk.bf16.mxu1 %vm13667_vm6, %v13300_v0 }
 0x293   :  { %10888 = vmatmul.mubr.msk.bf16.gmra.mrb[100].mxu0 %vm13667_vm6, %v13300_v0 }
 0x294   :  { %10891 = vmatprep.mubr.msk.bf16.mxu0 %vm13667_vm6, %v13312_v23 }
 0x295   :  { %11128 = vmatmul.mubr.msk.bf16.gmra.mrb[4].mxu1 %vm13667_vm6, %v13312_v23 }
 0x296   :  { %11131 = vmatprep.mubr.msk.bf16.mxu1 %vm13667_vm6, %v13326_v26 }
 0x29b   :  { %10892 = vmatmul.mubr.msk.bf16.gmra.mrb[104].mxu0 %vm13667_vm6, %v13326_v26 }
 0x29c   :  { %10895 = vmatprep.mubr.msk.bf16.mxu0 %vm13667_vm6, %v13347_v49 }
 0x29d   :  { %11132 = vmatmul.mubr.msk.bf16.gmra.mrb[8].mxu1 %vm13667_vm6, %v13347_v49 }
 0x29e   :  { %11135 = vmatprep.mubr.msk.bf16.mxu1 %vm13667_vm6, %v13361_v17 }
 0x2a3   :  { %10896 = vmatmul.mubr.msk.bf16.gmra.mrb[108].mxu0 %vm13667_vm6, %v13361_v17 }
 0x2a4   :  { %10899 = vmatprep.mubr.msk.bf16.mxu0 %vm13667_vm6, %v13381_v21 }
 0x2a5   :  { %11136 = vmatmul.mubr.msk.bf16.gmra.mrb[12].mxu1 %vm13667_vm6, %v13381_v21 }
 0x2a6   :  { %11139 = vmatprep.mubr.msk.bf16.mxu1 %vm13667_vm6, %v13383_v55 }
 0x2ab   :  { %10900 = vmatmul.mubr.msk.bf16.gmra.mrb[112].mxu0 %vm13667_vm6, %v13383_v55 }
 0x2ac   :  { %10903 = vmatprep.mubr.msk.bf16.mxu0 %vm13667_vm6, %v13397_v15 }
 0x2ad   :  { %11140 = vmatmul.mubr.msk.bf16.gmra.mrb[16].mxu1 %vm13667_vm6, %v13397_v15 }
 0x2ae   :  { %11143 = vmatprep.mubr.msk.bf16.mxu1 %vm13667_vm6, %v13416_v38 }
 0x2b3   :  { %10904 = vmatmul.mubr.msk.bf16.gmra.mrb[116].mxu0 %vm13667_vm6, %v13416_v38 }
 0x2b4   :  { %10907 = vmatprep.mubr.msk.bf16.mxu0 %vm13667_vm6, %v13435_v39 }
 0x2b5   :  { %11144 = vmatmul.mubr.msk.bf16.gmra.mrb[20].mxu1 %vm13667_vm6, %v13435_v39  ;;  %v14892_v39 = vld [vmem:[#allocation72_spill] sm:$0xff] }
 0x2b6   :  { %11147 = vmatprep.mubr.msk.bf16.mxu1 %vm13667_vm6, %v13437_v30 }
 0x2bb   :  { %10908 = vmatmul.mubr.msk.bf16.gmra.mrb[120].mxu0 %vm13667_vm6, %v13437_v30  ;;  %v14887_v30 = vld [vmem:[#allocation62_spill] sm:$0xff] }
 0x2bc   :  { %10911 = vmatprep.mubr.msk.bf16.mxu0 %vm13667_vm6, %v13460_v3 }
 0x2bd   :  { %11148 = vmatmul.mubr.msk.bf16.gmra.mrb[24].mxu1 %vm13667_vm6, %v13460_v3  ;;  %v14871_v3 = vld [vmem:[#allocation23_spill] sm:$0xff] }
 0x2be   :  { %11151 = vmatprep.mubr.msk.bf16.mxu1 %vm13667_vm6, %v13462_v54 }
 0x2c3   :  { %10912 = vmatmul.mubr.msk.bf16.gmra.mrb[124].mxu0 %vm13667_vm6, %v13462_v54  ;;  %v12111_v54 = vld [vmem:[#allocation9 + $0x190] sm:$0xff]  }
 0x2c4   :  { %10931 = vmatprep.mubr.bf16.mxu0 %v14866_v45  ;;  %v12112_v45 = vld [vmem:[#allocation9 + $0x198] sm:$0xff]  }
 0x2c5   :  { %11152 = vmatmul.mubr.msk.bf16.gmra.mrb[28].mxu1 %vm13667_vm6, %v13468_v31  ;;  %v14870_v31 = vld [vmem:[#allocation24_spill] sm:$0xff] }
 0x2c6   :  { %11171 = vmatprep.mubr.bf16.mxu1 %v14867_v7 }
 0x2cb   :  { %10932 = vmatmul.mubr.bf16.vlgmr.msra.gmra.mrb[64].mxu0 %v14867_v7  ;;  %v12113_v7 = vld [vmem:[#allocation9 + $0x1a0] sm:$0xff]  }
 0x2cc   :  { %10935 = vmatprep.mubr.bf16.mxu0 %v14868_v47 }
 0x2cd   :  { %11172 = vmatmul.mubr.bf16.vlgmr.msra.gmra.mrb[32].mxu1 %v14868_v47  ;;  %v14872_v47 = vld [vmem:[#allocation27_spill] sm:$0xff] }
 0x2ce   :  { %11236 = vmatpush3.bf16.msra.mxu1 %v12109_v61  ;;  %11175 = vmatprep.mubr.bf16.mxu1 %v14869_v20  ;;  %v12114_v61 = vld [vmem:[#allocation9 + $0x1a8] sm:$0xff]  }
 0x2cf   :  { %11237 = vmatprep.subr.bf16.mxu1 %v12110_v46 }
 0x2d2   :  { %11238 = vmatpush3.bf16.msra.mxu1 %v12110_v46  ;;  %v14873_v46 = vld [vmem:[#allocation26_spill] sm:$0xff] }
 0x2d3   :  { %11239 = vmatprep.subr.bf16.mxu1 %v12111_v54  ;;  %10936 = vmatmul.mubr.bf16.gmra.mrb[68].mxu0 %v14869_v20  ;;  %v12115_v20 = vld [vmem:[#allocation9 + $0x1b0] sm:$0xff]  }
 0x2d4   :  { %10939 = vmatprep.mubr.bf16.mxu0 %v14870_v31 }
 0x2d5   :  { %11176 = vmatmul.mubr.bf16.gmra.mrb[36].mxu1 %v14870_v31  ;;  %v12116_v31 = vld [vmem:[#allocation9 + $0x1b8] sm:$0xff]  }
 0x2d6   :  { %11179 = vmatprep.mubr.bf16.mxu1 %v14871_v3  ;;  %11240 = vmatpush3.bf16.msra.mxu1 %v12111_v54  ;;  %v14874_v54 = vld [vmem:[#allocation31_spill] sm:$0xff] }
 0x2d7   :  { %11241 = vmatprep.subr.bf16.mxu1 %v12112_v45 }
 0x2da   :  { %11242 = vmatpush3.bf16.msra.mxu1 %v12112_v45  ;;  %v14875_v45 = vld [vmem:[#allocation30_spill] sm:$0xff] }
 0x2db   :  { %11243 = vmatprep.subr.bf16.mxu1 %v12113_v7  ;;  %10940 = vmatmul.mubr.bf16.gmra.mrb[72].mxu0 %v14871_v3  ;;  %v12117_v3 = vld [vmem:[#allocation9 + $0x200] sm:$0xff]  }
 0x2dc   :  { %10943 = vmatprep.mubr.bf16.mxu0 %v14872_v47 }
 0x2dd   :  { %11180 = vmatmul.mubr.bf16.gmra.mrb[40].mxu1 %v14872_v47  ;;  %v14878_v47 = vld [vmem:[#allocation39_spill] sm:$0xff] }
 0x2de   :  { %11183 = vmatprep.mubr.bf16.mxu1 %v14873_v46  ;;  %11244 = vmatpush3.bf16.msra.mxu1 %v12113_v7  ;;  %v14876_v7 = vld [vmem:[#allocation34_spill] sm:$0xff] }
 0x2df   :  { %11245 = vmatprep.subr.bf16.mxu1 %v12114_v61 }
 0x2e2   :  { %11246 = vmatpush3.bf16.msra.mxu1 %v12114_v61  ;;  %v14877_v61 = vld [vmem:[#allocation33_spill] sm:$0xff] }
 0x2e3   :  { %11247 = vmatprep.subr.bf16.mxu1 %v12115_v20  ;;  %10944 = vmatmul.mubr.bf16.gmra.mrb[76].mxu0 %v14873_v46  ;;  %v14879_v46 = vld [vmem:[#allocation38_spill] sm:$0xff] }
 0x2e4   :  { %10947 = vmatprep.mubr.bf16.mxu0 %v14874_v54 }
 0x2e5   :  { %11184 = vmatmul.mubr.bf16.gmra.mrb[44].mxu1 %v14874_v54  ;;  %v14881_v54 = vmov 0.0|0.0  }
 0x2e6   :  { %11187 = vmatprep.mubr.bf16.mxu1 %v14875_v45  ;;  %11248 = vmatpush3.bf16.msra.mxu1 %v12115_v20  ;;  %v3111_v20 = vpack.c.bf16 %v13542_v57, %v13544_v43  ;;  %v14888_v57 = vld [vmem:[#allocation61_spill] sm:$0xff]  ;;  %v14889_v43 = vld [vmem:[#allocation68_spill] sm:$0xff] }
 0x2e7   :  { %11249 = vmatprep.subr.bf16.mxu1 %v12116_v31 }
 0x2ea   :  { %11250 = vmatpush3.bf16.msra.mxu1 %v12116_v31  ;;  %v14880_v31 = vld [vmem:[#allocation44_spill] sm:$0xff] }
 0x2eb   :  { %11315 = vmatprep.subr.bf16.mxu1 %v12117_v3  ;;  %10948 = vmatmul.mubr.bf16.gmra.mrb[80].mxu0 %v14875_v45  ;;  %v14882_v45 = vld [vmem:[#allocation47_spill] sm:$0xff] }
 0x2ec   :  { %10951 = vmatprep.mubr.bf16.mxu0 %v14876_v7 }
 0x2ed   :  { %11188 = vmatmul.mubr.bf16.gmra.mrb[48].mxu1 %v14876_v7  ;;  %v14883_v7 = vld [vmem:[#allocation52_spill] sm:$0xff] }
 0x2ee   :  { %11191 = vmatprep.mubr.bf16.mxu1 %v14877_v61 }
 0x2f3   :  { %10952 = vmatmul.mubr.bf16.gmra.mrb[84].mxu0 %v14877_v61  ;;  %v14884_v61 = vld [vmem:[#allocation51_spill] sm:$0xff] }
 0x2f4   :  { %10955 = vmatprep.mubr.bf16.mxu0 %v14878_v47 }
 0x2f5   :  { %11192 = vmatmul.mubr.bf16.gmra.mrb[52].mxu1 %v14878_v47  ;;  %v14885_v47 = vld [vmem:[#allocation57_spill] sm:$0xff] }
 0x2f6   :  { %11195 = vmatprep.mubr.bf16.mxu1 %v14879_v46 }
 0x2fb   :  { %10956 = vmatmul.mubr.bf16.gmra.mrb[88].mxu0 %v14879_v46  ;;  %v14886_v46 = vld [vmem:[#allocation56_spill] sm:$0xff] }
 0x2fc   :  { %10959 = vmatprep.mubr.bf16.mxu0 %v14880_v31 }
 0x2fd   :  { %11196 = vmatmul.mubr.bf16.gmra.mrb[56].mxu1 %v14880_v31  ;;  %v14890_v31 = vld [vmem:[#allocation66_spill] sm:$0xff] }
 0x2fe   :  { %11199 = vmatprep.mubr.bf16.mxu1 %v3111_v20 }
 0x303   :  { %10960 = vmatmul.mubr.bf16.gmra.mrb[92].mxu0 %v3111_v20  ;;  %v14891_v20 = vld [vmem:[#allocation73_spill] sm:$0xff] }
 0x305   :  { %11200 = vmatmul.mubr.bf16.gmra.mrb[60].mxu1 %v14881_v54 }
 0x306   :  { %11203 = vmatprep.mubr.bf16.mxu1 %v14882_v45  ;;  %v14893_v45 = vld [vmem:[#allocation77_spill] sm:$0xff] }
 0x30d   :  { %11204 = vmatmul.mubr.bf16.gmra.mrb[0].mxu1 %v14883_v7  ;;  %v14894_v7 = vld [vmem:[#allocation76_spill] sm:$0xff] }
 0x30e   :  { %11207 = vmatprep.mubr.bf16.mxu1 %v14884_v61 }
 0x315   :  { %11208 = vmatmul.mubr.bf16.gmra.mrb[4].mxu1 %v14885_v47 }
 0x316   :  { %11211 = vmatprep.mubr.bf16.mxu1 %v14886_v46 }
 0x31d   :  { %11212 = vmatmul.mubr.bf16.gmra.mrb[8].mxu1 %v14887_v30  ;;  %v12118_v30 = vld [vmem:[#allocation9 + $0x208] sm:$0xff]  }
 0x31e   :  { %11215 = vmatprep.mubr.bf16.mxu1 %v14888_v57 }
 0x325   :  { %11216 = vmatmul.mubr.bf16.gmra.mrb[12].mxu1 %v14889_v43 }
 0x326   :  { %11219 = vmatprep.mubr.bf16.mxu1 %v14890_v31 }
 0x32d   :  { %11220 = vmatmul.mubr.bf16.gmra.mrb[16].mxu1 %v14891_v20 }
 0x32e   :  { %11223 = vmatprep.mubr.bf16.mxu1 %v14892_v39 }
 0x335   :  { %11224 = vmatmul.mubr.bf16.gmra.mrb[20].mxu1 %v14893_v45 }
 0x336   :  { %11227 = vmatprep.mubr.bf16.mxu1 %v14894_v7 }
 0x33d   :  { %11228 = vmatmul.mubr.bf16.gmra.mrb[24].mxu1 %v13253_v37  ;;  %v12119_v37 = vld [vmem:[#allocation9 + $0x210] sm:$0xff]  }
 0x33e   :  { %11231 = vmatprep.mubr.bf16.mxu1 %v13245_v27  ;;  %v12120_v27 = vld [vmem:[#allocation9 + $0x218] sm:$0xff]  }
 0x345   :  { %11232 = vmatmul.mubr.bf16.gmra.mrb[28].mxu1 %v14881_v54  ;;  %v12124_v54 = vld [vmem:[#allocation9 + $0x238] sm:$0xff]  }
 0x346   :  { %11251 = vmatprep.mubr.msk.bf16.mxu1 %vm13264_vm4, %v12437_v44  ;;  %v12121_v44 = vld [vmem:[#allocation9 + $0x220] sm:$0xff]  }
 0x34d   :  { %11252 = vmatmul.mubr.msk.bf16.vlgmr.msra.gmra.mrb[32].mxu1 %vm13264_vm4, %v12484_v18  ;;  %v12122_v18 = vld [vmem:[#allocation9 + $0x228] sm:$0xff]  }
 0x34e   :  { %11316 = vmatpush3.bf16.msra.mxu1 %v12117_v3  ;;  %11255 = vmatprep.mubr.msk.bf16.mxu1 %vm13264_vm4, %v12486_v19 }
 0x34f   :  { %11317 = vmatprep.subr.bf16.mxu1 %v12118_v30 }
 0x352   :  { %11318 = vmatpush3.bf16.msra.mxu1 %v12118_v30 }
 0x353   :  { %11319 = vmatprep.subr.bf16.mxu1 %v12119_v37 }
 0x355   :  { %11256 = vmatmul.mubr.msk.bf16.gmra.mrb[36].mxu1 %vm13264_vm4, %v12540_v5  ;;  %v12123_v5 = vld [vmem:[#allocation9 + $0x230] sm:$0xff]  }
 0x356   :  { %11259 = vmatprep.mubr.msk.bf16.mxu1 %vm13264_vm4, %v12542_v6  ;;  %11320 = vmatpush3.bf16.msra.mxu1 %v12119_v37 }
 0x357   :  { %11321 = vmatprep.subr.bf16.mxu1 %v12120_v27 }
 0x35a   :  { %11322 = vmatpush3.bf16.msra.mxu1 %v12120_v27 }
 0x35b   :  { %11323 = vmatprep.subr.bf16.mxu1 %v12121_v44 }
 0x35d   :  { %11260 = vmatmul.mubr.msk.bf16.gmra.mrb[40].mxu1 %vm13264_vm4, %v12596_v51 }
 0x35e   :  { %11263 = vmatprep.mubr.msk.bf16.mxu1 %vm13264_vm4, %v12598_v52  ;;  %11324 = vmatpush3.bf16.msra.mxu1 %v12121_v44  ;;  %v13948_v19 = vpop.f32.mrb[96].mxu0 }
 0x35f   :  { %11325 = vmatprep.subr.bf16.mxu1 %v12122_v18  ;;  %v13950_v6 = vpop.f32.mrb[97].mxu0 }
 0x360   :  { %v13952_v39 = vpop.f32.mrb[98].mxu0 }
 0x361   :  { %v13954_v3 = vpop.f32.mrb[99].mxu0 }
 0x362   :  { %11326 = vmatpush3.bf16.msra.mxu1 %v12122_v18 }
 0x363   :  { %11327 = vmatprep.subr.bf16.mxu1 %v12123_v5 }
 0x365   :  { %11264 = vmatmul.mubr.msk.bf16.gmra.mrb[44].mxu1 %vm13264_vm4, %v12650_v50 }
 0x366   :  { %11267 = vmatprep.mubr.msk.bf16.mxu1 %vm13264_vm4, %v12652_v58  ;;  %11328 = vmatpush3.bf16.msra.mxu1 %v12123_v5  ;;  %v13962_v51 = vpop.f32.mrb[100].mxu0 }
 0x367   :  { %11329 = vmatprep.subr.bf16.mxu1 %v12124_v54  ;;  %v13964_v52 = vpop.f32.mrb[101].mxu0 }
 0x368   :  { %v13966_v61 = vpop.f32.mrb[102].mxu0 }
 0x369   :  { %v13968_v47 = vpop.f32.mrb[103].mxu0 }
 0x36a   :  { %11330 = vmatpush3.bf16.msra.mxu1 %v12124_v54 }
 0x36d   :  { %11268 = vmatmul.mubr.msk.bf16.gmra.mrb[48].mxu1 %vm13264_vm4, %v12706_v48 }
 0x36e   :  { %11271 = vmatprep.mubr.msk.bf16.mxu1 %vm13264_vm4, %v14830_v10  ;;  %v13976_v50 = vpop.f32.mrb[104].mxu0 }
 0x36f   :  { %v13978_v58 = vpop.f32.mrb[105].mxu0 }
 0x370   :  { %v13980_v46 = vpop.f32.mrb[106].mxu0 }
 0x371   :  { %v13982_v57 = vpop.f32.mrb[107].mxu0 }
 0x372   :  { %14895 = vst [vmem:[#allocation67_spill] sm:$0xff] %v13982_v57  ;;  %v14922_v57 = vld [vmem:[#allocation50_spill] sm:$0xff] }
 0x375   :  { %11272 = vmatmul.mubr.msk.bf16.gmra.mrb[52].mxu1 %vm13264_vm4, %v14831_v33 }
 0x376   :  { %11275 = vmatprep.mubr.msk.bf16.mxu1 %vm13264_vm4, %v14832_v35  ;;  %v13990_v48 = vpop.f32.mrb[108].mxu0 }
 0x377   :  { %14896 = vst [vmem:[#allocation37_spill] sm:$0xff] %v13990_v48  ;;  %v13992_v43 = vpop.f32.mrb[109].mxu0  ;;  %v12131_v48 = vld [vmem:[#allocation10 + $0x30] sm:$0xff]  }
 0x378   :  { %14897 = vst [vmem:[#allocation35_spill] sm:$0xff] %v13992_v43  ;;  %v13994_v10 = vpop.f32.mrb[110].mxu0 }
 0x379   :  { %14898 = vst [vmem:[#allocation40_spill] sm:$0xff] %v13994_v10  ;;  %v13996_v31 = vpop.f32.mrb[111].mxu0  ;;  %v14918_v10 = vld [vmem:[#allocation32_spill] sm:$0xff] }
 0x37a   :  { %14899 = vst [vmem:[#allocation41_spill] sm:$0xff] %v13996_v31  ;;  %v14917_v31 = vld [vmem:[#allocation29_spill] sm:$0xff] }
 0x37d   :  { %11276 = vmatmul.mubr.msk.bf16.gmra.mrb[56].mxu1 %vm13264_vm4, %v14833_v13 }
 0x37e   :  { %11279 = vmatprep.mubr.msk.bf16.mxu1 %vm13264_vm4, %v13564_v32  ;;  %v14004_v33 = vpop.f32.mrb[112].mxu0 }
 0x37f   :  { %14900 = vst [vmem:[#allocation45_spill] sm:$0xff] %v14004_v33  ;;  %v14006_v20 = vpop.f32.mrb[113].mxu0  ;;  %v12129_v33 = vld [vmem:[#allocation10 + $0x20] sm:$0xff]  }
 0x380   :  { %14901 = vst [vmem:[#allocation49_spill] sm:$0xff] %v14006_v20  ;;  %v14008_v35 = vpop.f32.mrb[114].mxu0 }
 0x381   :  { %14902 = vst [vmem:[#allocation48_spill] sm:$0xff] %v14008_v35  ;;  %v14010_v45 = vpop.f32.mrb[115].mxu0 }
 0x382   :  { %14903 = vst [vmem:[#allocation54_spill] sm:$0xff] %v14010_v45  ;;  %v12127_v45 = vld [vmem:[#allocation10 + $0x10] sm:$0xff]  }
 0x385   :  { %11280 = vmatmul.mubr.msk.bf16.gmra.mrb[60].mxu1 %vm13264_vm4, %v12918_v41 }
 0x386   :  { %11283 = vmatprep.mubr.msk.bf16.mxu1 %vm13264_vm4, %v14835_v40  ;;  %v14018_v13 = vpop.f32.mrb[116].mxu0 }
 0x387   :  { %14904 = vst [vmem:[#allocation53_spill] sm:$0xff] %v14018_v13  ;;  %v14020_v7 = vpop.f32.mrb[117].mxu0 }
 0x388   :  { %14905 = vst [vmem:[#allocation59_spill] sm:$0xff] %v14020_v7  ;;  %v14022_v32 = vpop.f32.mrb[118].mxu0  ;;  %v12126_v7 = vld [vmem:[#allocation10 + $0x8] sm:$0xff]  }
 0x389   :  { %14906 = vst [vmem:[#allocation58_spill] sm:$0xff] %v14022_v32  ;;  %v14024_v30 = vpop.f32.mrb[119].mxu0  ;;  %v12125_v32 = vld [vmem:[#allocation10] sm:$0xff]  }
 0x38a   :  { %14907 = vst [vmem:[#allocation64_spill] sm:$0xff] %v14024_v30  ;;  %11395 = vmatprep.subr.bf16.mxu0 %v12125_v32 }
 0x38b   :  { %11396 = vmatpush3.bf16.msra.mxu0 %v12125_v32 }
 0x38c   :  { %11397 = vmatprep.subr.bf16.mxu0 %v12126_v7 }
 0x38d   :  { %11284 = vmatmul.mubr.msk.bf16.gmra.mrb[0].mxu1 %vm13264_vm4, %v14836_v42 }
 0x38e   :  { %11287 = vmatprep.mubr.msk.bf16.mxu1 %vm13264_vm4, %v14837_v34  ;;  %v14032_v37 = vpop.f32.mrb[120].mxu0 }
 0x38f   :  { %14908 = vst [vmem:[#allocation63_spill] sm:$0xff] %v14032_v37  ;;  %v14034_v27 = vpop.f32.mrb[121].mxu0  ;;  %11398 = vmatpush3.bf16.msra.mxu0 %v12126_v7 }
 0x390   :  { %14909 = vst [vmem:[#allocation70_spill] sm:$0xff] %v14034_v27  ;;  %v14036_v40 = vpop.f32.mrb[122].mxu0  ;;  %11399 = vmatprep.subr.bf16.mxu0 %v12127_v45 }
 0x391   :  { %14910 = vst [vmem:[#allocation69_spill] sm:$0xff] %v14036_v40  ;;  %v14038_v44 = vpop.f32.mrb[123].mxu0 }
 0x392   :  { %14911 = vst [vmem:[#allocation75_spill] sm:$0xff] %v14038_v44 }
 0x393   :  { %11400 = vmatpush3.bf16.msra.mxu0 %v12127_v45 }
 0x395   :  { %11288 = vmatmul.mubr.msk.bf16.gmra.mrb[4].mxu1 %vm13264_vm4, %v14838_v2 }
 0x396   :  { %11291 = vmatprep.mubr.msk.bf16.mxu1 %vm13264_vm4, %v14839_v59  ;;  %v14046_v42 = vpop.f32.mrb[124].mxu0 }
 0x397   :  { %14912 = vst [vmem:[#allocation74_spill] sm:$0xff] %v14046_v42  ;;  %v14048_v18 = vpop.f32.mrb[125].mxu0 }
 0x398   :  { %14913 = vst [vmem:[#allocation19_spill] sm:$0xff] %v14048_v18  ;;  %v14050_v34 = vpop.f32.mrb[126].mxu0 }
 0x399   :  { %14914 = vst [vmem:[#allocation22_spill] sm:$0xff] %v14050_v34  ;;  %v14052_v5 = vpop.f32.mrb[127].mxu0 }
 0x39a   :  { %14915 = vst [vmem:[#allocation25_spill] sm:$0xff] %v14052_v5 }
 0x39d   :  { %11292 = vmatmul.mubr.msk.bf16.gmra.mrb[8].mxu1 %vm13264_vm4, %v14840_v4 }
 0x39e   :  { %11295 = vmatprep.mubr.msk.bf16.mxu1 %vm13264_vm4, %v14841_v29  ;;  %v14060_v2 = vpop.f32.mrb[64].mxu0 }
 0x39f   :  { %v14062_v54 = vpop.f32.mrb[65].mxu0 }
 0x3a0   :  { %v14064_v59 = vpop.f32.mrb[66].mxu0 }
 0x3a1   :  { %v14066_v42 = vpop.f32.mrb[67].mxu0 }
 0x3a5   :  { %11296 = vmatmul.mubr.msk.bf16.gmra.mrb[12].mxu1 %vm13264_vm4, %v14842_v12 }
 0x3a6   :  { %11299 = vmatprep.mubr.msk.bf16.mxu1 %vm13264_vm4, %v14843_v14  ;;  %v14074_v4 = vpop.f32.mrb[68].mxu0 }
 0x3a7   :  { %v14076_v5 = vpop.f32.mrb[69].mxu0 }
 0x3a8   :  { %v14078_v29 = vpop.f32.mrb[70].mxu0 }
 0x3a9   :  { %v14080_v34 = vpop.f32.mrb[71].mxu0 }
 0x3ad   :  { %11300 = vmatmul.mubr.msk.bf16.gmra.mrb[16].mxu1 %vm13264_vm4, %v14844_v62 }
 0x3ae   :  { %11303 = vmatprep.mubr.msk.bf16.mxu1 %vm13264_vm4, %v14845_v11  ;;  %v14088_v12 = vpop.f32.mrb[72].mxu0 }
 0x3af   :  { %v14090_v18 = vpop.f32.mrb[73].mxu0 }
 0x3b0   :  { %v14092_v14 = vpop.f32.mrb[74].mxu0 }
 0x3b1   :  { %v14094_v44 = vpop.f32.mrb[75].mxu0 }
 0x3b5   :  { %11304 = vmatmul.mubr.msk.bf16.gmra.mrb[20].mxu1 %vm13264_vm4, %v13217_v25 }
 0x3b6   :  { %11307 = vmatprep.mubr.msk.bf16.mxu1 %vm13264_vm4, %v13212_v9  ;;  %v14102_v62 = vpop.f32.mrb[76].mxu0 }
 0x3b7   :  { %v14104_v40 = vpop.f32.mrb[77].mxu0 }
 0x3b8   :  { %v14106_v11 = vpop.f32.mrb[78].mxu0 }
 0x3b9   :  { %v14108_v27 = vpop.f32.mrb[79].mxu0 }
 0x3bd   :  { %11308 = vmatmul.mubr.msk.bf16.gmra.mrb[24].mxu1 %vm13264_vm4, %v13298_v28 }
 0x3be   :  { %11311 = vmatprep.mubr.msk.bf16.mxu1 %vm13264_vm4, %v13291_v22  ;;  %v14116_v25 = vpop.f32.mrb[80].mxu0 }
 0x3bf   :  { %v14118_v37 = vpop.f32.mrb[81].mxu0 }
 0x3c0   :  { %v14120_v9 = vpop.f32.mrb[82].mxu0 }
 0x3c1   :  { %v14122_v30 = vpop.f32.mrb[83].mxu0 }
 0x3c5   :  { %11312 = vmatmul.mubr.msk.bf16.gmra.mrb[28].mxu1 %vm13264_vm4, %v12918_v41  ;;  %v12128_v41 = vld [vmem:[#allocation10 + $0x18] sm:$0xff]  }
 0x3c6   :  { %11331 = vmatprep.mubr.msk.bf16.mxu1 %vm13667_vm6, %v14850_v60  ;;  %v14130_v28 = vpop.f32.mrb[84].mxu0  ;;  %11401 = vmatprep.subr.bf16.mxu0 %v12128_v41 }
 0x3c7   :  { %v14132_v22 = vpop.f32.mrb[85].mxu0  ;;  %11402 = vmatpush3.bf16.msra.mxu0 %v12128_v41 }
 0x3c8   :  { %v14134_v13 = vpop.f32.mrb[86].mxu0  ;;  %11403 = vmatprep.subr.bf16.mxu0 %v12129_v33 }
 0x3c9   :  { %v14136_v35 = vpop.f32.mrb[87].mxu0 }
 0x3cb   :  { %11404 = vmatpush3.bf16.msra.mxu0 %v12129_v33  ;;  %v14921_v33 = vld [vmem:[#allocation46_spill] sm:$0xff] }
 0x3cd   :  { %11332 = vmatmul.mubr.msk.bf16.vlgmr.msra.gmra.mrb[32].mxu1 %vm13667_vm6, %v14851_v16  ;;  %v12130_v16 = vld [vmem:[#allocation10 + $0x28] sm:$0xff]  }
 0x3ce   :  { %11335 = vmatprep.mubr.msk.bf16.mxu1 %vm13667_vm6, %v14916_v1  ;;  %v14144_v60 = vpop.f32.mrb[88].mxu0  ;;  %11405 = vmatprep.subr.bf16.mxu0 %v12130_v16 }
 0x3cf   :  { %v14146_v32 = vpop.f32.mrb[89].mxu0  ;;  %11406 = vmatpush3.bf16.msra.mxu0 %v12130_v16  ;;  %v14923_v16 = vld [vmem:[#allocation55_spill] sm:$0xff] }
 0x3d0   :  { %v14148_v20 = vpop.f32.mrb[90].mxu0  ;;  %11407 = vmatprep.subr.bf16.mxu0 %v12131_v48 }
 0x3d1   :  { %v14150_v7 = vpop.f32.mrb[91].mxu0 }
 0x3d3   :  { %11408 = vmatpush3.bf16.msra.mxu0 %v12131_v48  ;;  %v14925_v48 = vld [vmem:[#allocation65_spill] sm:$0xff] }
 0x3d5   :  { %11336 = vmatmul.mubr.msk.bf16.gmra.mrb[36].mxu1 %vm13667_vm6, %v14917_v31  ;;  %v14919_v31 = vld [vmem:[#allocation42_spill] sm:$0xff] }
 0x3d6   :  { %11339 = vmatprep.mubr.msk.bf16.mxu1 %vm13667_vm6, %v14918_v10  ;;  %v14158_v1 = vpop.f32.mrb[92].mxu0  ;;  %v14920_v10 = vld [vmem:[#allocation43_spill] sm:$0xff] }
 0x3d7   :  { %v14160_v45 = vpop.f32.mrb[93].mxu0 }
 0x3d8   :  { %v14162_v43 = vpop.f32.mrb[94].mxu0 }
 0x3d9   :  { %v14164_v41 = vpop.f32.mrb[95].mxu0 }
 0x3dd   :  { %11340 = vmatmul.mubr.msk.bf16.gmra.mrb[40].mxu1 %vm13667_vm6, %v14855_v63  ;;  %v14924_v63 = vld [vmem:[#allocation60_spill] sm:$0xff] }
 0x3de   :  { %11343 = vmatprep.mubr.msk.bf16.mxu1 %vm13667_vm6, %v14919_v31 }
 0x3e5   :  { %11344 = vmatmul.mubr.msk.bf16.gmra.mrb[44].mxu1 %vm13667_vm6, %v14920_v10 }
 0x3e6   :  { %11347 = vmatprep.mubr.msk.bf16.mxu1 %vm13667_vm6, %v14921_v33 }
 0x3ed   :  { %11348 = vmatmul.mubr.msk.bf16.gmra.mrb[48].mxu1 %vm13667_vm6, %v14922_v57 }
 0x3ee   :  { %11351 = vmatprep.mubr.msk.bf16.mxu1 %vm13667_vm6, %v14923_v16 }
 0x3f5   :  { %11352 = vmatmul.mubr.msk.bf16.gmra.mrb[52].mxu1 %vm13667_vm6, %v14924_v63 }
 0x3f6   :  { %11355 = vmatprep.mubr.msk.bf16.mxu1 %vm13667_vm6, %v14925_v48 }
 0x3fd   :  { %11356 = vmatmul.mubr.msk.bf16.gmra.mrb[56].mxu1 %vm13667_vm6, %v14863_v36  ;;  %v14256_v36 = vld [vmem:[%s14606_s4 + $0x3] ss:$0 sm:$0xff] }
 0x3fe   :  { %11359 = vmatprep.mubr.msk.bf16.mxu1 %vm13667_vm6, %v13775_v53 }
 0x405   :  { %11360 = vmatmul.mubr.msk.bf16.gmra.mrb[60].mxu1 %vm13667_vm6, %v13664_v24 }
 0x406   :  { %11363 = vmatprep.mubr.msk.bf16.mxu1 %vm13667_vm6, %v14865_v8 }
 0x40d   :  { %11364 = vmatmul.mubr.msk.bf16.gmra.mrb[0].mxu1 %vm13667_vm6, %v13300_v0  ;;  %v12132_v0 = vld [vmem:[#allocation10 + $0x38] sm:$0xff]  }
 0x40e   :  { %11367 = vmatprep.mubr.msk.bf16.mxu1 %vm13667_vm6, %v13312_v23  ;;  %11409 = vmatprep.subr.bf16.mxu0 %v12132_v0  ;;  %v14926_v23 = vld [vmem:[#allocation80_spill] sm:$0xff] }
 0x40f   :  { %11410 = vmatpush3.bf16.msra.mxu0 %v12132_v0 }
 0x415   :  { %11368 = vmatmul.mubr.msk.bf16.gmra.mrb[4].mxu1 %vm13667_vm6, %v13326_v26  ;;  %v14927_v26 = vld [vmem:[#allocation81_spill] sm:$0xff] }
 0x416   :  { %11371 = vmatprep.mubr.msk.bf16.mxu1 %vm13667_vm6, %v13347_v49  ;;  %v14928_v49 = vld [vmem:[#allocation82_spill] sm:$0xff] }
 0x41d   :  { %11372 = vmatmul.mubr.msk.bf16.gmra.mrb[8].mxu1 %vm13667_vm6, %v13361_v17  ;;  %v14929_v17 = vld [vmem:[#allocation83_spill] sm:$0xff] }
 0x41e   :  { %11375 = vmatprep.mubr.msk.bf16.mxu1 %vm13667_vm6, %v13381_v21  ;;  %v14930_v21 = vld [vmem:[#allocation84_spill] sm:$0xff] }
 0x425   :  { %11376 = vmatmul.mubr.msk.bf16.gmra.mrb[12].mxu1 %vm13667_vm6, %v13383_v55 }
 0x426   :  { %11379 = vmatprep.mubr.msk.bf16.mxu1 %vm13667_vm6, %v13397_v15  ;;  %v14250_v15 = vld [vmem:[%s14606_s4 + $0x2] ss:$0 sm:$0xff] }
 0x42d   :  { %11380 = vmatmul.mubr.msk.bf16.gmra.mrb[16].mxu1 %vm13667_vm6, %v13416_v38 }
 0x42e   :  { %11383 = vmatprep.mubr.msk.bf16.mxu1 %vm13667_vm6, %v14926_v23 }
 0x435   :  { %11384 = vmatmul.mubr.msk.bf16.gmra.mrb[20].mxu1 %vm13667_vm6, %v14927_v26 }
 0x436   :  { %11387 = vmatprep.mubr.msk.bf16.mxu1 %vm13667_vm6, %v14928_v49 }
 0x43d   :  { %11388 = vmatmul.mubr.msk.bf16.gmra.mrb[24].mxu1 %vm13667_vm6, %v14929_v17 }
 0x43e   :  { %11391 = vmatprep.mubr.msk.bf16.mxu1 %vm13667_vm6, %v14930_v21 }
 0x445   :  { %11392 = vmatmul.mubr.msk.bf16.gmra.mrb[28].mxu1 %vm13667_vm6, %v13664_v24 }
 0x4a0   :  { %v11333_v55 = vpop.f32.mrb[32].mxu1 }
 0x4a1   :  { %v11491_v38 = vadd.f32 %v11333_v55, %v14060_v2  ;;  %v7014_v53 = vpop.f32.mrb[33].mxu1 }
 0x4a2   :  { %v11492_v8 = vadd.f32 %v7014_v53, %v14062_v54  ;;  %v11334_v57 = vpop.f32.mrb[34].mxu1 }
 0x4a3   :  { %v7468_v56 = vmul.f32 %v11491_v38, %v14250_v15  ;;  %v11493_v24 = vadd.f32 %v11334_v57, %v14064_v59  ;;  %v7017_v31 = vpop.f32.mrb[35].mxu1 }
 0x4a4   :  { %v7466_v10 = vmul.f32 %v11492_v8, %v14250_v15  ;;  %v11494_v33 = vadd.f32 %v7017_v31, %v14066_v42 }
 0x4a5   :  { %v7537_v2 = vadd.f32 %v14256_v36, %v7468_v56  ;;  %v7469_v16 = vmul.f32 %v11493_v24, %v14250_v15 }
 0x4a6   :  { %v7535_v63 = vadd.f32 %v14256_v36, %v7466_v10  ;;  %v7467_v48 = vmul.f32 %v11494_v33, %v14250_v15 }
 0x4a7   :  { %v7538_v54 = vadd.f32 %v14256_v36, %v7469_v16  ;;  %v7601_v26 = vmax.f32 %v7537_v2, 0.0 }
 0x4a8   :  { %v7536_v0 = vadd.f32 %v14256_v36, %v7467_v48  ;;  %v11337_v23 = vpop.f32.mrb[36].mxu1  ;;  %v7599_v21 = vmax.f32 %v7535_v63, 0.0 }
 0x4a9   :  { %v7602_v59 = vmax.f32 %v7538_v54, 0.0  ;;  %v11495_v49 = vadd.f32 %v11337_v23, %v14074_v4  ;;  %v7030_v17 = vpop.f32.mrb[37].mxu1 }
 0x4aa   :  { %v7600_v42 = vmax.f32 %v7536_v0, 0.0  ;;  %v11496_v55 = vadd.f32 %v7030_v17, %v14076_v5  ;;  %v11338_v38 = vpop.f32.mrb[38].mxu1 }
 0x4ab   :  { %v7664_v53 = vpack.c.bf16 %v7602_v59, %v7601_v26  ;;  %v7472_v8 = vmul.f32 %v11495_v49, %v14250_v15  ;;  %v11497_v57 = vadd.f32 %v11338_v38, %v14078_v29  ;;  %v7033_v56 = vpop.f32.mrb[39].mxu1 }
 0x4ac   :  { %v7470_v24 = vmul.f32 %v11496_v55, %v14250_v15  ;;  %v11498_v31 = vadd.f32 %v7033_v56, %v14080_v34  ;;  %v7663_v10 = vpack.c.bf16 %v7600_v42, %v7599_v21 }
 0x4ad   :  { %v7541_v33 = vadd.f32 %v14256_v36, %v7472_v8  ;;  %v7473_v4 = vmul.f32 %v11497_v57, %v14250_v15 }
 0x4ae   :  { %v7539_v2 = vadd.f32 %v14256_v36, %v7470_v24  ;;  %v7471_v5 = vmul.f32 %v11498_v31, %v14250_v15  ;;  %11411 = vmatprep.mubr.bf16.mxu0 %v7663_v10 }
 0x4af   :  { %v7542_v16 = vadd.f32 %v14256_v36, %v7473_v4  ;;  %11412 = vmatmul.mubr.bf16.vlgmr.msra.gmra.mrb[128].mxu0 %v7664_v53  ;;  %v7605_v48 = vmax.f32 %v7541_v33, 0.0 }
 0x4b0   :  { %v7540_v29 = vadd.f32 %v14256_v36, %v7471_v5  ;;  %v11341_v63 = vpop.f32.mrb[40].mxu1  ;;  %v7603_v23 = vmax.f32 %v7539_v2, 0.0 }
 0x4b1   :  { %v7606_v54 = vmax.f32 %v7542_v16, 0.0  ;;  %v11499_v34 = vadd.f32 %v11341_v63, %v14088_v12  ;;  %v7046_v0 = vpop.f32.mrb[41].mxu1 }
 0x4b2   :  { %v7604_v26 = vmax.f32 %v7540_v29, 0.0  ;;  %v11500_v59 = vadd.f32 %v7046_v0, %v14090_v18  ;;  %v11342_v49 = vpop.f32.mrb[42].mxu1 }
 0x4b3   :  { %v7476_v17 = vmul.f32 %v11499_v34, %v14250_v15  ;;  %v11501_v21 = vadd.f32 %v11342_v49, %v14092_v14  ;;  %v7049_v42 = vpop.f32.mrb[43].mxu1  ;;  %v7666_v55 = vpack.c.bf16 %v7606_v54, %v7605_v48 }
 0x4b4   :  { %v7474_v38 = vmul.f32 %v11500_v59, %v14250_v15  ;;  %v11502_v53 = vadd.f32 %v7049_v42, %v14094_v44  ;;  %v7665_v8 = vpack.c.bf16 %v7604_v26, %v7603_v23 }
 0x4b5   :  { %v7545_v57 = vadd.f32 %v14256_v36, %v7476_v17  ;;  %v7477_v12 = vmul.f32 %v11501_v21, %v14250_v15 }
 0x4b6   :  { %v7543_v56 = vadd.f32 %v14256_v36, %v7474_v38  ;;  %v7475_v18 = vmul.f32 %v11502_v53, %v14250_v15  ;;  %11415 = vmatprep.mubr.bf16.mxu0 %v7665_v8 }
 0x4b7   :  { %v7546_v24 = vadd.f32 %v14256_v36, %v7477_v12  ;;  %11416 = vmatmul.mubr.bf16.gmra.mrb[132].mxu0 %v7666_v55  ;;  %v7609_v10 = vmax.f32 %v7545_v57, 0.0 }
 0x4b8   :  { %v7544_v14 = vadd.f32 %v14256_v36, %v7475_v18  ;;  %v11345_v31 = vpop.f32.mrb[44].mxu1  ;;  %v7607_v2 = vmax.f32 %v7543_v56, 0.0 }
 0x4b9   :  { %v7610_v33 = vmax.f32 %v7546_v24, 0.0  ;;  %v11503_v44 = vadd.f32 %v11345_v31, %v14102_v62  ;;  %v7062_v4 = vpop.f32.mrb[45].mxu1 }
 0x4ba   :  { %v7608_v5 = vmax.f32 %v7544_v14, 0.0  ;;  %v11504_v16 = vadd.f32 %v7062_v4, %v14104_v40  ;;  %v11346_v29 = vpop.f32.mrb[46].mxu1 }
 0x4bb   :  { %v7480_v63 = vmul.f32 %v11503_v44, %v14250_v15  ;;  %v11505_v48 = vadd.f32 %v11346_v29, %v14106_v11  ;;  %v7065_v54 = vpop.f32.mrb[47].mxu1  ;;  %v7668_v34 = vpack.c.bf16 %v7610_v33, %v7609_v10 }
 0x4bc   :  { %v7478_v0 = vmul.f32 %v11504_v16, %v14250_v15  ;;  %v11506_v23 = vadd.f32 %v7065_v54, %v14108_v27  ;;  %v7667_v26 = vpack.c.bf16 %v7608_v5, %v7607_v2 }
 0x4bd   :  { %v7549_v59 = vadd.f32 %v14256_v36, %v7480_v63  ;;  %v7481_v62 = vmul.f32 %v11505_v48, %v14250_v15 }
 0x4be   :  { %v7547_v49 = vadd.f32 %v14256_v36, %v7478_v0  ;;  %v7479_v40 = vmul.f32 %v11506_v23, %v14250_v15  ;;  %11419 = vmatprep.mubr.bf16.mxu0 %v7667_v26 }
 0x4bf   :  { %v7550_v17 = vadd.f32 %v14256_v36, %v7481_v62  ;;  %11420 = vmatmul.mubr.bf16.gmra.mrb[136].mxu0 %v7668_v34  ;;  %v7613_v42 = vmax.f32 %v7549_v59, 0.0 }
 0x4c0   :  { %v7548_v11 = vadd.f32 %v14256_v36, %v7479_v40  ;;  %v11349_v21 = vpop.f32.mrb[48].mxu1  ;;  %v7611_v53 = vmax.f32 %v7547_v49, 0.0 }
 0x4c1   :  { %v7614_v55 = vmax.f32 %v7550_v17, 0.0  ;;  %v11507_v27 = vadd.f32 %v11349_v21, %v14116_v25  ;;  %v7078_v38 = vpop.f32.mrb[49].mxu1 }
 0x4c2   :  { %v7612_v8 = vmax.f32 %v7548_v11, 0.0  ;;  %v11508_v57 = vadd.f32 %v7078_v38, %v14118_v37  ;;  %v11350_v12 = vpop.f32.mrb[50].mxu1 }
 0x4c3   :  { %v7484_v56 = vmul.f32 %v11507_v27, %v14250_v15  ;;  %v11509_v18 = vadd.f32 %v11350_v12, %v14120_v9  ;;  %v7081_v24 = vpop.f32.mrb[51].mxu1  ;;  %v7670_v14 = vpack.c.bf16 %v7614_v55, %v7613_v42 }
 0x4c4   :  { %v7482_v31 = vmul.f32 %v11508_v57, %v14250_v15  ;;  %v11510_v10 = vadd.f32 %v7081_v24, %v14122_v30  ;;  %v7669_v33 = vpack.c.bf16 %v7612_v8, %v7611_v53 }
 0x4c5   :  { %v7553_v44 = vadd.f32 %v14256_v36, %v7484_v56  ;;  %v7485_v25 = vmul.f32 %v11509_v18, %v14250_v15 }
 0x4c6   :  { %v7551_v4 = vadd.f32 %v14256_v36, %v7482_v31  ;;  %v7483_v37 = vmul.f32 %v11510_v10, %v14250_v15  ;;  %11423 = vmatprep.mubr.bf16.mxu0 %v7669_v33 }
 0x4c7   :  { %v7554_v2 = vadd.f32 %v14256_v36, %v7485_v25  ;;  %11424 = vmatmul.mubr.bf16.gmra.mrb[140].mxu0 %v7670_v14  ;;  %v7617_v16 = vmax.f32 %v7553_v44, 0.0 }
 0x4c8   :  { %v7552_v9 = vadd.f32 %v14256_v36, %v7483_v37  ;;  %v11353_v5 = vpop.f32.mrb[52].mxu1  ;;  %v7615_v48 = vmax.f32 %v7551_v4, 0.0 }
 0x4c9   :  { %v7618_v29 = vmax.f32 %v7554_v2, 0.0  ;;  %v11511_v30 = vadd.f32 %v11353_v5, %v14130_v28  ;;  %v7094_v63 = vpop.f32.mrb[53].mxu1 }
 0x4ca   :  { %v7616_v54 = vmax.f32 %v7552_v9, 0.0  ;;  %v11512_v34 = vadd.f32 %v7094_v63, %v14132_v22  ;;  %v11354_v0 = vpop.f32.mrb[54].mxu1 }
 0x4cb   :  { %v7488_v23 = vmul.f32 %v11511_v30, %v14250_v15  ;;  %v11513_v26 = vadd.f32 %v11354_v0, %v14134_v13  ;;  %v7097_v59 = vpop.f32.mrb[55].mxu1  ;;  %v7672_v62 = vpack.c.bf16 %v7618_v29, %v7617_v16 }
 0x4cc   :  { %v7486_v49 = vmul.f32 %v11512_v34, %v14250_v15  ;;  %v11514_v40 = vadd.f32 %v7097_v59, %v14136_v35  ;;  %v7671_v17 = vpack.c.bf16 %v7616_v54, %v7615_v48 }
 0x4cd   :  { %v7557_v11 = vadd.f32 %v14256_v36, %v7488_v23  ;;  %v7489_v28 = vmul.f32 %v11513_v26, %v14250_v15 }
 0x4ce   :  { %v7555_v21 = vadd.f32 %v14256_v36, %v7486_v49  ;;  %v7487_v22 = vmul.f32 %v11514_v40, %v14250_v15  ;;  %11427 = vmatprep.mubr.bf16.mxu0 %v7671_v17 }
 0x4cf   :  { %v7558_v42 = vadd.f32 %v14256_v36, %v7489_v28  ;;  %11428 = vmatmul.mubr.bf16.gmra.mrb[144].mxu0 %v7672_v62  ;;  %v7621_v27 = vmax.f32 %v7557_v11, 0.0 }
 0x4d0   :  { %v7556_v13 = vadd.f32 %v14256_v36, %v7487_v22  ;;  %v11357_v55 = vpop.f32.mrb[56].mxu1  ;;  %v7619_v8 = vmax.f32 %v7555_v21, 0.0 }
 0x4d1   :  { %v7622_v38 = vmax.f32 %v7558_v42, 0.0  ;;  %v11515_v35 = vadd.f32 %v11357_v55, %v14144_v60  ;;  %v7110_v53 = vpop.f32.mrb[57].mxu1 }
 0x4d2   :  { %v7620_v57 = vmax.f32 %v7556_v13, 0.0  ;;  %v11516_v12 = vadd.f32 %v7110_v53, %v14146_v32  ;;  %v11358_v56 = vpop.f32.mrb[58].mxu1 }
 0x4d3   :  { %v7492_v18 = vmul.f32 %v11515_v35, %v14250_v15  ;;  %v11517_v24 = vadd.f32 %v11358_v56, %v14148_v20  ;;  %v7113_v14 = vpop.f32.mrb[59].mxu1  ;;  %v7674_v31 = vpack.c.bf16 %v7622_v38, %v7621_v27 }
 0x4d4   :  { %v7490_v10 = vmul.f32 %v11516_v12, %v14250_v15  ;;  %v11518_v33 = vadd.f32 %v7113_v14, %v14150_v7  ;;  %v7673_v44 = vpack.c.bf16 %v7620_v57, %v7619_v8 }
 0x4d5   :  { %v7561_v25 = vadd.f32 %v14256_v36, %v7492_v18  ;;  %v7493_v60 = vmul.f32 %v11517_v24, %v14250_v15 }
 0x4d6   :  { %v7559_v4 = vadd.f32 %v14256_v36, %v7490_v10  ;;  %v7491_v32 = vmul.f32 %v11518_v33, %v14250_v15  ;;  %11431 = vmatprep.mubr.bf16.mxu0 %v7673_v44 }
 0x4d7   :  { %v7562_v37 = vadd.f32 %v14256_v36, %v7493_v60  ;;  %11432 = vmatmul.mubr.bf16.gmra.mrb[148].mxu0 %v7674_v31  ;;  %v7625_v9 = vmax.f32 %v7561_v25, 0.0 }
 0x4d8   :  { %v7560_v20 = vadd.f32 %v14256_v36, %v7491_v32  ;;  %v11361_v2 = vpop.f32.mrb[60].mxu1  ;;  %v7623_v29 = vmax.f32 %v7559_v4, 0.0 }
 0x4d9   :  { %v7626_v5 = vmax.f32 %v7562_v37, 0.0  ;;  %v11519_v7 = vadd.f32 %v11361_v2, %v14158_v1  ;;  %v7126_v16 = vpop.f32.mrb[61].mxu1 }
 0x4da   :  { %v7624_v30 = vmax.f32 %v7560_v20, 0.0  ;;  %v11520_v63 = vadd.f32 %v7126_v16, %v14160_v45  ;;  %v11362_v48 = vpop.f32.mrb[62].mxu1 }
 0x4db   :  { %v7496_v54 = vmul.f32 %v11519_v7, %v14250_v15  ;;  %v11521_v34 = vadd.f32 %v11362_v48, %v14162_v43  ;;  %v7129_v0 = vpop.f32.mrb[63].mxu1  ;;  %v7676_v23 = vpack.c.bf16 %v7626_v5, %v7625_v9 }
 0x4dc   :  { %v7494_v26 = vmul.f32 %v11520_v63, %v14250_v15  ;;  %v11522_v59 = vadd.f32 %v7129_v0, %v14164_v41  ;;  %v7675_v62 = vpack.c.bf16 %v7624_v30, %v7623_v29 }
 0x4dd   :  { %v7565_v49 = vadd.f32 %v14256_v36, %v7496_v54  ;;  %v7497_v1 = vmul.f32 %v11521_v34, %v14250_v15 }
 0x4de   :  { %v7563_v40 = vadd.f32 %v14256_v36, %v7494_v26  ;;  %v7495_v45 = vmul.f32 %v11522_v59, %v14250_v15  ;;  %11435 = vmatprep.mubr.bf16.mxu0 %v7675_v62 }
 0x4df   :  { %v7566_v17 = vadd.f32 %v14256_v36, %v7497_v1  ;;  %11436 = vmatmul.mubr.bf16.gmra.mrb[152].mxu0 %v7676_v23  ;;  %v7629_v28 = vmax.f32 %v7565_v49, 0.0 }
 0x4e0   :  { %v7564_v43 = vadd.f32 %v14256_v36, %v7495_v45  ;;  %v11365_v11 = vpop.f32.mrb[0].mxu1  ;;  %v7627_v42 = vmax.f32 %v7563_v40, 0.0 }
 0x4e1   :  { %v7630_v21 = vmax.f32 %v7566_v17, 0.0  ;;  %v11523_v41 = vadd.f32 %v11365_v11, %v13948_v19  ;;  %v7142_v22 = vpop.f32.mrb[1].mxu1 }
 0x4e2   :  { %v7628_v13 = vmax.f32 %v7564_v43, 0.0  ;;  %v11524_v55 = vadd.f32 %v7142_v22, %v13950_v6  ;;  %v11366_v27 = vpop.f32.mrb[2].mxu1  ;;  %v14931_v43 = vld [vmem:[#allocation67_spill] sm:$0xff] }
 0x4e3   :  { %v7500_v38 = vmul.f32 %v11523_v41, %v14250_v15  ;;  %v11525_v35 = vadd.f32 %v11366_v27, %v13952_v39  ;;  %v7145_v53 = vpop.f32.mrb[3].mxu1  ;;  %v7678_v8 = vpack.c.bf16 %v7630_v21, %v7629_v28  ;;  %v14932_v27 = vld [vmem:[#allocation37_spill] sm:$0xff] }
 0x4e4   :  { %v7498_v57 = vmul.f32 %v11524_v55, %v14250_v15  ;;  %v11526_v12 = vadd.f32 %v7145_v53, %v13954_v3  ;;  %v7677_v56 = vpack.c.bf16 %v7628_v13, %v7627_v42 }
 0x4e5   :  { %v7569_v18 = vadd.f32 %v14256_v36, %v7500_v38  ;;  %v7501_v19 = vmul.f32 %v11525_v35, %v14250_v15 }
 0x4e6   :  { %v7567_v24 = vadd.f32 %v14256_v36, %v7498_v57  ;;  %v7499_v6 = vmul.f32 %v11526_v12, %v14250_v15  ;;  %11439 = vmatprep.mubr.bf16.mxu0 %v7677_v56  ;;  %v14933_v57 = vld [vmem:[#allocation35_spill] sm:$0xff] }
 0x4e7   :  { %v7570_v14 = vadd.f32 %v14256_v36, %v7501_v19  ;;  %11440 = vmatmul.mubr.bf16.gmra.mrb[156].mxu0 %v7678_v8  ;;  %v7633_v10 = vmax.f32 %v7569_v18, 0.0  ;;  %v14934_v19 = vld [vmem:[#allocation40_spill] sm:$0xff] }
 0x4e8   :  { %v7568_v39 = vadd.f32 %v14256_v36, %v7499_v6  ;;  %v11369_v31 = vpop.f32.mrb[4].mxu1  ;;  %v7631_v25 = vmax.f32 %v7567_v24, 0.0 }
 0x4e9   :  { %v7634_v33 = vmax.f32 %v7570_v14, 0.0  ;;  %v11527_v3 = vadd.f32 %v11369_v31, %v13962_v51  ;;  %v7158_v44 = vpop.f32.mrb[5].mxu1  ;;  %v14935_v31 = vld [vmem:[#allocation41_spill] sm:$0xff] }
 0x4ea   :  { %v7632_v60 = vmax.f32 %v7568_v39, 0.0  ;;  %v11528_v4 = vadd.f32 %v7158_v44, %v13964_v52  ;;  %v11370_v32 = vpop.f32.mrb[6].mxu1 }
 0x4eb   :  { %v7504_v37 = vmul.f32 %v11527_v3, %v14250_v15  ;;  %v11529_v20 = vadd.f32 %v11370_v32, %v13966_v61  ;;  %v7161_v2 = vpop.f32.mrb[7].mxu1  ;;  %v7680_v9 = vpack.c.bf16 %v7634_v33, %v7633_v10 }
 0x4ec   :  { %v7502_v5 = vmul.f32 %v11528_v4, %v14250_v15  ;;  %v11530_v7 = vadd.f32 %v7161_v2, %v13968_v47  ;;  %v7679_v16 = vpack.c.bf16 %v7632_v60, %v7631_v25 }
 0x4ed   :  { %v7573_v29 = vadd.f32 %v14256_v36, %v7504_v37  ;;  %v7505_v51 = vmul.f32 %v11529_v20, %v14250_v15 }
 0x4ee   :  { %v7571_v30 = vadd.f32 %v14256_v36, %v7502_v5  ;;  %v7503_v52 = vmul.f32 %v11530_v7, %v14250_v15  ;;  %11443 = vmatprep.mubr.bf16.mxu0 %v7679_v16 }
 0x4ef   :  { %v7574_v63 = vadd.f32 %v14256_v36, %v7505_v51  ;;  %11444 = vmatmul.mubr.bf16.gmra.mrb[160].mxu0 %v7680_v9  ;;  %v7637_v54 = vmax.f32 %v7573_v29, 0.0  ;;  %v14936_v9 = vld [vmem:[#allocation45_spill] sm:$0xff] }
 0x4f0   :  { %v7572_v61 = vadd.f32 %v14256_v36, %v7503_v52  ;;  %v11373_v48 = vpop.f32.mrb[8].mxu1  ;;  %v7635_v23 = vmax.f32 %v7571_v30, 0.0  ;;  %v14937_v51 = vld [vmem:[#allocation49_spill] sm:$0xff] }
 0x4f1   :  { %v7638_v34 = vmax.f32 %v7574_v63, 0.0  ;;  %v11531_v47 = vadd.f32 %v11373_v48, %v13976_v50  ;;  %v7174_v0 = vpop.f32.mrb[9].mxu1 }
 0x4f2   :  { %v7636_v26 = vmax.f32 %v7572_v61, 0.0  ;;  %v11532_v59 = vadd.f32 %v7174_v0, %v13978_v58  ;;  %v11374_v62 = vpop.f32.mrb[10].mxu1  ;;  %v14938_v61 = vld [vmem:[#allocation48_spill] sm:$0xff]  ;;  %v14939_v0 = vld [vmem:[#allocation54_spill] sm:$0xff] }
 0x4f3   :  { %v7508_v49 = vmul.f32 %v11531_v47, %v14250_v15  ;;  %v11533_v1 = vadd.f32 %v11374_v62, %v13980_v46  ;;  %v7177_v40 = vpop.f32.mrb[11].mxu1  ;;  %v7682_v45 = vpack.c.bf16 %v7638_v34, %v7637_v54 }
 0x4f4   :  { %v7506_v17 = vmul.f32 %v11532_v59, %v14250_v15  ;;  %v11534_v11 = vadd.f32 %v7177_v40, %v14931_v43  ;;  %v7681_v28 = vpack.c.bf16 %v7636_v26, %v7635_v23 }
 0x4f5   :  { %v7577_v21 = vadd.f32 %v14256_v36, %v7508_v49  ;;  %v7509_v50 = vmul.f32 %v11533_v1, %v14250_v15 }
 0x4f6   :  { %v7575_v41 = vadd.f32 %v14256_v36, %v7506_v17  ;;  %v7507_v58 = vmul.f32 %v11534_v11, %v14250_v15  ;;  %11447 = vmatprep.mubr.bf16.mxu0 %v7681_v28  ;;  %v14940_v28 = vld [vmem:[#allocation53_spill] sm:$0xff] }
 0x4f7   :  { %v7578_v22 = vadd.f32 %v14256_v36, %v7509_v50  ;;  %11448 = vmatmul.mubr.bf16.gmra.mrb[164].mxu0 %v7682_v45  ;;  %v7641_v13 = vmax.f32 %v7577_v21, 0.0 }
 0x4f8   :  { %v7576_v46 = vadd.f32 %v14256_v36, %v7507_v58  ;;  %v11377_v42 = vpop.f32.mrb[12].mxu1  ;;  %v7639_v53 = vmax.f32 %v7575_v41, 0.0 }
 0x4f9   :  { %v7642_v55 = vmax.f32 %v7578_v22, 0.0  ;;  %v11535_v38 = vadd.f32 %v11377_v42, %v14932_v27  ;;  %v7190_v35 = vpop.f32.mrb[13].mxu1  ;;  %v14941_v22 = vld [vmem:[#allocation59_spill] sm:$0xff] }
 0x4fa   :  { %v7640_v8 = vmax.f32 %v7576_v46, 0.0  ;;  %v11536_v12 = vadd.f32 %v7190_v35, %v14933_v57  ;;  %v11378_v56 = vpop.f32.mrb[14].mxu1 }
 0x4fb   :  { %v7512_v18 = vmul.f32 %v11535_v38, %v14250_v15  ;;  %v11537_v24 = vadd.f32 %v11378_v56, %v14934_v19  ;;  %v7193_v6 = vpop.f32.mrb[15].mxu1  ;;  %v7684_v14 = vpack.c.bf16 %v7642_v55, %v7641_v13  ;;  %v14942_v55 = vld [vmem:[#allocation58_spill] sm:$0xff] }
 0x4fc   :  { %v7510_v39 = vmul.f32 %v11536_v12, %v14250_v15  ;;  %v11538_v10 = vadd.f32 %v7193_v6, %v14935_v31  ;;  %v7683_v33 = vpack.c.bf16 %v7640_v8, %v7639_v53  ;;  %v14943_v8 = vld [vmem:[#allocation64_spill] sm:$0xff] }
 0x4fd   :  { %v7581_v3 = vadd.f32 %v14256_v36, %v7512_v18  ;;  %v7513_v44 = vmul.f32 %v11537_v24, %v14250_v15 }
 0x4fe   :  { %v7579_v25 = vadd.f32 %v14256_v36, %v7510_v39  ;;  %v7511_v60 = vmul.f32 %v11538_v10, %v14250_v15  ;;  %11451 = vmatprep.mubr.bf16.mxu0 %v7683_v33  ;;  %v14944_v33 = vld [vmem:[#allocation63_spill] sm:$0xff] }
 0x4ff   :  { %v7582_v4 = vadd.f32 %v14256_v36, %v7513_v44  ;;  %11452 = vmatmul.mubr.bf16.gmra.mrb[168].mxu0 %v7684_v14  ;;  %v7645_v20 = vmax.f32 %v7581_v3, 0.0 }
 0x500   :  { %v7580_v32 = vadd.f32 %v14256_v36, %v7511_v60  ;;  %v11381_v37 = vpop.f32.mrb[16].mxu1  ;;  %v7643_v16 = vmax.f32 %v7579_v25, 0.0 }
 0x501   :  { %v7646_v2 = vmax.f32 %v7582_v4, 0.0  ;;  %v11539_v5 = vadd.f32 %v11381_v37, %v14936_v9  ;;  %v7206_v7 = vpop.f32.mrb[17].mxu1  ;;  %v14945_v4 = vld [vmem:[#allocation70_spill] sm:$0xff] }
 0x502   :  { %v7644_v29 = vmax.f32 %v7580_v32, 0.0  ;;  %v11540_v30 = vadd.f32 %v7206_v7, %v14937_v51  ;;  %v11382_v52 = vpop.f32.mrb[18].mxu1 }
 0x503   :  { %v7516_v63 = vmul.f32 %v11539_v5, %v14250_v15  ;;  %v11541_v48 = vadd.f32 %v11382_v52, %v14938_v61  ;;  %v7209_v54 = vpop.f32.mrb[19].mxu1  ;;  %v7686_v34 = vpack.c.bf16 %v7646_v2, %v7645_v20  ;;  %v14946_v2 = vld [vmem:[#allocation69_spill] sm:$0xff] }
 0x504   :  { %v7514_v47 = vmul.f32 %v11540_v30, %v14250_v15  ;;  %v11542_v23 = vadd.f32 %v7209_v54, %v14939_v0  ;;  %v7685_v26 = vpack.c.bf16 %v7644_v29, %v7643_v16  ;;  %v14947_v29 = vld [vmem:[#allocation75_spill] sm:$0xff] }
 0x505   :  { %v7585_v59 = vadd.f32 %v14256_v36, %v7516_v63  ;;  %v7517_v62 = vmul.f32 %v11541_v48, %v14250_v15 }
 0x506   :  { %v7583_v49 = vadd.f32 %v14256_v36, %v7514_v47  ;;  %v7515_v1 = vmul.f32 %v11542_v23, %v14250_v15  ;;  %11455 = vmatprep.mubr.bf16.mxu0 %v7685_v26  ;;  %v14948_v26 = vld [vmem:[#allocation74_spill] sm:$0xff] }
 0x507   :  { %v7586_v40 = vadd.f32 %v14256_v36, %v7517_v62  ;;  %11456 = vmatmul.mubr.bf16.gmra.mrb[172].mxu0 %v7686_v34  ;;  %v7649_v43 = vmax.f32 %v7585_v59, 0.0 }
 0x508   :  { %v7584_v45 = vadd.f32 %v14256_v36, %v7515_v1  ;;  %v11385_v17 = vpop.f32.mrb[20].mxu1  ;;  %v7647_v41 = vmax.f32 %v7583_v49, 0.0 }
 0x509   :  { %v7650_v11 = vmax.f32 %v7586_v40, 0.0  ;;  %v11543_v21 = vadd.f32 %v11385_v17, %v14940_v28  ;;  %v7222_v50 = vpop.f32.mrb[21].mxu1  ;;  %v14949_v40 = vld [vmem:[#allocation19_spill] sm:$0xff] }
 0x50a   :  { %v7648_v58 = vmax.f32 %v7584_v45, 0.0  ;;  %v11544_v46 = vadd.f32 %v7222_v50, %v14941_v22  ;;  %v11386_v42 = vpop.f32.mrb[22].mxu1 }
 0x50b   :  { %v7520_v13 = vmul.f32 %v11543_v21, %v14250_v15  ;;  %v11545_v27 = vadd.f32 %v11386_v42, %v14942_v55  ;;  %v7225_v38 = vpop.f32.mrb[23].mxu1  ;;  %v7688_v35 = vpack.c.bf16 %v7650_v11, %v7649_v43  ;;  %v14950_v11 = vld [vmem:[#allocation22_spill] sm:$0xff] }
 0x50c   :  { %v7518_v53 = vmul.f32 %v11544_v46, %v14250_v15  ;;  %v11546_v57 = vadd.f32 %v7225_v38, %v14943_v8  ;;  %v7687_v12 = vpack.c.bf16 %v7648_v58, %v7647_v41  ;;  %v14951_v58 = vld [vmem:[#allocation25_spill] sm:$0xff] }
 0x50d   :  { %v7589_v56 = vadd.f32 %v14256_v36, %v7520_v13  ;;  %v7521_v18 = vmul.f32 %v11545_v27, %v14250_v15 }
 0x50e   :  { %v7587_v19 = vadd.f32 %v14256_v36, %v7518_v53  ;;  %v7519_v24 = vmul.f32 %v11546_v57, %v14250_v15  ;;  %11459 = vmatprep.mubr.bf16.mxu0 %v7687_v12 }
 0x50f   :  { %v7590_v6 = vadd.f32 %v14256_v36, %v7521_v18  ;;  %11460 = vmatmul.mubr.bf16.gmra.mrb[176].mxu0 %v7688_v35  ;;  %v7653_v31 = vmax.f32 %v7589_v56, 0.0 }
 0x510   :  { %v7588_v14 = vadd.f32 %v14256_v36, %v7519_v24  ;;  %v11389_v39 = vpop.f32.mrb[24].mxu1  ;;  %v7651_v25 = vmax.f32 %v7587_v19, 0.0  ;;  %v14452_v19 = vld [vmem:[%s14606_s4 + $0x4] ss:$0 sm:$0xff] }
 0x511   :  { %v7654_v10 = vmax.f32 %v7590_v6, 0.0  ;;  %v11547_v3 = vadd.f32 %v11389_v39, %v14944_v33  ;;  %v7238_v44 = vpop.f32.mrb[25].mxu1  ;;  %v9804_v24 = vld [vmem:[#allocation4] sm:$0xff]  }
 0x512   :  { %v7652_v60 = vmax.f32 %v7588_v14, 0.0  ;;  %v11548_v32 = vadd.f32 %v7238_v44, %v14945_v4  ;;  %v11390_v37 = vpop.f32.mrb[26].mxu1  ;;  %v9805_v33 = vunpack.c.l.bf16 %v9804_v24 }
 0x513   :  { %v7524_v20 = vmul.f32 %v11547_v3, %v14250_v15  ;;  %v11549_v9 = vadd.f32 %v11390_v37, %v14946_v2  ;;  %v7241_v5 = vpop.f32.mrb[27].mxu1  ;;  %v7690_v7 = vpack.c.bf16 %v7654_v10, %v7653_v31 }
 0x514   :  { %v7522_v16 = vmul.f32 %v11548_v32, %v14250_v15  ;;  %v11550_v51 = vadd.f32 %v7241_v5, %v14947_v29  ;;  %v7689_v30 = vpack.c.bf16 %v7652_v60, %v7651_v25 }
 0x515   :  { %v7593_v52 = vadd.f32 %v14256_v36, %v7524_v20  ;;  %v7525_v63 = vmul.f32 %v11549_v9, %v14250_v15  ;;  %v9806_v20 = vunpack.c.h.bf16 %v9804_v24 }
 0x516   :  { %v7591_v61 = vadd.f32 %v14256_v36, %v7522_v16  ;;  %v7523_v48 = vmul.f32 %v11550_v51, %v14250_v15  ;;  %11463 = vmatprep.mubr.bf16.mxu0 %v7689_v30  ;;  %v10093_v16 = vld [vmem:[#allocation4 + $0x18] sm:$0xff]   ;;  %v10092_v51 = vld [vmem:[#allocation4 + $0x10] sm:$0xff]  }
 0x517   :  { %v7594_v54 = vadd.f32 %v14256_v36, %v7525_v63  ;;  %11464 = vmatmul.mubr.bf16.gmra.mrb[180].mxu0 %v7690_v7  ;;  %v7657_v0 = vmax.f32 %v7593_v52, 0.0 }
 0x518   :  { %v7592_v34 = vadd.f32 %v14256_v36, %v7523_v48  ;;  %v11393_v47 = vpop.f32.mrb[28].mxu1  ;;  %v7655_v49 = vmax.f32 %v7591_v61, 0.0 }
 0x519   :  { %v7658_v23 = vmax.f32 %v7594_v54, 0.0  ;;  %v11551_v59 = vadd.f32 %v11393_v47, %v14948_v26  ;;  %v7254_v62 = vpop.f32.mrb[29].mxu1  ;;  %v9817_v54 = vunpack.c.l.bf16 %v10093_v16  ;;  %v9813_v26 = vunpack.c.l.bf16 %v10092_v51 }
 0x51a   :  { %v7656_v1 = vmax.f32 %v7592_v34, 0.0  ;;  %v11552_v45 = vadd.f32 %v7254_v62, %v14949_v40  ;;  %v11394_v17 = vpop.f32.mrb[30].mxu1  ;;  %v9818_v40 = vunpack.c.h.bf16 %v10093_v16 }
 0x51b   :  { %v7528_v43 = vmul.f32 %v11551_v59, %v14250_v15  ;;  %v11553_v28 = vadd.f32 %v11394_v17, %v14950_v11  ;;  %v7257_v21 = vpop.f32.mrb[31].mxu1  ;;  %v7692_v50 = vpack.c.bf16 %v7658_v23, %v7657_v0 }
 0x51c   :  { %v7526_v41 = vmul.f32 %v11552_v45, %v14250_v15  ;;  %v11554_v22 = vadd.f32 %v7257_v21, %v14951_v58  ;;  %v7691_v46 = vpack.c.bf16 %v7656_v1, %v7655_v49 }
 0x51d   :  { %v7597_v42 = vadd.f32 %v14256_v36, %v7528_v43  ;;  %v7529_v13 = vmul.f32 %v11553_v28, %v14250_v15  ;;  %v9814_v28 = vunpack.c.h.bf16 %v10092_v51 }
 0x51e   :  { %v7595_v55 = vadd.f32 %v14256_v36, %v7526_v41  ;;  %v7527_v27 = vmul.f32 %v11554_v22, %v14250_v15  ;;  %11467 = vmatprep.mubr.bf16.mxu0 %v7691_v46  ;;  %v10091_v15 = vld [vmem:[#allocation4 + $0x8] sm:$0xff]  }
 0x51f   :  { %v7598_v38 = vadd.f32 %v14256_v36, %v7529_v13  ;;  %11468 = vmatmul.mubr.bf16.gmra.mrb[184].mxu0 %v7692_v50  ;;  %v7661_v53 = vmax.f32 %v7597_v42, 0.0  ;;  %v9809_v39 = vunpack.c.l.bf16 %v10091_v15  ;;  %v9810_v60 = vunpack.c.h.bf16 %v10091_v15  ;;  %v10095_v22 = vld [vmem:[#allocation4 + $0x28] sm:$0xff]   ;;  %v10094_v42 = vld [vmem:[#allocation4 + $0x20] sm:$0xff]  }
 0x520   :  { %v7596_v35 = vadd.f32 %v14256_v36, %v7527_v27  ;;  %v7659_v57 = vmax.f32 %v7595_v55, 0.0  ;;  %v14457_v36 = vld [vmem:[%s14606_s4 + $0x5] ss:$0 sm:$0xff]  ;;  %s12270_s4 = smov [#allocation12]  }
 0x521   :  { %v7662_v8 = vmax.f32 %v7598_v38, 0.0  ;;  %s8767_s7 = sshll.u32 %s12270_s4, 4  ;;  %s8768_s7 = int_to_ptr.vmem [resolvable:$true] %s8767_s7 }
 0x522   :  { %v7660_v12 = vmax.f32 %v7596_v35, 0.0  ;;  %s12231_s8 = scalar_lea.vmem %s8768_s7, 4096  ;;  %p12236_p5 = scmp.lt.s32.totalorder %s8768_s7, %s8768_s7 }
 0x523   :  { %v7694_v56 = vpack.c.bf16 %v7662_v8, %v7661_v53  ;;  %v9825_v53 = vunpack.c.l.bf16 %v10095_v22  ;;  %p12232_p4 = scmp.ne.s32.totalorder %s8768_s7, %s12231_s8  ;;  %p12237_p6 = scmp.lt.s32.totalorder %s12231_s8, %s12231_s8 }
 0x524   :  { %v7693_v18 = vpack.c.bf16 %v7660_v12, %v7659_v57 }
 0x525   :  { %p12238_p7 = por %p12237_p6, %p12236_p5 }
 0x526   :  { %11471 = vmatprep.mubr.bf16.mxu0 %v7693_v18  ;;  %v9821_v18 = vunpack.c.l.bf16 %v10094_v42 }
 0x527   :  { %11472 = vmatmul.mubr.bf16.gmra.mrb[188].mxu0 %v7694_v56  ;;  %p12239_p8 = pnand %p12238_p7, %p12232_p4 }
 0x582   :  { %v11413_v6 = vpop.f32.mrb[128].mxu0 }
 0x583   :  { %v8055_v14 = vmul.f32 %v11413_v6, %v14452_v19  ;;  %v7793_v31 = vpop.f32.mrb[129].mxu0 }
 0x584   :  { %v8053_v10 = vmul.f32 %v14452_v19, %v7793_v31  ;;  %v11414_v3 = vpop.f32.mrb[130].mxu0 }
 0x585   :  { %v8124_v44 = vadd.f32 %v14457_v36, %v8055_v14  ;;  %v8056_v25 = vmul.f32 %v11414_v3, %v14452_v19  ;;  %v7796_v4 = vpop.f32.mrb[131].mxu0 }
 0x586   :  { %v8122_v32 = vadd.f32 %v14457_v36, %v8053_v10  ;;  %v8054_v37 = vmul.f32 %v14452_v19, %v7796_v4 }
 0x587   :  { %v8316_v2 = vadd.f32 %v9809_v39, %v8124_v44  ;;  %v8125_v9 = vadd.f32 %v14457_v36, %v8056_v25  ;;  %v9826_v39 = vunpack.c.h.bf16 %v10095_v22  ;;  %v9822_v44 = vunpack.c.h.bf16 %v10094_v42 }
 0x588   :  { %v8314_v5 = vadd.f32 %v9805_v33, %v8122_v32  ;;  %v8123_v7 = vadd.f32 %v14457_v36, %v8054_v37  ;;  %v10097_v37 = vld [vmem:[#allocation4 + $0x38] sm:$0xff]  }
 0x589   :  { %v8317_v29 = vadd.f32 %v9810_v60, %v8125_v9  ;;  %v8380_v63 = vmax.f32 %v8316_v2, 0.0  ;;  %v10096_v2 = vld [vmem:[#allocation4 + $0x30] sm:$0xff]   ;;  %v9833_v51 = vunpack.c.l.bf16 %v10097_v37 }
 0x58a   :  { %v8315_v30 = vadd.f32 %v9806_v20, %v8123_v7  ;;  %v11417_v52 = vpop.f32.mrb[132].mxu0  ;;  %v8378_v47 = vmax.f32 %v8314_v5, 0.0 }
 0x58b   :  { %v8381_v61 = vmax.f32 %v8317_v29, 0.0  ;;  %v8059_v48 = vmul.f32 %v11417_v52, %v14452_v19  ;;  %v7809_v34 = vpop.f32.mrb[133].mxu0 }
 0x58c   :  { %v8379_v0 = vmax.f32 %v8315_v30, 0.0  ;;  %v8057_v23 = vmul.f32 %v14452_v19, %v7809_v34  ;;  %v11418_v59 = vpop.f32.mrb[134].mxu0 }
 0x58d   :  { %v9939_v62 = vpack.c.bf16 %v8381_v61, %v8380_v63  ;;  %v8128_v49 = vadd.f32 %v14457_v36, %v8059_v48  ;;  %v8060_v1 = vmul.f32 %v11418_v59, %v14452_v19  ;;  %v7812_v45 = vpop.f32.mrb[135].mxu0  ;;  %v9829_v48 = vunpack.c.l.bf16 %v10096_v2 }
 0x58e   :  { %v9934_v17 = vpack.c.bf16 %v8379_v0, %v8378_v47  ;;  %v8126_v43 = vadd.f32 %v14457_v36, %v8057_v23  ;;  %v8058_v11 = vmul.f32 %v14452_v19, %v7812_v45  ;;  %v9834_v23 = vunpack.c.h.bf16 %v10097_v37 }
 0x58f   :  { %10122 = vst [vmem:[#allocation12 + $0x8] sm:$0xff] %v9939_v62   ;;  %v8320_v21 = vadd.f32 %v9817_v54, %v8128_v49  ;;  %v8129_v50 = vadd.f32 %v14457_v36, %v8060_v1  ;;  %v9830_v1 = vunpack.c.h.bf16 %v10096_v2 }
 0x590   :  { %9935 = vst [vmem:[#allocation12] sm:$0xff] %v9934_v17   ;;  %v8318_v41 = vadd.f32 %v9813_v26, %v8126_v43  ;;  %v8127_v58 = vadd.f32 %v14457_v36, %v8058_v11  ;;  %v10099_v11 = vld [vmem:[#allocation4 + $0x48] sm:$0xff]  }
 0x591   :  { %v8321_v46 = vadd.f32 %v9818_v40, %v8129_v50  ;;  %v8384_v27 = vmax.f32 %v8320_v21, 0.0  ;;  %v10098_v21 = vld [vmem:[#allocation4 + $0x40] sm:$0xff]   ;;  %v9841_v42 = vunpack.c.l.bf16 %v10099_v11 }
 0x592   :  { %v8319_v13 = vadd.f32 %v9814_v28, %v8127_v58  ;;  %v11421_v55 = vpop.f32.mrb[136].mxu0  ;;  %v8382_v57 = vmax.f32 %v8318_v41, 0.0 }
 0x593   :  { %v8385_v38 = vmax.f32 %v8321_v46, 0.0  ;;  %v8063_v35 = vmul.f32 %v11421_v55, %v14452_v19  ;;  %v7825_v8 = vpop.f32.mrb[137].mxu0 }
 0x594   :  { %v8383_v12 = vmax.f32 %v8319_v13, 0.0  ;;  %v8061_v56 = vmul.f32 %v14452_v19, %v7825_v8  ;;  %v11422_v15 = vpop.f32.mrb[138].mxu0 }
 0x595   :  { %v9949_v24 = vpack.c.bf16 %v8385_v38, %v8384_v27  ;;  %v8132_v6 = vadd.f32 %v14457_v36, %v8063_v35  ;;  %v8064_v14 = vmul.f32 %v11422_v15, %v14452_v19  ;;  %v7828_v31 = vpop.f32.mrb[139].mxu0  ;;  %v9837_v35 = vunpack.c.l.bf16 %v10098_v21 }
 0x596   :  { %v9944_v10 = vpack.c.bf16 %v8383_v12, %v8382_v57  ;;  %v8130_v33 = vadd.f32 %v14457_v36, %v8061_v56  ;;  %v8062_v3 = vmul.f32 %v14452_v19, %v7828_v31  ;;  %v9842_v56 = vunpack.c.h.bf16 %v10099_v11 }
 0x597   :  { %10124 = vst [vmem:[#allocation12 + $0x18] sm:$0xff] %v9949_v24   ;;  %v8324_v25 = vadd.f32 %v9825_v53, %v8132_v6  ;;  %v8133_v60 = vadd.f32 %v14457_v36, %v8064_v14  ;;  %v9838_v14 = vunpack.c.h.bf16 %v10098_v21 }
 0x598   :  { %10123 = vst [vmem:[#allocation12 + $0x10] sm:$0xff] %v9944_v10   ;;  %v8322_v4 = vadd.f32 %v9821_v18, %v8130_v33  ;;  %v8131_v32 = vadd.f32 %v14457_v36, %v8062_v3  ;;  %v10101_v3 = vld [vmem:[#allocation4 + $0x58] sm:$0xff]  }
 0x599   :  { %v8325_v20 = vadd.f32 %v9826_v39, %v8133_v60  ;;  %v8388_v7 = vmax.f32 %v8324_v25, 0.0  ;;  %v10100_v25 = vld [vmem:[#allocation4 + $0x50] sm:$0xff]   ;;  %v9849_v2 = vunpack.c.l.bf16 %v10101_v3 }
 0x59a   :  { %v8323_v9 = vadd.f32 %v9822_v44, %v8131_v32  ;;  %v11425_v5 = vpop.f32.mrb[140].mxu0  ;;  %v8386_v52 = vmax.f32 %v8322_v4, 0.0 }
 0x59b   :  { %v8389_v16 = vmax.f32 %v8325_v20, 0.0  ;;  %v8067_v29 = vmul.f32 %v11425_v5, %v14452_v19  ;;  %v7841_v30 = vpop.f32.mrb[141].mxu0 }
 0x59c   :  { %v8387_v63 = vmax.f32 %v8323_v9, 0.0  ;;  %v8065_v61 = vmul.f32 %v14452_v19, %v7841_v30  ;;  %v11426_v54 = vpop.f32.mrb[142].mxu0 }
 0x59d   :  { %v9959_v34 = vpack.c.bf16 %v8389_v16, %v8388_v7  ;;  %v8136_v47 = vadd.f32 %v14457_v36, %v8067_v29  ;;  %v8068_v0 = vmul.f32 %v11426_v54, %v14452_v19  ;;  %v7844_v26 = vpop.f32.mrb[143].mxu0  ;;  %v9845_v29 = vunpack.c.l.bf16 %v10100_v25 }
 0x59e   :  { %v9954_v59 = vpack.c.bf16 %v8387_v63, %v8386_v52  ;;  %v8134_v62 = vadd.f32 %v14457_v36, %v8065_v61  ;;  %v8066_v49 = vmul.f32 %v14452_v19, %v7844_v26  ;;  %v9850_v61 = vunpack.c.h.bf16 %v10101_v3 }
 0x59f   :  { %10126 = vst [vmem:[#allocation12 + $0x28] sm:$0xff] %v9959_v34   ;;  %v8328_v40 = vadd.f32 %v9833_v51, %v8136_v47  ;;  %v8137_v45 = vadd.f32 %v14457_v36, %v8068_v0  ;;  %v9846_v0 = vunpack.c.h.bf16 %v10100_v25 }
 0x5a0   :  { %10125 = vst [vmem:[#allocation12 + $0x20] sm:$0xff] %v9954_v59   ;;  %v8326_v17 = vadd.f32 %v9829_v48, %v8134_v62  ;;  %v8135_v43 = vadd.f32 %v14457_v36, %v8066_v49  ;;  %v10103_v49 = vld [vmem:[#allocation4 + $0x68] sm:$0xff]  }
 0x5a1   :  { %v8329_v28 = vadd.f32 %v9834_v23, %v8137_v45  ;;  %v8392_v58 = vmax.f32 %v8328_v40, 0.0  ;;  %v10102_v40 = vld [vmem:[#allocation4 + $0x60] sm:$0xff]   ;;  %v9857_v21 = vunpack.c.l.bf16 %v10103_v49 }
 0x5a2   :  { %v8327_v50 = vadd.f32 %v9830_v1, %v8135_v43  ;;  %v11429_v41 = vpop.f32.mrb[144].mxu0  ;;  %v8390_v55 = vmax.f32 %v8326_v17, 0.0 }
 0x5a3   :  { %v8393_v22 = vmax.f32 %v8329_v28, 0.0  ;;  %v8071_v46 = vmul.f32 %v11429_v41, %v14452_v19  ;;  %v7857_v13 = vpop.f32.mrb[145].mxu0 }
 0x5a4   :  { %v8391_v27 = vmax.f32 %v8327_v50, 0.0  ;;  %v8069_v38 = vmul.f32 %v14452_v19, %v7857_v13  ;;  %v11430_v53 = vpop.f32.mrb[146].mxu0 }
 0x5a5   :  { %v9969_v8 = vpack.c.bf16 %v8393_v22, %v8392_v58  ;;  %v8140_v57 = vadd.f32 %v14457_v36, %v8071_v46  ;;  %v8072_v12 = vmul.f32 %v11430_v53, %v14452_v19  ;;  %v7860_v18 = vpop.f32.mrb[147].mxu0  ;;  %v9853_v46 = vunpack.c.l.bf16 %v10102_v40 }
 0x5a6   :  { %v9964_v15 = vpack.c.bf16 %v8391_v27, %v8390_v55  ;;  %v8138_v24 = vadd.f32 %v14457_v36, %v8069_v38  ;;  %v8070_v6 = vmul.f32 %v14452_v19, %v7860_v18  ;;  %v9858_v38 = vunpack.c.h.bf16 %v10103_v49 }
 0x5a7   :  { %10128 = vst [vmem:[#allocation12 + $0x38] sm:$0xff] %v9969_v8   ;;  %v8332_v39 = vadd.f32 %v9841_v42, %v8140_v57  ;;  %v8141_v31 = vadd.f32 %v14457_v36, %v8072_v12  ;;  %v9854_v12 = vunpack.c.h.bf16 %v10102_v40 }
 0x5a8   :  { %10127 = vst [vmem:[#allocation12 + $0x30] sm:$0xff] %v9964_v15   ;;  %v8330_v10 = vadd.f32 %v9837_v35, %v8138_v24  ;;  %v8139_v33 = vadd.f32 %v14457_v36, %v8070_v6  ;;  %v10105_v6 = vld [vmem:[#allocation4 + $0x78] sm:$0xff]  }
 0x5a9   :  { %v8333_v44 = vadd.f32 %v9842_v56, %v8141_v31  ;;  %v8396_v32 = vmax.f32 %v8332_v39, 0.0  ;;  %v10104_v39 = vld [vmem:[#allocation4 + $0x70] sm:$0xff]   ;;  %v9865_v25 = vunpack.c.l.bf16 %v10105_v6 }
 0x5aa   :  { %v8331_v60 = vadd.f32 %v9838_v14, %v8139_v33  ;;  %v11433_v4 = vpop.f32.mrb[148].mxu0  ;;  %v8394_v5 = vmax.f32 %v8330_v10, 0.0 }
 0x5ab   :  { %v8397_v37 = vmax.f32 %v8333_v44, 0.0  ;;  %v8075_v20 = vmul.f32 %v11433_v4, %v14452_v19  ;;  %v7873_v9 = vpop.f32.mrb[149].mxu0 }
 0x5ac   :  { %v8395_v7 = vmax.f32 %v8331_v60, 0.0  ;;  %v8073_v16 = vmul.f32 %v14452_v19, %v7873_v9  ;;  %v11434_v51 = vpop.f32.mrb[150].mxu0 }
 0x5ad   :  { %v9979_v30 = vpack.c.bf16 %v8397_v37, %v8396_v32  ;;  %v8144_v52 = vadd.f32 %v14457_v36, %v8075_v20  ;;  %v8076_v63 = vmul.f32 %v11434_v51, %v14452_v19  ;;  %v7876_v48 = vpop.f32.mrb[151].mxu0  ;;  %v9861_v20 = vunpack.c.l.bf16 %v10104_v39 }
 0x5ae   :  { %v9974_v54 = vpack.c.bf16 %v8395_v7, %v8394_v5  ;;  %v8142_v34 = vadd.f32 %v14457_v36, %v8073_v16  ;;  %v8074_v47 = vmul.f32 %v14452_v19, %v7876_v48  ;;  %v9866_v16 = vunpack.c.h.bf16 %v10105_v6 }
 0x5af   :  { %10130 = vst [vmem:[#allocation12 + $0x48] sm:$0xff] %v9979_v30   ;;  %v8336_v23 = vadd.f32 %v9849_v2, %v8144_v52  ;;  %v8145_v26 = vadd.f32 %v14457_v36, %v8076_v63  ;;  %v9862_v63 = vunpack.c.h.bf16 %v10104_v39 }
 0x5b0   :  { %10129 = vst [vmem:[#allocation12 + $0x40] sm:$0xff] %v9974_v54   ;;  %v8334_v59 = vadd.f32 %v9845_v29, %v8142_v34  ;;  %v8143_v62 = vadd.f32 %v14457_v36, %v8074_v47  ;;  %v10107_v47 = vld [vmem:[#allocation4 + $0x88] sm:$0xff]  }
 0x5b1   :  { %v8337_v1 = vadd.f32 %v9850_v61, %v8145_v26  ;;  %v8400_v43 = vmax.f32 %v8336_v23, 0.0  ;;  %v10106_v23 = vld [vmem:[#allocation4 + $0x80] sm:$0xff]   ;;  %v9873_v40 = vunpack.c.l.bf16 %v10107_v47 }
 0x5b2   :  { %v8335_v45 = vadd.f32 %v9846_v0, %v8143_v62  ;;  %v11437_v17 = vpop.f32.mrb[152].mxu0  ;;  %v8398_v41 = vmax.f32 %v8334_v59, 0.0 }
 0x5b3   :  { %v8401_v11 = vmax.f32 %v8337_v1, 0.0  ;;  %v8079_v28 = vmul.f32 %v11437_v17, %v14452_v19  ;;  %v7889_v50 = vpop.f32.mrb[153].mxu0 }
 0x5b4   :  { %v8399_v58 = vmax.f32 %v8335_v45, 0.0  ;;  %v8077_v22 = vmul.f32 %v14452_v19, %v7889_v50  ;;  %v11438_v42 = vpop.f32.mrb[154].mxu0 }
 0x5b5   :  { %v9989_v13 = vpack.c.bf16 %v8401_v11, %v8400_v43  ;;  %v8148_v55 = vadd.f32 %v14457_v36, %v8079_v28  ;;  %v8080_v27 = vmul.f32 %v11438_v42, %v14452_v19  ;;  %v7892_v35 = vpop.f32.mrb[155].mxu0  ;;  %v9869_v28 = vunpack.c.l.bf16 %v10106_v23 }
 0x5b6   :  { %v9984_v53 = vpack.c.bf16 %v8399_v58, %v8398_v41  ;;  %v8146_v8 = vadd.f32 %v14457_v36, %v8077_v22  ;;  %v8078_v57 = vmul.f32 %v14452_v19, %v7892_v35  ;;  %v9874_v22 = vunpack.c.h.bf16 %v10107_v47 }
 0x5b7   :  { %10132 = vst [vmem:[#allocation12 + $0x58] sm:$0xff] %v9989_v13   ;;  %v8340_v56 = vadd.f32 %v9857_v21, %v8148_v55  ;;  %v8149_v18 = vadd.f32 %v14457_v36, %v8080_v27  ;;  %v9870_v27 = vunpack.c.h.bf16 %v10106_v23 }
 0x5b8   :  { %10131 = vst [vmem:[#allocation12 + $0x50] sm:$0xff] %v9984_v53   ;;  %v8338_v15 = vadd.f32 %v9853_v46, %v8146_v8  ;;  %v8147_v24 = vadd.f32 %v14457_v36, %v8078_v57  ;;  %v10109_v57 = vld [vmem:[#allocation4 + $0x98] sm:$0xff]  }
 0x5b9   :  { %v8341_v14 = vadd.f32 %v9858_v38, %v8149_v18  ;;  %v8404_v33 = vmax.f32 %v8340_v56, 0.0  ;;  %v10108_v56 = vld [vmem:[#allocation4 + $0x90] sm:$0xff]   ;;  %v9881_v39 = vunpack.c.l.bf16 %v10109_v57 }
 0x5ba   :  { %v8339_v31 = vadd.f32 %v9854_v12, %v8147_v24  ;;  %v11441_v10 = vpop.f32.mrb[156].mxu0  ;;  %v8402_v4 = vmax.f32 %v8338_v15, 0.0 }
 0x5bb   :  { %v8405_v3 = vmax.f32 %v8341_v14, 0.0  ;;  %v8083_v44 = vmul.f32 %v11441_v10, %v14452_v19  ;;  %v7905_v60 = vpop.f32.mrb[157].mxu0 }
 0x5bc   :  { %v8403_v32 = vmax.f32 %v8339_v31, 0.0  ;;  %v8081_v37 = vmul.f32 %v14452_v19, %v7905_v60  ;;  %v11442_v2 = vpop.f32.mrb[158].mxu0 }
 0x5bd   :  { %v9999_v9 = vpack.c.bf16 %v8405_v3, %v8404_v33  ;;  %v8152_v5 = vadd.f32 %v14457_v36, %v8083_v44  ;;  %v8084_v7 = vmul.f32 %v11442_v2, %v14452_v19  ;;  %v7908_v29 = vpop.f32.mrb[159].mxu0  ;;  %v9877_v44 = vunpack.c.l.bf16 %v10108_v56 }
 0x5be   :  { %v9994_v51 = vpack.c.bf16 %v8403_v32, %v8402_v4  ;;  %v8150_v30 = vadd.f32 %v14457_v36, %v8081_v37  ;;  %v8082_v52 = vmul.f32 %v14452_v19, %v7908_v29  ;;  %v9882_v37 = vunpack.c.h.bf16 %v10109_v57 }
 0x5bf   :  { %10134 = vst [vmem:[#allocation12 + $0x68] sm:$0xff] %v9999_v9   ;;  %v8344_v61 = vadd.f32 %v9865_v25, %v8152_v5  ;;  %v8153_v48 = vadd.f32 %v14457_v36, %v8084_v7  ;;  %v9878_v7 = vunpack.c.h.bf16 %v10108_v56 }
 0x5c0   :  { %10133 = vst [vmem:[#allocation12 + $0x60] sm:$0xff] %v9994_v51   ;;  %v8342_v54 = vadd.f32 %v9861_v20, %v8150_v30  ;;  %v8151_v34 = vadd.f32 %v14457_v36, %v8082_v52  ;;  %v10111_v52 = vld [vmem:[#allocation4 + $0xa8] sm:$0xff]  }
 0x5c1   :  { %v8345_v0 = vadd.f32 %v9866_v16, %v8153_v48  ;;  %v8408_v62 = vmax.f32 %v8344_v61, 0.0  ;;  %v10110_v61 = vld [vmem:[#allocation4 + $0xa0] sm:$0xff]   ;;  %v9889_v23 = vunpack.c.l.bf16 %v10111_v52 }
 0x5c2   :  { %v8343_v26 = vadd.f32 %v9862_v63, %v8151_v34  ;;  %v11445_v59 = vpop.f32.mrb[160].mxu0  ;;  %v8406_v17 = vmax.f32 %v8342_v54, 0.0 }
 0x5c3   :  { %v8409_v49 = vmax.f32 %v8345_v0, 0.0  ;;  %v8087_v1 = vmul.f32 %v11445_v59, %v14452_v19  ;;  %v7921_v45 = vpop.f32.mrb[161].mxu0 }
 0x5c4   :  { %v8407_v43 = vmax.f32 %v8343_v26, 0.0  ;;  %v8085_v11 = vmul.f32 %v14452_v19, %v7921_v45  ;;  %v11446_v21 = vpop.f32.mrb[162].mxu0 }
 0x5c5   :  { %v10009_v50 = vpack.c.bf16 %v8409_v49, %v8408_v62  ;;  %v8156_v41 = vadd.f32 %v14457_v36, %v8087_v1  ;;  %v8088_v58 = vmul.f32 %v11446_v21, %v14452_v19  ;;  %v7924_v46 = vpop.f32.mrb[163].mxu0  ;;  %v9885_v1 = vunpack.c.l.bf16 %v10110_v61 }
 0x5c6   :  { %v10004_v42 = vpack.c.bf16 %v8407_v43, %v8406_v17  ;;  %v8154_v13 = vadd.f32 %v14457_v36, %v8085_v11  ;;  %v8086_v55 = vmul.f32 %v14452_v19, %v7924_v46  ;;  %v9890_v11 = vunpack.c.h.bf16 %v10111_v52 }
 0x5c7   :  { %10136 = vst [vmem:[#allocation12 + $0x78] sm:$0xff] %v10009_v50   ;;  %v8348_v38 = vadd.f32 %v9873_v40, %v8156_v41  ;;  %v8157_v35 = vadd.f32 %v14457_v36, %v8088_v58  ;;  %v9886_v58 = vunpack.c.h.bf16 %v10110_v61 }
 0x5c8   :  { %10135 = vst [vmem:[#allocation12 + $0x70] sm:$0xff] %v10004_v42   ;;  %v8346_v53 = vadd.f32 %v9869_v28, %v8154_v13  ;;  %v8155_v8 = vadd.f32 %v14457_v36, %v8086_v55  ;;  %v10113_v55 = vld [vmem:[#allocation4 + $0xb8] sm:$0xff]  }
 0x5c9   :  { %v8349_v12 = vadd.f32 %v9874_v22, %v8157_v35  ;;  %v8412_v24 = vmax.f32 %v8348_v38, 0.0  ;;  %v10112_v38 = vld [vmem:[#allocation4 + $0xb0] sm:$0xff]   ;;  %v9897_v56 = vunpack.c.l.bf16 %v10113_v55 }
 0x5ca   :  { %v8347_v18 = vadd.f32 %v9870_v27, %v8155_v8  ;;  %v11449_v15 = vpop.f32.mrb[164].mxu0  ;;  %v8410_v10 = vmax.f32 %v8346_v53, 0.0 }
 0x5cb   :  { %v8413_v6 = vmax.f32 %v8349_v12, 0.0  ;;  %v8091_v14 = vmul.f32 %v11449_v15, %v14452_v19  ;;  %v7937_v31 = vpop.f32.mrb[165].mxu0 }
 0x5cc   :  { %v8411_v33 = vmax.f32 %v8347_v18, 0.0  ;;  %v8089_v3 = vmul.f32 %v14452_v19, %v7937_v31  ;;  %v11450_v25 = vpop.f32.mrb[166].mxu0 }
 0x5cd   :  { %v10019_v60 = vpack.c.bf16 %v8413_v6, %v8412_v24  ;;  %v8160_v4 = vadd.f32 %v14457_v36, %v8091_v14  ;;  %v8092_v32 = vmul.f32 %v11450_v25, %v14452_v19  ;;  %v7940_v20 = vpop.f32.mrb[167].mxu0  ;;  %v9893_v14 = vunpack.c.l.bf16 %v10112_v38 }
 0x5ce   :  { %v10014_v2 = vpack.c.bf16 %v8411_v33, %v8410_v10  ;;  %v8158_v9 = vadd.f32 %v14457_v36, %v8089_v3  ;;  %v8090_v5 = vmul.f32 %v14452_v19, %v7940_v20  ;;  %v9898_v3 = vunpack.c.h.bf16 %v10113_v55 }
 0x5cf   :  { %10138 = vst [vmem:[#allocation12 + $0x88] sm:$0xff] %v10019_v60   ;;  %v8352_v16 = vadd.f32 %v9881_v39, %v8160_v4  ;;  %v8161_v29 = vadd.f32 %v14457_v36, %v8092_v32  ;;  %v9894_v32 = vunpack.c.h.bf16 %v10112_v38 }
 0x5d0   :  { %10137 = vst [vmem:[#allocation12 + $0x80] sm:$0xff] %v10014_v2   ;;  %v8350_v51 = vadd.f32 %v9877_v44, %v8158_v9  ;;  %v8159_v30 = vadd.f32 %v14457_v36, %v8090_v5  ;;  %v10115_v5 = vld [vmem:[#allocation4 + $0xc8] sm:$0xff]  }
 0x5d1   :  { %v8353_v63 = vadd.f32 %v9882_v37, %v8161_v29  ;;  %v8416_v34 = vmax.f32 %v8352_v16, 0.0  ;;  %v10114_v16 = vld [vmem:[#allocation4 + $0xc0] sm:$0xff]   ;;  %v9905_v61 = vunpack.c.l.bf16 %v10115_v5 }
 0x5d2   :  { %v8351_v48 = vadd.f32 %v9878_v7, %v8159_v30  ;;  %v11453_v54 = vpop.f32.mrb[168].mxu0  ;;  %v8414_v59 = vmax.f32 %v8350_v51, 0.0 }
 0x5d3   :  { %v8417_v47 = vmax.f32 %v8353_v63, 0.0  ;;  %v8095_v0 = vmul.f32 %v11453_v54, %v14452_v19  ;;  %v7953_v26 = vpop.f32.mrb[169].mxu0 }
 0x5d4   :  { %v8415_v62 = vmax.f32 %v8351_v48, 0.0  ;;  %v8093_v49 = vmul.f32 %v14452_v19, %v7953_v26  ;;  %v11454_v40 = vpop.f32.mrb[170].mxu0 }
 0x5d5   :  { %v10029_v45 = vpack.c.bf16 %v8417_v47, %v8416_v34  ;;  %v8164_v17 = vadd.f32 %v14457_v36, %v8095_v0  ;;  %v8096_v43 = vmul.f32 %v11454_v40, %v14452_v19  ;;  %v7956_v28 = vpop.f32.mrb[171].mxu0  ;;  %v9901_v0 = vunpack.c.l.bf16 %v10114_v16 }
 0x5d6   :  { %v10024_v21 = vpack.c.bf16 %v8415_v62, %v8414_v59  ;;  %v8162_v50 = vadd.f32 %v14457_v36, %v8093_v49  ;;  %v8094_v41 = vmul.f32 %v14452_v19, %v7956_v28  ;;  %v9906_v49 = vunpack.c.h.bf16 %v10115_v5 }
 0x5d7   :  { %10140 = vst [vmem:[#allocation12 + $0x98] sm:$0xff] %v10029_v45   ;;  %v8356_v22 = vadd.f32 %v9889_v23, %v8164_v17  ;;  %v8165_v46 = vadd.f32 %v14457_v36, %v8096_v43  ;;  %v9902_v43 = vunpack.c.h.bf16 %v10114_v16 }
 0x5d8   :  { %10139 = vst [vmem:[#allocation12 + $0x90] sm:$0xff] %v10024_v21   ;;  %v8354_v42 = vadd.f32 %v9885_v1, %v8162_v50  ;;  %v8163_v13 = vadd.f32 %v14457_v36, %v8094_v41  ;;  %v10117_v41 = vld [vmem:[#allocation4 + $0xd8] sm:$0xff]  }
 0x5d9   :  { %v8357_v27 = vadd.f32 %v9890_v11, %v8165_v46  ;;  %v8420_v8 = vmax.f32 %v8356_v22, 0.0  ;;  %v10116_v22 = vld [vmem:[#allocation4 + $0xd0] sm:$0xff]   ;;  %v9913_v38 = vunpack.c.l.bf16 %v10117_v41 }
 0x5da   :  { %v8355_v35 = vadd.f32 %v9886_v58, %v8163_v13  ;;  %v11457_v53 = vpop.f32.mrb[172].mxu0  ;;  %v8418_v15 = vmax.f32 %v8354_v42, 0.0 }
 0x5db   :  { %v8421_v57 = vmax.f32 %v8357_v27, 0.0  ;;  %v8099_v12 = vmul.f32 %v11457_v53, %v14452_v19  ;;  %v7969_v18 = vpop.f32.mrb[173].mxu0 }
 0x5dc   :  { %v8419_v24 = vmax.f32 %v8355_v35, 0.0  ;;  %v8097_v6 = vmul.f32 %v14452_v19, %v7969_v18  ;;  %v11458_v39 = vpop.f32.mrb[174].mxu0 }
 0x5dd   :  { %v10039_v31 = vpack.c.bf16 %v8421_v57, %v8420_v8  ;;  %v8168_v10 = vadd.f32 %v14457_v36, %v8099_v12  ;;  %v8100_v33 = vmul.f32 %v11458_v39, %v14452_v19  ;;  %v7972_v44 = vpop.f32.mrb[175].mxu0  ;;  %v9909_v12 = vunpack.c.l.bf16 %v10116_v22 }
 0x5de   :  { %v10034_v25 = vpack.c.bf16 %v8419_v24, %v8418_v15  ;;  %v8166_v60 = vadd.f32 %v14457_v36, %v8097_v6  ;;  %v8098_v4 = vmul.f32 %v14452_v19, %v7972_v44  ;;  %v9914_v6 = vunpack.c.h.bf16 %v10117_v41 }
 0x5df   :  { %10142 = vst [vmem:[#allocation12 + $0xa8] sm:$0xff] %v10039_v31   ;;  %v8360_v37 = vadd.f32 %v9897_v56, %v8168_v10  ;;  %v8169_v20 = vadd.f32 %v14457_v36, %v8100_v33  ;;  %v9910_v33 = vunpack.c.h.bf16 %v10116_v22 }
 0x5e0   :  { %10141 = vst [vmem:[#allocation12 + $0xa0] sm:$0xff] %v10034_v25   ;;  %v8358_v2 = vadd.f32 %v9893_v14, %v8166_v60  ;;  %v8167_v9 = vadd.f32 %v14457_v36, %v8098_v4  ;;  %v10119_v4 = vld [vmem:[#allocation4 + $0xe8] sm:$0xff]  }
 0x5e1   :  { %v8361_v7 = vadd.f32 %v9898_v3, %v8169_v20  ;;  %v8424_v30 = vmax.f32 %v8360_v37, 0.0  ;;  %v10118_v37 = vld [vmem:[#allocation4 + $0xe0] sm:$0xff]   ;;  %v9921_v16 = vunpack.c.l.bf16 %v10119_v4 }
 0x5e2   :  { %v8359_v29 = vadd.f32 %v9894_v32, %v8167_v9  ;;  %v11461_v51 = vpop.f32.mrb[176].mxu0  ;;  %v8422_v54 = vmax.f32 %v8358_v2, 0.0 }
 0x5e3   :  { %v8425_v52 = vmax.f32 %v8361_v7, 0.0  ;;  %v8103_v63 = vmul.f32 %v11461_v51, %v14452_v19  ;;  %v7985_v48 = vpop.f32.mrb[177].mxu0 }
 0x5e4   :  { %v8423_v34 = vmax.f32 %v8359_v29, 0.0  ;;  %v8101_v47 = vmul.f32 %v14452_v19, %v7985_v48  ;;  %v11462_v23 = vpop.f32.mrb[178].mxu0 }
 0x5e5   :  { %v10049_v26 = vpack.c.bf16 %v8425_v52, %v8424_v30  ;;  %v8172_v59 = vadd.f32 %v14457_v36, %v8103_v63  ;;  %v8104_v62 = vmul.f32 %v11462_v23, %v14452_v19  ;;  %v7988_v1 = vpop.f32.mrb[179].mxu0  ;;  %v9917_v63 = vunpack.c.l.bf16 %v10118_v37 }
 0x5e6   :  { %v10044_v40 = vpack.c.bf16 %v8423_v34, %v8422_v54  ;;  %v8170_v45 = vadd.f32 %v14457_v36, %v8101_v47  ;;  %v8102_v17 = vmul.f32 %v14452_v19, %v7988_v1  ;;  %v9922_v47 = vunpack.c.h.bf16 %v10119_v4 }
 0x5e7   :  { %10144 = vst [vmem:[#allocation12 + $0xb8] sm:$0xff] %v10049_v26   ;;  %v8364_v11 = vadd.f32 %v9905_v61, %v8172_v59  ;;  %v8173_v28 = vadd.f32 %v14457_v36, %v8104_v62  ;;  %v9918_v62 = vunpack.c.h.bf16 %v10118_v37 }
 0x5e8   :  { %10143 = vst [vmem:[#allocation12 + $0xb0] sm:$0xff] %v10044_v40   ;;  %v8362_v21 = vadd.f32 %v9901_v0, %v8170_v45  ;;  %v8171_v50 = vadd.f32 %v14457_v36, %v8102_v17  ;;  %v10121_v17 = vld [vmem:[#allocation4 + $0xf8] sm:$0xff]  }
 0x5e9   :  { %v8365_v58 = vadd.f32 %v9906_v49, %v8173_v28  ;;  %v8428_v13 = vmax.f32 %v8364_v11, 0.0  ;;  %v10120_v11 = vld [vmem:[#allocation4 + $0xf0] sm:$0xff]   ;;  %v9929_v22 = vunpack.c.l.bf16 %v10121_v17 }
 0x5ea   :  { %v8363_v46 = vadd.f32 %v9902_v43, %v8171_v50  ;;  %v11465_v42 = vpop.f32.mrb[180].mxu0  ;;  %v8426_v53 = vmax.f32 %v8362_v21, 0.0 }
 0x5eb   :  { %v8429_v55 = vmax.f32 %v8365_v58, 0.0  ;;  %v8107_v27 = vmul.f32 %v11465_v42, %v14452_v19  ;;  %v8001_v35 = vpop.f32.mrb[181].mxu0 }
 0x5ec   :  { %v8427_v8 = vmax.f32 %v8363_v46, 0.0  ;;  %v8105_v57 = vmul.f32 %v14452_v19, %v8001_v35  ;;  %v11466_v56 = vpop.f32.mrb[182].mxu0 }
 0x5ed   :  { %v10059_v18 = vpack.c.bf16 %v8429_v55, %v8428_v13  ;;  %v8176_v15 = vadd.f32 %v14457_v36, %v8107_v27  ;;  %v8108_v24 = vmul.f32 %v11466_v56, %v14452_v19  ;;  %v8004_v14 = vpop.f32.mrb[183].mxu0  ;;  %v9925_v27 = vunpack.c.l.bf16 %v10120_v11 }
 0x5ee   :  { %v10054_v39 = vpack.c.bf16 %v8427_v8, %v8426_v53  ;;  %v8174_v31 = vadd.f32 %v14457_v36, %v8105_v57  ;;  %v8106_v10 = vmul.f32 %v14452_v19, %v8004_v14  ;;  %v9930_v57 = vunpack.c.h.bf16 %v10121_v17 }
 0x5ef   :  { %10146 = vst [vmem:[#allocation12 + $0xc8] sm:$0xff] %v10059_v18   ;;  %v8368_v3 = vadd.f32 %v9913_v38, %v8176_v15  ;;  %v8177_v44 = vadd.f32 %v14457_v36, %v8108_v24  ;;  %v9926_v24 = vunpack.c.h.bf16 %v10120_v11 }
 0x5f0   :  { %10145 = vst [vmem:[#allocation12 + $0xc0] sm:$0xff] %v10054_v39   ;;  %v8366_v25 = vadd.f32 %v9909_v12, %v8174_v31  ;;  %v8175_v60 = vadd.f32 %v14457_v36, %v8106_v10 }
 0x5f1   :  { %v8369_v32 = vadd.f32 %v9914_v6, %v8177_v44  ;;  %v8432_v9 = vmax.f32 %v8368_v3, 0.0 }
 0x5f2   :  { %v8367_v20 = vadd.f32 %v9910_v33, %v8175_v60  ;;  %v11469_v2 = vpop.f32.mrb[184].mxu0  ;;  %v8430_v51 = vmax.f32 %v8366_v25, 0.0 }
 0x5f3   :  { %v8433_v5 = vmax.f32 %v8369_v32, 0.0  ;;  %v8111_v7 = vmul.f32 %v11469_v2, %v14452_v19  ;;  %v8017_v29 = vpop.f32.mrb[185].mxu0 }
 0x5f4   :  { %v8431_v30 = vmax.f32 %v8367_v20, 0.0  ;;  %v8109_v52 = vmul.f32 %v14452_v19, %v8017_v29  ;;  %v11470_v61 = vpop.f32.mrb[186].mxu0 }
 0x5f5   :  { %v10069_v48 = vpack.c.bf16 %v8433_v5, %v8432_v9  ;;  %v8180_v54 = vadd.f32 %v14457_v36, %v8111_v7  ;;  %v8112_v34 = vmul.f32 %v11470_v61, %v14452_v19  ;;  %v8020_v0 = vpop.f32.mrb[187].mxu0 }
 0x5f6   :  { %v10064_v23 = vpack.c.bf16 %v8431_v30, %v8430_v51  ;;  %v8178_v26 = vadd.f32 %v14457_v36, %v8109_v52  ;;  %v8110_v59 = vmul.f32 %v14452_v19, %v8020_v0 }
 0x5f7   :  { %10148 = vst [vmem:[#allocation12 + $0xd8] sm:$0xff] %v10069_v48   ;;  %v8372_v49 = vadd.f32 %v9921_v16, %v8180_v54  ;;  %v8181_v1 = vadd.f32 %v14457_v36, %v8112_v34 }
 0x5f8   :  { %10147 = vst [vmem:[#allocation12 + $0xd0] sm:$0xff] %v10064_v23   ;;  %v8370_v40 = vadd.f32 %v9917_v63, %v8178_v26  ;;  %v8179_v45 = vadd.f32 %v14457_v36, %v8110_v59 }
 0x5f9   :  { %v8373_v43 = vadd.f32 %v9922_v47, %v8181_v1  ;;  %v8436_v50 = vmax.f32 %v8372_v49, 0.0 }
 0x5fa   :  { %v8371_v28 = vadd.f32 %v9918_v62, %v8179_v45  ;;  %v11473_v21 = vpop.f32.mrb[188].mxu0  ;;  %v8434_v42 = vmax.f32 %v8370_v40, 0.0 }
 0x5fb   :  { %v8437_v41 = vmax.f32 %v8373_v43, 0.0  ;;  %v8115_v58 = vmul.f32 %v11473_v21, %v14452_v19  ;;  %v8033_v46 = vpop.f32.mrb[189].mxu0 }
 0x5fc   :  { %v8435_v13 = vmax.f32 %v8371_v28, 0.0  ;;  %v8113_v55 = vmul.f32 %v14452_v19, %v8033_v46  ;;  %v11474_v38 = vpop.f32.mrb[190].mxu0 }
 0x5fd   :  { %v10079_v35 = vpack.c.bf16 %v8437_v41, %v8436_v50  ;;  %v8184_v53 = vadd.f32 %v14457_v36, %v8115_v58  ;;  %v8116_v8 = vmul.f32 %v11474_v38, %v14452_v19  ;;  %v8036_v12 = vpop.f32.mrb[191].mxu0 }
 0x5fe   :  { %v10074_v56 = vpack.c.bf16 %v8435_v13, %v8434_v42  ;;  %v8182_v18 = vadd.f32 %v14457_v36, %v8113_v55  ;;  %v8114_v15 = vmul.f32 %v14452_v19, %v8036_v12 }
 0x5ff   :  { %10150 = vst [vmem:[#allocation12 + $0xe8] sm:$0xff] %v10079_v35   ;;  %v8376_v6 = vadd.f32 %v9929_v22, %v8184_v53  ;;  %v8185_v14 = vadd.f32 %v14457_v36, %v8116_v8 }
 0x600   :  { %10149 = vst [vmem:[#allocation12 + $0xe0] sm:$0xff] %v10074_v56   ;;  %v8374_v39 = vadd.f32 %v9925_v27, %v8182_v18  ;;  %v8183_v31 = vadd.f32 %v14457_v36, %v8114_v15 }
 0x601   :  { %v8377_v10 = vadd.f32 %v9930_v57, %v8185_v14  ;;  %v8440_v3 = vmax.f32 %v8376_v6, 0.0 }
 0x602   :  { %v8375_v33 = vadd.f32 %v9926_v24, %v8183_v31  ;;  %v8438_v25 = vmax.f32 %v8374_v39, 0.0 }
 0x603   :  { %v8441_v44 = vmax.f32 %v8377_v10, 0.0 }
 0x604   :  { %v8439_v60 = vmax.f32 %v8375_v33, 0.0 }
 0x605   :  { %v10089_v4 = vpack.c.bf16 %v8441_v44, %v8440_v3 }
 0x606   :  { %v10084_v32 = vpack.c.bf16 %v8439_v60, %v8438_v25 }
 0x607   :  { %10152 = vst [vmem:[#allocation12 + $0xf8] sm:$0xff] %v10089_v4  }
 0x608   :  { %10151 = vst [vmem:[#allocation12 + $0xf0] sm:$0xff] %v10084_v32  }
 0x609   :  { %12242 = shalt.err (!%p12239_p8)
}
 0x60a   :  { %s12243_s11 = scalar_lea.hbm %s14607_s5, 4096 }
 0x60b   :  { %p12244_p9 = scmp.ne.s32.totalorder %s14607_s5, %s12243_s11  ;;  %p12247_p10 = scmp.lt.u32.totalorder %s12243_s11, %s14607_s5 }
 0x60d   :  { %p12249_p11 = pnand %p12247_p10, %p12244_p9 }
 0x60f   :  { %12252 = shalt.err (!%p12249_p11)
}
 0x610   :  { %8773 = dma.vmem_to_hbm [thread:$0]  %s8768_s7, 4096, %s14607_s5, [#allocation6], %s12263_s30, %s12263_s30, %s12264_s6  }
 0x611   :  { %12259 = dma.done.wait [#allocation6], 4096  }
 0x612   :  { %12260 = vsyncadd [#allocation6], 4294963200 }
 0x613   :  { %8777 = vsyncpa [#allocation5], 1 }
 0x614   :  { %8778 = vsyncpa [#allocation8], 1 }
 0x615   :  { %8779 = vsyncpa [#allocation11], 1 }
 0x616   :  { %8780 = vsyncpa [#allocation6], 1 }

</bundles_post_ra>
